<compile_context>
chip_gen: v7x
topology: tpu7x:2x2x1
jax: 0.10.0
libtpu: 0.0.40
codegen_flags: <defaults>
</compile_context>

<pallas_src>
import functools

import jax
import jax.numpy as jnp
from jax.experimental import pallas as pl
from jax.experimental.pallas import tpu as pltpu

LANE = 128
SUBLANE = 8


def _round_up(v, m):
    return ((v + m - 1) // m) * m


# --------------------------------------------------------------------------
# Kernel
# --------------------------------------------------------------------------
def gated_gnn_kernel(x_ref, mask_ref, sup_ref,
                     w_enc_ref, b_enc_ref,
                     w_a_ref, w_h_ref, w_hh_ref, b_zr_ref, b_h_ref,
                     w_ro_ref, b_ro_ref, w_mlp_ref, b_mlp_ref,
                     o_ref, *, steps, bt, n, hp, mxu_dtype):
    """GatedGNN forward for one batch tile of `bt` graphs with `n` (padded) nodes."""
    rows = bt * n

    x = x_ref[...].reshape(rows, x_ref.shape[-1])         # (rows, Din)  MXU dtype
    mask3 = mask_ref[...]                                  # (bt, n, 1)   f32
    support = sup_ref[...]                                 # (bt, n, n)   MXU dtype

    # Hoisted broadcasts (reused by encode, every GRU step, and readout;
    # JAX does not CSE broadcast_in_dim, so do these exactly once).
    mask_b = jnp.broadcast_to(mask3.reshape(rows, 1), (rows, hp))
    b_zr_b = jnp.broadcast_to(b_zr_ref[...], (rows, 2 * hp))
    b_h_b = jnp.broadcast_to(b_h_ref[...], (rows, hp))

    def dot(a, w):  # MXU matmul: operands in mxu_dtype, f32 accumulation.
        return jnp.dot(a.astype(mxu_dtype), w, preferred_element_type=jnp.float32)

    # ---- GraphLayer encode (dropout = identity at inference) ----
    h = mask_b * jnp.tanh(dot(x, w_enc_ref[...]) + b_enc_ref[...])   # (rows, hp) f32

    w_a = w_a_ref[...]      # (hp, 3hp)  [z|r|h~] message weights
    w_h = w_h_ref[...]      # (hp, 2hp)  [z|r]    state weights
    w_hh = w_hh_ref[...]    # (hp, hp)

    # ---- gated GRU message-passing step ----
    def gru_step(_, h):
        # Per-graph message passing (batched matmul over the batch tile).
        a = jnp.einsum("bij,bjd->bid", support,
                       h.astype(mxu_dtype).reshape(bt, n, hp),
                       preferred_element_type=jnp.float32).reshape(rows, hp)
        ga = dot(a, w_a)                                   # (rows, 3hp)
        gh = dot(h, w_h) + b_zr_b                          # (rows, 2hp)
        zr = jax.nn.sigmoid(ga[:, :2 * hp] + gh)
        z = zr[:, :hp]
        r = zr[:, hp:]
        h_tilde = jnp.tanh(mask_b * (ga[:, 2 * hp:] + dot(r * h, w_hh) + b_h_b))
        return h + z * (h_tilde - h)                       # == h~*z + h*(1-z)

    if steps <= 3:
        for _ in range(steps):                             # short: static unroll
            h = gru_step(0, h)
    else:
        h = jax.lax.fori_loop(0, steps, gru_step, h)       # deep: bound live ranges

    # ---- ReadoutLayer: fused [emb | att] matmul + mean/max pooling + MLP ----
    ro = dot(h, w_ro_ref[...]) + b_ro_ref[...]             # (rows, 2hp)
    emb = jnp.tanh(ro[:, :hp])                             # (rows, hp)
    att = jax.nn.sigmoid(ro[:, hp:])                       # (rows, hp) replicated lanes
    g = (mask_b * att * emb).reshape(bt, n, hp)            # (bt, n, hp)

    n_nodes = jnp.maximum(jnp.sum(mask3, axis=1), 1.0)     # (bt, 1) empty-graph guard
    big_neg = (mask3 - 1.0) * 1e9                          # (bt, n, 1)
    g_mean = jnp.sum(g, axis=1) / n_nodes                  # (bt, hp)
    g_max = jnp.max(g + big_neg, axis=1)                   # (bt, hp)
    graph_vec = g_mean + g_max                             # (bt, hp)

    o_ref[0] = dot(graph_vec, w_mlp_ref[...]) + b_mlp_ref[...]   # (bt, out_pad)


# --------------------------------------------------------------------------
# Parameter packing (hoisted out of the per-call path — call once)
# --------------------------------------------------------------------------
_PACKED_NAMES = ("w_enc", "b_enc", "w_a", "w_h", "w_hh", "b_zr", "b_h",
                 "w_ro", "b_ro", "w_mlp", "b_mlp")


def pack_gated_gnn_params(params, *, mxu_dtype=jnp.bfloat16):
    """Pad to 128 lanes, stack gate weights, pre-sum biases, fuse readout.

    Weights (MXU operands) are cast to `mxu_dtype`; biases stay f32 (they are
    added to f32 accumulator outputs).
    """
    input_dim, hidden = params["w_enc"].shape
    out_dim = params["w_mlp"].shape[1]
    hp = _round_up(hidden, LANE)
    op = _round_up(out_dim, LANE)

    def pad(w, r, c):
        w = jnp.asarray(w, jnp.float32)
        return jnp.pad(w, ((0, r - w.shape[0]), (0, c - w.shape[1])))

    w_a = jnp.concatenate([pad(params["wz0"], hp, hp),
                           pad(params["wr0"], hp, hp),
                           pad(params["wh0"], hp, hp)], axis=1)      # (hp, 3hp)
    w_h = jnp.concatenate([pad(params["wz1"], hp, hp),
                           pad(params["wr1"], hp, hp)], axis=1)      # (hp, 2hp)
    b_zr = jnp.concatenate([pad(params["bz0"] + params["bz1"], 1, hp),
                            pad(params["br0"] + params["br1"], 1, hp)], axis=1)
    # Readout: [w_emb | w_att replicated across hp lanes] (broadcast via MXU).
    w_att_rep = jnp.tile(pad(params["w_att"], hp, 1), (1, hp))
    b_att_rep = jnp.tile(jnp.asarray(params["b_att"], jnp.float32), (1, hp))
    w_ro = jnp.concatenate([pad(params["w_emb"], hp, hp), w_att_rep], axis=1)
    b_ro = jnp.concatenate([pad(params["b_emb"], 1, hp), b_att_rep], axis=1)

    wc = lambda w: w.astype(mxu_dtype)
    arrays = {
        # x's feature dim is NOT padded; only w_enc's output columns are.
        "w_enc": wc(pad(params["w_enc"], input_dim, hp)),
        "b_enc": pad(params["b_enc"], 1, hp),
        "w_a": wc(w_a), "w_h": wc(w_h), "w_hh": wc(pad(params["wh1"], hp, hp)),
        "b_zr": b_zr, "b_h": pad(params["bh0"] + params["bh1"], 1, hp),
        "w_ro": wc(w_ro), "b_ro": b_ro,
        "w_mlp": wc(pad(params["w_mlp"], hp, op)),
        "b_mlp": pad(params["b_mlp"], 1, op),
    }
    return {"arrays": arrays, "input_dim": input_dim, "hidden": hidden,
            "out_dim": out_dim, "hp": hp, "op": op, "mxu_dtype": mxu_dtype}


# --------------------------------------------------------------------------
# VMEM-aware tile sizing
# --------------------------------------------------------------------------
def _vmem_budget_bytes():
    cap = 64 << 20   # conservative fallback (works on every generation)
    try:
        info = pltpu.get_tpu_info()
        cap = int(getattr(info, "vmem_capacity_bytes", cap) or cap)
    except Exception:
        pass
    # ~75% of physical with headroom for compiler scratch; never above 100 MiB.
    # -> ~96 MiB on v5e/v6e (128 MiB), ~48 MiB on v7x (64 MiB per TC).
    return min(int(cap * 0.75), 100 << 20)


def _tile_vmem_bytes(bt, npad, din, hp, op, weight_bytes, esize, single_buf_weights):
    rows = bt * npad
    lane = lambda d: _round_up(max(d, 1), LANE)
    sup = bt * npad * lane(npad) * esize * 2            # double-buffered support tile
    x = bt * npad * lane(din) * esize * 2               # double-buffered x tile
    msk = bt * npad * LANE * 4 * 2                      # (...,1) occupies one full lane
    out = bt * lane(op) * 4 * 2
    w = weight_bytes * (1 if single_buf_weights else 2)
    act = rows * hp * 4 * 12                            # h, a, ga(3), gh(2), zr(2), h~, mask_b, ...
    return sup + x + msk + out + w + act


def _choose_batch_tile(B, npad, din, hp, op, weight_bytes, esize, *,
                       vmem_budget, target_rows=256, min_grid_tiles=1,
                       single_buf_weights=True):
    """MXU/VMEM-aware batch-tile pick: rows = bt*npad ~ target_rows, tile fits VMEM."""
    divisors = [d for d in range(1, B + 1) if B % d == 0]
    feasible = [d for d in divisors
                if _tile_vmem_bytes(d, npad, din, hp, op, weight_bytes, esize,
                                    single_buf_weights) <= vmem_budget
                and (B // d) >= min_grid_tiles]
    if not feasible:
        return 1
    under = [d for d in feasible if d * npad <= target_rows]
    # Largest tile that still fills (but does not hugely overshoot) the MXU M-dim;
    # for huge graphs (npad > target_rows) fall back to the smallest feasible tile.
    return max(under) if under else min(feasible)


# --------------------------------------------------------------------------
# Forward wrapper
# --------------------------------------------------------------------------
def gated_gnn_forward(x, mask, support, packed, *, steps, batch_tile=None,
                      target_rows=256, min_grid_tiles=1, single_buffer_weights=True):
    """Run the GatedGNN forward pass with packed params (see pack_gated_gnn_params).

    On v7x pass min_grid_tiles=4 so each TensorCore gets >=2 grid tiles and the
    support/x DMA is hidden behind compute; on single-TC chips (v5e/v6e) the
    default (1) prefers fewer, larger grid steps.
    """
    B, N, Din = x.shape
    assert Din == packed["input_dim"]
    hp, op = packed["hp"], packed["op"]
    mxu_dtype = packed["mxu_dtype"]
    weights = [packed["arrays"][name] for name in _PACKED_NAMES]
    weight_bytes = sum(int(w.size) * jnp.dtype(w.dtype).itemsize for w in weights)
    esize = jnp.dtype(mxu_dtype).itemsize

    # Node dim padded to a sublane multiple (padded nodes have mask = 0 and
    # zero support, so results are unchanged). Feature dim is left unpadded.
    npad = _round_up(N, SUBLANE)
    vmem_budget = _vmem_budget_bytes()

    if batch_tile is None:
        batch_tile = _choose_batch_tile(
            B, npad, Din, hp, op, weight_bytes, esize,
            vmem_budget=vmem_budget, target_rows=target_rows,
            min_grid_tiles=min_grid_tiles, single_buf_weights=single_buffer_weights)
    bt = batch_tile
    assert B % bt == 0, "batch size must be divisible by batch_tile"

    x_p = jnp.pad(x.astype(mxu_dtype), ((0, 0), (0, npad - N), (0, 0)))
    mask_p = jnp.pad(mask.astype(jnp.float32), ((0, 0), (0, npad - N), (0, 0)))
    sup_p = jnp.pad(support.astype(mxu_dtype),
                    ((0, 0), (0, npad - N), (0, npad - N)))

    grid = (B // bt,)
    kernel = functools.partial(gated_gnn_kernel, steps=steps, bt=bt, n=npad,
                               hp=hp, mxu_dtype=mxu_dtype)

    def run(single_buf):
        def weight_spec(arr):
            nd = arr.ndim
            idx = lambda b, _nd=nd: (0,) * _nd      # grid-invariant
            if single_buf and hasattr(pl, "Buffered"):
                try:
                    # Constant index_map -> one buffer is enough; halves weight VMEM.
                    return pl.BlockSpec(arr.shape, idx, pipeline_mode=pl.Buffered(1))
                except TypeError:
                    pass
            return pl.BlockSpec(arr.shape, idx)

        return pl.pallas_call(
            kernel,
            out_shape=jax.ShapeDtypeStruct((B // bt, bt, op), jnp.float32),
            grid=grid,
            in_specs=[
                pl.BlockSpec((bt, npad, Din), lambda b: (b, 0, 0)),    # x (full last dim)
                pl.BlockSpec((bt, npad, 1), lambda b: (b, 0, 0)),      # mask
                pl.BlockSpec((bt, npad, npad), lambda b: (b, 0, 0)),   # support
            ] + [weight_spec(w) for w in weights],
            out_specs=pl.BlockSpec((1, bt, op), lambda b: (b, 0, 0)),
            compiler_params=pltpu.CompilerParams(
                dimension_semantics=("parallel",),
                vmem_limit_bytes=vmem_budget),
        )(x_p, mask_p, sup_p, *weights)

    if single_buffer_weights:
        try:
            out = run(True)
        except Exception:
            # Toolchain rejected single-buffered (Buffered(1)) inputs; the
            # default double-buffered weight path is still correct.
            out = run(False)
    else:
        out = run(False)

    return out.reshape(B, op)[:, :packed["out_dim"]]


# --------------------------------------------------------------------------
# Pure-JAX reference + init
# --------------------------------------------------------------------------
def gated_gnn_reference(x, mask, support, params, *, steps):
    """Pure-JAX reference matching the PyTorch/TF GatedGNN forward."""
    h = jnp.tanh(x @ params["w_enc"] + params["b_enc"])
    h = mask * h
    for _ in range(steps):
        a = jnp.einsum("bij,bjd->bid", support, h)
        z = jax.nn.sigmoid(a @ params["wz0"] + params["bz0"]
                           + h @ params["wz1"] + params["bz1"])
        r = jax.nn.sigmoid(a @ params["wr0"] + params["br0"]
                           + h @ params["wr1"] + params["br1"])
        ht = jnp.tanh(mask * (a @ params["wh0"] + params["bh0"]
                              + (r * h) @ params["wh1"] + params["bh1"]))
        h = ht * z + h * (1.0 - z)
    att = jax.nn.sigmoid(h @ params["w_att"] + params["b_att"])
    emb = jnp.tanh(h @ params["w_emb"] + params["b_emb"])
    n = jnp.sum(mask, axis=1)
    big_neg = (mask - 1.0) * 1e9
    g = mask * att * emb
    g = jnp.sum(g, axis=1) / n + jnp.max(g + big_neg, axis=1)
    return g @ params["w_mlp"] + params["b_mlp"]


def init_params(key, input_dim, hidden, output_dim):
    def glorot(k, shape):
        lim = jnp.sqrt(6.0 / (shape[0] + shape[1]))
        return jax.random.uniform(k, shape, jnp.float32, -lim, lim)

    ks = jax.random.split(key, 12)
    H = hidden
    return {
        "w_enc": glorot(ks[0], (input_dim, H)), "b_enc": jnp.zeros((1, H), jnp.float32),
        "wz0": glorot(ks[1], (H, H)), "wz1": glorot(ks[2], (H, H)),
        "wr0": glorot(ks[3], (H, H)), "wr1": glorot(ks[4], (H, H)),
        "wh0": glorot(ks[5], (H, H)), "wh1": glorot(ks[6], (H, H)),
        "bz0": jnp.zeros((1, H), jnp.float32), "bz1": jnp.zeros((1, H), jnp.float32),
        "br0": jnp.zeros((1, H), jnp.float32), "br1": jnp.zeros((1, H), jnp.float32),
        "bh0": jnp.zeros((1, H), jnp.float32), "bh1": jnp.zeros((1, H), jnp.float32),
        "w_att": glorot(ks[7], (H, 1)), "b_att": jnp.zeros((1, 1), jnp.float32),
        "w_emb": glorot(ks[8], (H, H)), "b_emb": jnp.zeros((1, H), jnp.float32),
        "w_mlp": glorot(ks[9], (H, output_dim)),
        "b_mlp": jnp.zeros((1, output_dim), jnp.float32),
    }


if __name__ == "__main__":
    B, N, INPUT_DIM, HIDDEN, OUTPUT_DIM, STEPS = 4, 16, 32, 32, 8, 2

    key = jax.random.PRNGKey(0)
    k_x, k_sup, k_p = jax.random.split(key, 3)

    x = jax.random.normal(k_x, (B, N, INPUT_DIM), jnp.float32)
    # mask: variable number of valid nodes per graph
    lengths = jnp.array([12, 16, 9, 14], jnp.int32)
    mask = (jnp.arange(N)[None, :] < lengths[:, None]).astype(jnp.float32)[..., None]
    # symmetric non-negative "support" (normalized-adjacency stand-in), masked
    adj = jax.random.uniform(k_sup, (B, N, N), jnp.float32)
    support = 0.5 * (adj + jnp.swapaxes(adj, 1, 2)) / N
    support = support * mask * jnp.swapaxes(mask, 1, 2)

    params = init_params(k_p, INPUT_DIM, HIDDEN, OUTPUT_DIM)
    ref = gated_gnn_reference(x, mask, support, params, steps=STEPS)

    # --- f32 MXU operands: accuracy mode, strict tolerance vs reference ---
    packed_f32 = pack_gated_gnn_params(params, mxu_dtype=jnp.float32)
    out_f32 = jax.block_until_ready(
        gated_gnn_forward(x, mask, support, packed_f32, steps=STEPS))
    assert out_f32.shape == (B, OUTPUT_DIM)
    assert jnp.allclose(out_f32, ref, atol=1e-4, rtol=1e-4), (out_f32, ref)

    # --- bf16 MXU operands: perf mode (f32 accumulation / elementwise math) ---
    packed_bf16 = pack_gated_gnn_params(params, mxu_dtype=jnp.bfloat16)
    out_bf16 = jax.block_until_ready(
        gated_gnn_forward(x, mask, support, packed_bf16, steps=STEPS))
    assert out_bf16.shape == (B, OUTPUT_DIM)
    assert jnp.allclose(out_bf16, ref, atol=1e-1, rtol=1e-1), (out_bf16, ref)

    print("KERNEL_OK")
</pallas_src>

<mosaic_0001>
module attributes {stable_mosaic.version = 11 : i64} {
  func.func @gated_gnn_kernel(%arg0: i32, %arg1: memref<4x16x32xf32, #tpu.memory_space<vmem>>, %arg2: memref<4x16x1xf32, #tpu.memory_space<vmem>>, %arg3: memref<4x16x16xf32, #tpu.memory_space<vmem>>, %arg4: memref<32x128xf32, #tpu.memory_space<vmem>>, %arg5: memref<1x128xf32, #tpu.memory_space<vmem>>, %arg6: memref<128x384xf32, #tpu.memory_space<vmem>>, %arg7: memref<128x256xf32, #tpu.memory_space<vmem>>, %arg8: memref<128x128xf32, #tpu.memory_space<vmem>>, %arg9: memref<1x256xf32, #tpu.memory_space<vmem>>, %arg10: memref<1x128xf32, #tpu.memory_space<vmem>>, %arg11: memref<128x256xf32, #tpu.memory_space<vmem>>, %arg12: memref<1x256xf32, #tpu.memory_space<vmem>>, %arg13: memref<128x128xf32, #tpu.memory_space<vmem>>, %arg14: memref<1x128xf32, #tpu.memory_space<vmem>>, %arg15: memref<1x4x128xf32, #tpu.memory_space<vmem>>) attributes {dimension_semantics = [#tpu.dimension_semantics<parallel>], iteration_bounds = array<i64: 1>, scalar_prefetch = 0 : i64, scratch_operands = 0 : i64, tpu.core_type = #tpu.core_type<tc>, window_params = [{transform_indices = @transform_0, window_bounds = array<i64: 4, 16, 32>}, {transform_indices = @transform_1, window_bounds = array<i64: 4, 16, 1>}, {transform_indices = @transform_2, window_bounds = array<i64: 4, 16, 16>}, {pipeline_mode = #tpu.pipeline_mode<synchronous>, transform_indices = @transform_3, window_bounds = array<i64: 32, 128>}, {pipeline_mode = #tpu.pipeline_mode<synchronous>, transform_indices = @transform_4, window_bounds = array<i64: 1, 128>}, {pipeline_mode = #tpu.pipeline_mode<synchronous>, transform_indices = @transform_5, window_bounds = array<i64: 128, 384>}, {pipeline_mode = #tpu.pipeline_mode<synchronous>, transform_indices = @transform_6, window_bounds = array<i64: 128, 256>}, {pipeline_mode = #tpu.pipeline_mode<synchronous>, transform_indices = @transform_7, window_bounds = array<i64: 128, 128>}, {pipeline_mode = #tpu.pipeline_mode<synchronous>, transform_indices = @transform_8, window_bounds = array<i64: 1, 256>}, {pipeline_mode = #tpu.pipeline_mode<synchronous>, transform_indices = @transform_9, window_bounds = array<i64: 1, 128>}, {pipeline_mode = #tpu.pipeline_mode<synchronous>, transform_indices = @transform_10, window_bounds = array<i64: 128, 256>}, {pipeline_mode = #tpu.pipeline_mode<synchronous>, transform_indices = @transform_11, window_bounds = array<i64: 1, 256>}, {pipeline_mode = #tpu.pipeline_mode<synchronous>, transform_indices = @transform_12, window_bounds = array<i64: 128, 128>}, {pipeline_mode = #tpu.pipeline_mode<synchronous>, transform_indices = @transform_13, window_bounds = array<i64: 1, 128>}, {transform_indices = @transform_14, window_bounds = array<i64: 1, 4, 128>}]} {
    %c0 = arith.constant 0 : index
    %c0_0 = arith.constant 0 : index
    %c0_1 = arith.constant 0 : index
    %0 = vector.load %arg1[%c0, %c0_0, %c0_1] : memref<4x16x32xf32, #tpu.memory_space<vmem>>, vector<4x16x32xf32>
    %1 = vector.shape_cast %0 : vector<4x16x32xf32> to vector<64x32xf32>
    %c0_2 = arith.constant 0 : index
    %c0_3 = arith.constant 0 : index
    %c0_4 = arith.constant 0 : index
    %2 = vector.load %arg2[%c0_2, %c0_3, %c0_4] : memref<4x16x1xf32, #tpu.memory_space<vmem>>, vector<4x16x1xf32>
    %c0_5 = arith.constant 0 : index
    %c0_6 = arith.constant 0 : index
    %c0_7 = arith.constant 0 : index
    %3 = vector.load %arg3[%c0_5, %c0_6, %c0_7] : memref<4x16x16xf32, #tpu.memory_space<vmem>>, vector<4x16x16xf32>
    %4 = vector.shape_cast %2 : vector<4x16x1xf32> to vector<64x1xf32>
    %5 = vector.shape_cast %4 : vector<64x1xf32> to vector<64x1xf32>
    %6 = vector.broadcast %5 : vector<64x1xf32> to vector<64x128xf32>
    %c0_8 = arith.constant 0 : index
    %c0_9 = arith.constant 0 : index
    %7 = vector.load %arg9[%c0_8, %c0_9] : memref<1x256xf32, #tpu.memory_space<vmem>>, vector<1x256xf32>
    %8 = vector.shape_cast %7 : vector<1x256xf32> to vector<1x256xf32>
    %9 = vector.broadcast %8 : vector<1x256xf32> to vector<64x256xf32>
    %c0_10 = arith.constant 0 : index
    %c0_11 = arith.constant 0 : index
    %10 = vector.load %arg10[%c0_10, %c0_11] : memref<1x128xf32, #tpu.memory_space<vmem>>, vector<1x128xf32>
    %11 = vector.shape_cast %10 : vector<1x128xf32> to vector<1x128xf32>
    %12 = vector.broadcast %11 : vector<1x128xf32> to vector<64x128xf32>
    %c0_12 = arith.constant 0 : index
    %c0_13 = arith.constant 0 : index
    %13 = vector.load %arg4[%c0_12, %c0_13] : memref<32x128xf32, #tpu.memory_space<vmem>>, vector<32x128xf32>
    %cst = arith.constant dense<0.000000e+00> : vector<64x128xf32>
    %14 = tpu.matmul %1, %13, %cst {dimension_numbers = #tpu.dot_dimension_numbers<[1], [0], [0], [1], [0, 0, 1, 1], [], []>} : vector<64x32xf32>, vector<32x128xf32>, vector<64x128xf32> -> vector<64x128xf32>
    %c0_14 = arith.constant 0 : index
    %c0_15 = arith.constant 0 : index
    %15 = vector.load %arg5[%c0_14, %c0_15] : memref<1x128xf32, #tpu.memory_space<vmem>>, vector<1x128xf32>
    %16 = vector.broadcast %15 : vector<1x128xf32> to vector<64x128xf32>
    %17 = arith.addf %14, %16 : vector<64x128xf32>
    %18 = math.tanh %17 : vector<64x128xf32>
    %19 = arith.mulf %6, %18 : vector<64x128xf32>
    %c0_16 = arith.constant 0 : index
    %c0_17 = arith.constant 0 : index
    %20 = vector.load %arg6[%c0_16, %c0_17] : memref<128x384xf32, #tpu.memory_space<vmem>>, vector<128x384xf32>
    %c0_18 = arith.constant 0 : index
    %c0_19 = arith.constant 0 : index
    %21 = vector.load %arg7[%c0_18, %c0_19] : memref<128x256xf32, #tpu.memory_space<vmem>>, vector<128x256xf32>
    %c0_20 = arith.constant 0 : index
    %c0_21 = arith.constant 0 : index
    %22 = vector.load %arg8[%c0_20, %c0_21] : memref<128x128xf32, #tpu.memory_space<vmem>>, vector<128x128xf32>
    %23 = vector.shape_cast %19 : vector<64x128xf32> to vector<4x16x128xf32>
    "tpu.trace_start"() <{level = 10 : i32, message = "bij,bjd->bid"}> : () -> ()
    %cst_22 = arith.constant dense<0.000000e+00> : vector<4x16x128xf32>
    %24 = tpu.matmul %3, %23, %cst_22 {dimension_numbers = #tpu.dot_dimension_numbers<[2], [1], [1], [2], [0, 0, 0, 1, 1, 2], [0], [0]>} : vector<4x16x16xf32>, vector<4x16x128xf32>, vector<4x16x128xf32> -> vector<4x16x128xf32>
    "tpu.trace_stop"() : () -> ()
    %25 = vector.shape_cast %24 : vector<4x16x128xf32> to vector<64x128xf32>
    %cst_23 = arith.constant dense<0.000000e+00> : vector<64x384xf32>
    %26 = tpu.matmul %25, %20, %cst_23 {dimension_numbers = #tpu.dot_dimension_numbers<[1], [0], [0], [1], [0, 0, 1, 1], [], []>} : vector<64x128xf32>, vector<128x384xf32>, vector<64x384xf32> -> vector<64x384xf32>
    %cst_24 = arith.constant dense<0.000000e+00> : vector<64x256xf32>
    %27 = tpu.matmul %19, %21, %cst_24 {dimension_numbers = #tpu.dot_dimension_numbers<[1], [0], [0], [1], [0, 0, 1, 1], [], []>} : vector<64x128xf32>, vector<128x256xf32>, vector<64x256xf32> -> vector<64x256xf32>
    %28 = arith.addf %27, %9 : vector<64x256xf32>
    %29 = vector.extract_strided_slice %26 {offsets = [0, 0], sizes = [64, 256], strides = [1, 1]} : vector<64x384xf32> to vector<64x256xf32>
    %30 = arith.addf %29, %28 : vector<64x256xf32>
    %31 = arith.negf %30 : vector<64x256xf32>
    %32 = math.exp %31 : vector<64x256xf32>
    %cst_25 = arith.constant 1.000000e+00 : f32
    %33 = vector.broadcast %cst_25 : f32 to vector<64x256xf32>
    %34 = arith.addf %33, %32 : vector<64x256xf32>
    %35 = arith.divf %33, %34 : vector<64x256xf32>
    %36 = vector.extract_strided_slice %35 {offsets = [0, 0], sizes = [64, 128], strides = [1, 1]} : vector<64x256xf32> to vector<64x128xf32>
    %37 = vector.extract_strided_slice %35 {offsets = [0, 128], sizes = [64, 128], strides = [1, 1]} : vector<64x256xf32> to vector<64x128xf32>
    %38 = vector.extract_strided_slice %26 {offsets = [0, 256], sizes = [64, 128], strides = [1, 1]} : vector<64x384xf32> to vector<64x128xf32>
    %39 = arith.mulf %37, %19 : vector<64x128xf32>
    %cst_26 = arith.constant dense<0.000000e+00> : vector<64x128xf32>
    %40 = tpu.matmul %39, %22, %cst_26 {dimension_numbers = #tpu.dot_dimension_numbers<[1], [0], [0], [1], [0, 0, 1, 1], [], []>} : vector<64x128xf32>, vector<128x128xf32>, vector<64x128xf32> -> vector<64x128xf32>
    %41 = arith.addf %38, %40 : vector<64x128xf32>
    %42 = arith.addf %41, %12 : vector<64x128xf32>
    %43 = arith.mulf %6, %42 : vector<64x128xf32>
    %44 = math.tanh %43 : vector<64x128xf32>
    %45 = arith.subf %44, %19 : vector<64x128xf32>
    %46 = arith.mulf %36, %45 : vector<64x128xf32>
    %47 = arith.addf %19, %46 : vector<64x128xf32>
    %48 = vector.shape_cast %47 : vector<64x128xf32> to vector<4x16x128xf32>
    "tpu.trace_start"() <{level = 10 : i32, message = "bij,bjd->bid"}> : () -> ()
    %cst_27 = arith.constant dense<0.000000e+00> : vector<4x16x128xf32>
    %49 = tpu.matmul %3, %48, %cst_27 {dimension_numbers = #tpu.dot_dimension_numbers<[2], [1], [1], [2], [0, 0, 0, 1, 1, 2], [0], [0]>} : vector<4x16x16xf32>, vector<4x16x128xf32>, vector<4x16x128xf32> -> vector<4x16x128xf32>
    "tpu.trace_stop"() : () -> ()
    %50 = vector.shape_cast %49 : vector<4x16x128xf32> to vector<64x128xf32>
    %cst_28 = arith.constant dense<0.000000e+00> : vector<64x384xf32>
    %51 = tpu.matmul %50, %20, %cst_28 {dimension_numbers = #tpu.dot_dimension_numbers<[1], [0], [0], [1], [0, 0, 1, 1], [], []>} : vector<64x128xf32>, vector<128x384xf32>, vector<64x384xf32> -> vector<64x384xf32>
    %cst_29 = arith.constant dense<0.000000e+00> : vector<64x256xf32>
    %52 = tpu.matmul %47, %21, %cst_29 {dimension_numbers = #tpu.dot_dimension_numbers<[1], [0], [0], [1], [0, 0, 1, 1], [], []>} : vector<64x128xf32>, vector<128x256xf32>, vector<64x256xf32> -> vector<64x256xf32>
    %53 = arith.addf %52, %9 : vector<64x256xf32>
    %54 = vector.extract_strided_slice %51 {offsets = [0, 0], sizes = [64, 256], strides = [1, 1]} : vector<64x384xf32> to vector<64x256xf32>
    %55 = arith.addf %54, %53 : vector<64x256xf32>
    %56 = arith.negf %55 : vector<64x256xf32>
    %57 = math.exp %56 : vector<64x256xf32>
    %cst_30 = arith.constant 1.000000e+00 : f32
    %58 = vector.broadcast %cst_30 : f32 to vector<64x256xf32>
    %59 = arith.addf %58, %57 : vector<64x256xf32>
    %60 = arith.divf %58, %59 : vector<64x256xf32>
    %61 = vector.extract_strided_slice %60 {offsets = [0, 0], sizes = [64, 128], strides = [1, 1]} : vector<64x256xf32> to vector<64x128xf32>
    %62 = vector.extract_strided_slice %60 {offsets = [0, 128], sizes = [64, 128], strides = [1, 1]} : vector<64x256xf32> to vector<64x128xf32>
    %63 = vector.extract_strided_slice %51 {offsets = [0, 256], sizes = [64, 128], strides = [1, 1]} : vector<64x384xf32> to vector<64x128xf32>
    %64 = arith.mulf %62, %47 : vector<64x128xf32>
    %cst_31 = arith.constant dense<0.000000e+00> : vector<64x128xf32>
    %65 = tpu.matmul %64, %22, %cst_31 {dimension_numbers = #tpu.dot_dimension_numbers<[1], [0], [0], [1], [0, 0, 1, 1], [], []>} : vector<64x128xf32>, vector<128x128xf32>, vector<64x128xf32> -> vector<64x128xf32>
    %66 = arith.addf %63, %65 : vector<64x128xf32>
    %67 = arith.addf %66, %12 : vector<64x128xf32>
    %68 = arith.mulf %6, %67 : vector<64x128xf32>
    %69 = math.tanh %68 : vector<64x128xf32>
    %70 = arith.subf %69, %47 : vector<64x128xf32>
    %71 = arith.mulf %61, %70 : vector<64x128xf32>
    %72 = arith.addf %47, %71 : vector<64x128xf32>
    %c0_32 = arith.constant 0 : index
    %c0_33 = arith.constant 0 : index
    %73 = vector.load %arg11[%c0_32, %c0_33] : memref<128x256xf32, #tpu.memory_space<vmem>>, vector<128x256xf32>
    %cst_34 = arith.constant dense<0.000000e+00> : vector<64x256xf32>
    %74 = tpu.matmul %72, %73, %cst_34 {dimension_numbers = #tpu.dot_dimension_numbers<[1], [0], [0], [1], [0, 0, 1, 1], [], []>} : vector<64x128xf32>, vector<128x256xf32>, vector<64x256xf32> -> vector<64x256xf32>
    %c0_35 = arith.constant 0 : index
    %c0_36 = arith.constant 0 : index
    %75 = vector.load %arg12[%c0_35, %c0_36] : memref<1x256xf32, #tpu.memory_space<vmem>>, vector<1x256xf32>
    %76 = vector.broadcast %75 : vector<1x256xf32> to vector<64x256xf32>
    %77 = arith.addf %74, %76 : vector<64x256xf32>
    %78 = vector.extract_strided_slice %77 {offsets = [0, 0], sizes = [64, 128], strides = [1, 1]} : vector<64x256xf32> to vector<64x128xf32>
    %79 = math.tanh %78 : vector<64x128xf32>
    %80 = vector.extract_strided_slice %77 {offsets = [0, 128], sizes = [64, 128], strides = [1, 1]} : vector<64x256xf32> to vector<64x128xf32>
    %81 = arith.negf %80 : vector<64x128xf32>
    %82 = math.exp %81 : vector<64x128xf32>
    %cst_37 = arith.constant 1.000000e+00 : f32
    %83 = vector.broadcast %cst_37 : f32 to vector<64x128xf32>
    %84 = arith.addf %83, %82 : vector<64x128xf32>
    %85 = arith.divf %83, %84 : vector<64x128xf32>
    %86 = arith.mulf %6, %85 : vector<64x128xf32>
    %87 = arith.mulf %86, %79 : vector<64x128xf32>
    %88 = vector.shape_cast %87 : vector<64x128xf32> to vector<4x16x128xf32>
    %cst_38 = arith.constant dense<0.000000e+00> : vector<4x1xf32>
    %89 = vector.multi_reduction <add>, %2, %cst_38 [1] : vector<4x16x1xf32> to vector<4x1xf32>
    %cst_39 = arith.constant 1.000000e+00 : f32
    %90 = vector.broadcast %cst_39 : f32 to vector<4x1xf32>
    %91 = arith.maximumf %89, %90 : vector<4x1xf32>
    %cst_40 = arith.constant 1.000000e+00 : f32
    %92 = vector.broadcast %cst_40 : f32 to vector<4x16x1xf32>
    %93 = arith.subf %2, %92 : vector<4x16x1xf32>
    %cst_41 = arith.constant 1.000000e+09 : f32
    %94 = vector.broadcast %cst_41 : f32 to vector<4x16x1xf32>
    %95 = arith.mulf %93, %94 : vector<4x16x1xf32>
    %cst_42 = arith.constant dense<0.000000e+00> : vector<4x128xf32>
    %96 = vector.multi_reduction <add>, %88, %cst_42 [1] : vector<4x16x128xf32> to vector<4x128xf32>
    %97 = vector.broadcast %91 : vector<4x1xf32> to vector<4x128xf32>
    %98 = arith.divf %96, %97 : vector<4x128xf32>
    %99 = vector.broadcast %95 : vector<4x16x1xf32> to vector<4x16x128xf32>
    %100 = arith.addf %88, %99 : vector<4x16x128xf32>
    %cst_43 = arith.constant dense<0xFF800000> : vector<4x128xf32>
    %101 = vector.multi_reduction <maximumf>, %100, %cst_43 [1] : vector<4x16x128xf32> to vector<4x128xf32>
    %102 = arith.addf %98, %101 : vector<4x128xf32>
    %c0_44 = arith.constant 0 : index
    %c0_45 = arith.constant 0 : index
    %103 = vector.load %arg13[%c0_44, %c0_45] : memref<128x128xf32, #tpu.memory_space<vmem>>, vector<128x128xf32>
    %cst_46 = arith.constant dense<0.000000e+00> : vector<4x128xf32>
    %104 = tpu.matmul %102, %103, %cst_46 {dimension_numbers = #tpu.dot_dimension_numbers<[1], [0], [0], [1], [0, 0, 1, 1], [], []>} : vector<4x128xf32>, vector<128x128xf32>, vector<4x128xf32> -> vector<4x128xf32>
    %c0_47 = arith.constant 0 : index
    %c0_48 = arith.constant 0 : index
    %105 = vector.load %arg14[%c0_47, %c0_48] : memref<1x128xf32, #tpu.memory_space<vmem>>, vector<1x128xf32>
    %106 = vector.broadcast %105 : vector<1x128xf32> to vector<4x128xf32>
    %107 = arith.addf %104, %106 : vector<4x128xf32>
    %c0_49 = arith.constant 0 : index
    %c0_50 = arith.constant 0 : index
    %c0_51 = arith.constant 0 : index
    %108 = vector.load %arg15[%c0_49, %c0_50, %c0_51] : memref<1x4x128xf32, #tpu.memory_space<vmem>>, vector<1x4x128xf32>
    %109 = vector.shape_cast %108 : vector<1x4x128xf32> to vector<4x128xf32>
    %110 = vector.shape_cast %107 : vector<4x128xf32> to vector<1x4x128xf32>
    tpu.vector_store %arg15[%c0_49, %c0_50, %c0_51], %110 {strides = array<i32>} : memref<1x4x128xf32, #tpu.memory_space<vmem>>, vector<1x4x128xf32>,
    return
  }
  func.func @transform_0(%arg0: i32) -> (i32, i32, i32) {
    %c0_i32 = arith.constant 0 : i32
    %c0_i32_0 = arith.constant 0 : i32
    %c0_i32_1 = arith.constant 0 : i32
    return %arg0, %c0_i32, %c0_i32_0 : i32, i32, i32
  }
  func.func @transform_1(%arg0: i32) -> (i32, i32, i32) {
    %c0_i32 = arith.constant 0 : i32
    %c0_i32_0 = arith.constant 0 : i32
    %c0_i32_1 = arith.constant 0 : i32
    return %arg0, %c0_i32, %c0_i32_0 : i32, i32, i32
  }
  func.func @transform_2(%arg0: i32) -> (i32, i32, i32) {
    %c0_i32 = arith.constant 0 : i32
    %c0_i32_0 = arith.constant 0 : i32
    %c0_i32_1 = arith.constant 0 : i32
    return %arg0, %c0_i32, %c0_i32_0 : i32, i32, i32
  }
  func.func @transform_3(%arg0: i32) -> (i32, i32) {
    %c0_i32 = arith.constant 0 : i32
    %c0_i32_0 = arith.constant 0 : i32
    %c0_i32_1 = arith.constant 0 : i32
    return %c0_i32, %c0_i32_0 : i32, i32
  }
  func.func @transform_4(%arg0: i32) -> (i32, i32) {
    %c0_i32 = arith.constant 0 : i32
    %c0_i32_0 = arith.constant 0 : i32
    %c0_i32_1 = arith.constant 0 : i32
    return %c0_i32, %c0_i32_0 : i32, i32
  }
  func.func @transform_5(%arg0: i32) -> (i32, i32) {
    %c0_i32 = arith.constant 0 : i32
    %c0_i32_0 = arith.constant 0 : i32
    %c0_i32_1 = arith.constant 0 : i32
    return %c0_i32, %c0_i32_0 : i32, i32
  }
  func.func @transform_6(%arg0: i32) -> (i32, i32) {
    %c0_i32 = arith.constant 0 : i32
    %c0_i32_0 = arith.constant 0 : i32
    %c0_i32_1 = arith.constant 0 : i32
    return %c0_i32, %c0_i32_0 : i32, i32
  }
  func.func @transform_7(%arg0: i32) -> (i32, i32) {
    %c0_i32 = arith.constant 0 : i32
    %c0_i32_0 = arith.constant 0 : i32
    %c0_i32_1 = arith.constant 0 : i32
    return %c0_i32, %c0_i32_0 : i32, i32
  }
  func.func @transform_8(%arg0: i32) -> (i32, i32) {
    %c0_i32 = arith.constant 0 : i32
    %c0_i32_0 = arith.constant 0 : i32
    %c0_i32_1 = arith.constant 0 : i32
    return %c0_i32, %c0_i32_0 : i32, i32
  }
  func.func @transform_9(%arg0: i32) -> (i32, i32) {
    %c0_i32 = arith.constant 0 : i32
    %c0_i32_0 = arith.constant 0 : i32
    %c0_i32_1 = arith.constant 0 : i32
    return %c0_i32, %c0_i32_0 : i32, i32
  }
  func.func @transform_10(%arg0: i32) -> (i32, i32) {
    %c0_i32 = arith.constant 0 : i32
    %c0_i32_0 = arith.constant 0 : i32
    %c0_i32_1 = arith.constant 0 : i32
    return %c0_i32, %c0_i32_0 : i32, i32
  }
  func.func @transform_11(%arg0: i32) -> (i32, i32) {
    %c0_i32 = arith.constant 0 : i32
    %c0_i32_0 = arith.constant 0 : i32
    %c0_i32_1 = arith.constant 0 : i32
    return %c0_i32, %c0_i32_0 : i32, i32
  }
  func.func @transform_12(%arg0: i32) -> (i32, i32) {
    %c0_i32 = arith.constant 0 : i32
    %c0_i32_0 = arith.constant 0 : i32
    %c0_i32_1 = arith.constant 0 : i32
    return %c0_i32, %c0_i32_0 : i32, i32
  }
  func.func @transform_13(%arg0: i32) -> (i32, i32) {
    %c0_i32 = arith.constant 0 : i32
    %c0_i32_0 = arith.constant 0 : i32
    %c0_i32_1 = arith.constant 0 : i32
    return %c0_i32, %c0_i32_0 : i32, i32
  }
  func.func @transform_14(%arg0: i32) -> (i32, i32, i32) {
    %c0_i32 = arith.constant 0 : i32
    %c0_i32_0 = arith.constant 0 : i32
    %c0_i32_1 = arith.constant 0 : i32
    return %arg0, %c0_i32, %c0_i32_0 : i32, i32, i32
  }
}

module attributes {stable_mosaic.version = 11 : i64} {
  func.func @gated_gnn_kernel(%arg0: i32, %arg1: memref<4x16x32xf32, #tpu.memory_space<vmem>>, %arg2: memref<4x16x1xf32, #tpu.memory_space<vmem>>, %arg3: memref<4x16x16xf32, #tpu.memory_space<vmem>>, %arg4: memref<32x128xf32, #tpu.memory_space<vmem>>, %arg5: memref<1x128xf32, #tpu.memory_space<vmem>>, %arg6: memref<128x384xf32, #tpu.memory_space<vmem>>, %arg7: memref<128x256xf32, #tpu.memory_space<vmem>>, %arg8: memref<128x128xf32, #tpu.memory_space<vmem>>, %arg9: memref<1x256xf32, #tpu.memory_space<vmem>>, %arg10: memref<1x128xf32, #tpu.memory_space<vmem>>, %arg11: memref<128x256xf32, #tpu.memory_space<vmem>>, %arg12: memref<1x256xf32, #tpu.memory_space<vmem>>, %arg13: memref<128x128xf32, #tpu.memory_space<vmem>>, %arg14: memref<1x128xf32, #tpu.memory_space<vmem>>, %arg15: memref<1x4x128xf32, #tpu.memory_space<vmem>>) attributes {dimension_semantics = [#tpu.dimension_semantics<parallel>], iteration_bounds = array<i64: 1>, scalar_prefetch = 0 : i64, scratch_operands = 0 : i64, tpu.core_type = #tpu.core_type<tc>, window_params = [{transform_indices = @transform_0, window_bounds = array<i64: 4, 16, 32>}, {transform_indices = @transform_1, window_bounds = array<i64: 4, 16, 1>}, {transform_indices = @transform_2, window_bounds = array<i64: 4, 16, 16>}, {pipeline_mode = #tpu.pipeline_mode<synchronous>, transform_indices = @transform_3, window_bounds = array<i64: 32, 128>}, {pipeline_mode = #tpu.pipeline_mode<synchronous>, transform_indices = @transform_4, window_bounds = array<i64: 1, 128>}, {pipeline_mode = #tpu.pipeline_mode<synchronous>, transform_indices = @transform_5, window_bounds = array<i64: 128, 384>}, {pipeline_mode = #tpu.pipeline_mode<synchronous>, transform_indices = @transform_6, window_bounds = array<i64: 128, 256>}, {pipeline_mode = #tpu.pipeline_mode<synchronous>, transform_indices = @transform_7, window_bounds = array<i64: 128, 128>}, {pipeline_mode = #tpu.pipeline_mode<synchronous>, transform_indices = @transform_8, window_bounds = array<i64: 1, 256>}, {pipeline_mode = #tpu.pipeline_mode<synchronous>, transform_indices = @transform_9, window_bounds = array<i64: 1, 128>}, {pipeline_mode = #tpu.pipeline_mode<synchronous>, transform_indices = @transform_10, window_bounds = array<i64: 128, 256>}, {pipeline_mode = #tpu.pipeline_mode<synchronous>, transform_indices = @transform_11, window_bounds = array<i64: 1, 256>}, {pipeline_mode = #tpu.pipeline_mode<synchronous>, transform_indices = @transform_12, window_bounds = array<i64: 128, 128>}, {pipeline_mode = #tpu.pipeline_mode<synchronous>, transform_indices = @transform_13, window_bounds = array<i64: 1, 128>}, {transform_indices = @transform_14, window_bounds = array<i64: 1, 4, 128>}]} {
    %c0 = arith.constant 0 : index
    %c0_0 = arith.constant 0 : index
    %c0_1 = arith.constant 0 : index
    %0 = vector.load %arg1[%c0, %c0_0, %c0_1] : memref<4x16x32xf32, #tpu.memory_space<vmem>>, vector<4x16x32xf32>
    %1 = vector.shape_cast %0 : vector<4x16x32xf32> to vector<64x32xf32>
    %c0_2 = arith.constant 0 : index
    %c0_3 = arith.constant 0 : index
    %c0_4 = arith.constant 0 : index
    %2 = vector.load %arg2[%c0_2, %c0_3, %c0_4] : memref<4x16x1xf32, #tpu.memory_space<vmem>>, vector<4x16x1xf32>
    %c0_5 = arith.constant 0 : index
    %c0_6 = arith.constant 0 : index
    %c0_7 = arith.constant 0 : index
    %3 = vector.load %arg3[%c0_5, %c0_6, %c0_7] : memref<4x16x16xf32, #tpu.memory_space<vmem>>, vector<4x16x16xf32>
    %4 = vector.shape_cast %2 : vector<4x16x1xf32> to vector<64x1xf32>
    %5 = vector.shape_cast %4 : vector<64x1xf32> to vector<64x1xf32>
    %6 = vector.broadcast %5 : vector<64x1xf32> to vector<64x128xf32>
    %c0_8 = arith.constant 0 : index
    %c0_9 = arith.constant 0 : index
    %7 = vector.load %arg9[%c0_8, %c0_9] : memref<1x256xf32, #tpu.memory_space<vmem>>, vector<1x256xf32>
    %8 = vector.shape_cast %7 : vector<1x256xf32> to vector<1x256xf32>
    %9 = vector.broadcast %8 : vector<1x256xf32> to vector<64x256xf32>
    %c0_10 = arith.constant 0 : index
    %c0_11 = arith.constant 0 : index
    %10 = vector.load %arg10[%c0_10, %c0_11] : memref<1x128xf32, #tpu.memory_space<vmem>>, vector<1x128xf32>
    %11 = vector.shape_cast %10 : vector<1x128xf32> to vector<1x128xf32>
    %12 = vector.broadcast %11 : vector<1x128xf32> to vector<64x128xf32>
    %c0_12 = arith.constant 0 : index
    %c0_13 = arith.constant 0 : index
    %13 = vector.load %arg4[%c0_12, %c0_13] : memref<32x128xf32, #tpu.memory_space<vmem>>, vector<32x128xf32>
    %cst = arith.constant dense<0.000000e+00> : vector<64x128xf32>
    %14 = tpu.matmul %1, %13, %cst {dimension_numbers = #tpu.dot_dimension_numbers<[1], [0], [0], [1], [0, 0, 1, 1], [], []>} : vector<64x32xf32>, vector<32x128xf32>, vector<64x128xf32> -> vector<64x128xf32>
    %c0_14 = arith.constant 0 : index
    %c0_15 = arith.constant 0 : index
    %15 = vector.load %arg5[%c0_14, %c0_15] : memref<1x128xf32, #tpu.memory_space<vmem>>, vector<1x128xf32>
    %16 = vector.broadcast %15 : vector<1x128xf32> to vector<64x128xf32>
    %17 = arith.addf %14, %16 : vector<64x128xf32>
    %18 = math.tanh %17 : vector<64x128xf32>
    %19 = arith.mulf %6, %18 : vector<64x128xf32>
    %c0_16 = arith.constant 0 : index
    %c0_17 = arith.constant 0 : index
    %20 = vector.load %arg6[%c0_16, %c0_17] : memref<128x384xf32, #tpu.memory_space<vmem>>, vector<128x384xf32>
    %c0_18 = arith.constant 0 : index
    %c0_19 = arith.constant 0 : index
    %21 = vector.load %arg7[%c0_18, %c0_19] : memref<128x256xf32, #tpu.memory_space<vmem>>, vector<128x256xf32>
    %c0_20 = arith.constant 0 : index
    %c0_21 = arith.constant 0 : index
    %22 = vector.load %arg8[%c0_20, %c0_21] : memref<128x128xf32, #tpu.memory_space<vmem>>, vector<128x128xf32>
    %23 = vector.shape_cast %19 : vector<64x128xf32> to vector<4x16x128xf32>
    "tpu.trace_start"() <{level = 10 : i32, message = "bij,bjd->bid"}> : () -> ()
    %cst_22 = arith.constant dense<0.000000e+00> : vector<4x16x128xf32>
    %24 = tpu.matmul %3, %23, %cst_22 {dimension_numbers = #tpu.dot_dimension_numbers<[2], [1], [1], [2], [0, 0, 0, 1, 1, 2], [0], [0]>} : vector<4x16x16xf32>, vector<4x16x128xf32>, vector<4x16x128xf32> -> vector<4x16x128xf32>
    "tpu.trace_stop"() : () -> ()
    %25 = vector.shape_cast %24 : vector<4x16x128xf32> to vector<64x128xf32>
    %cst_23 = arith.constant dense<0.000000e+00> : vector<64x384xf32>
    %26 = tpu.matmul %25, %20, %cst_23 {dimension_numbers = #tpu.dot_dimension_numbers<[1], [0], [0], [1], [0, 0, 1, 1], [], []>} : vector<64x128xf32>, vector<128x384xf32>, vector<64x384xf32> -> vector<64x384xf32>
    %cst_24 = arith.constant dense<0.000000e+00> : vector<64x256xf32>
    %27 = tpu.matmul %19, %21, %cst_24 {dimension_numbers = #tpu.dot_dimension_numbers<[1], [0], [0], [1], [0, 0, 1, 1], [], []>} : vector<64x128xf32>, vector<128x256xf32>, vector<64x256xf32> -> vector<64x256xf32>
    %28 = arith.addf %27, %9 : vector<64x256xf32>
    %29 = vector.extract_strided_slice %26 {offsets = [0, 0], sizes = [64, 256], strides = [1, 1]} : vector<64x384xf32> to vector<64x256xf32>
    %30 = arith.addf %29, %28 : vector<64x256xf32>
    %31 = arith.negf %30 : vector<64x256xf32>
    %32 = math.exp %31 : vector<64x256xf32>
    %cst_25 = arith.constant 1.000000e+00 : f32
    %33 = vector.broadcast %cst_25 : f32 to vector<64x256xf32>
    %34 = arith.addf %33, %32 : vector<64x256xf32>
    %35 = arith.divf %33, %34 : vector<64x256xf32>
    %36 = vector.extract_strided_slice %35 {offsets = [0, 0], sizes = [64, 128], strides = [1, 1]} : vector<64x256xf32> to vector<64x128xf32>
    %37 = vector.extract_strided_slice %35 {offsets = [0, 128], sizes = [64, 128], strides = [1, 1]} : vector<64x256xf32> to vector<64x128xf32>
    %38 = vector.extract_strided_slice %26 {offsets = [0, 256], sizes = [64, 128], strides = [1, 1]} : vector<64x384xf32> to vector<64x128xf32>
    %39 = arith.mulf %37, %19 : vector<64x128xf32>
    %cst_26 = arith.constant dense<0.000000e+00> : vector<64x128xf32>
    %40 = tpu.matmul %39, %22, %cst_26 {dimension_numbers = #tpu.dot_dimension_numbers<[1], [0], [0], [1], [0, 0, 1, 1], [], []>} : vector<64x128xf32>, vector<128x128xf32>, vector<64x128xf32> -> vector<64x128xf32>
    %41 = arith.addf %38, %40 : vector<64x128xf32>
    %42 = arith.addf %41, %12 : vector<64x128xf32>
    %43 = arith.mulf %6, %42 : vector<64x128xf32>
    %44 = math.tanh %43 : vector<64x128xf32>
    %45 = arith.subf %44, %19 : vector<64x128xf32>
    %46 = arith.mulf %36, %45 : vector<64x128xf32>
    %47 = arith.addf %19, %46 : vector<64x128xf32>
    %48 = vector.shape_cast %47 : vector<64x128xf32> to vector<4x16x128xf32>
    "tpu.trace_start"() <{level = 10 : i32, message = "bij,bjd->bid"}> : () -> ()
    %cst_27 = arith.constant dense<0.000000e+00> : vector<4x16x128xf32>
    %49 = tpu.matmul %3, %48, %cst_27 {dimension_numbers = #tpu.dot_dimension_numbers<[2], [1], [1], [2], [0, 0, 0, 1, 1, 2], [0], [0]>} : vector<4x16x16xf32>, vector<4x16x128xf32>, vector<4x16x128xf32> -> vector<4x16x128xf32>
    "tpu.trace_stop"() : () -> ()
    %50 = vector.shape_cast %49 : vector<4x16x128xf32> to vector<64x128xf32>
    %cst_28 = arith.constant dense<0.000000e+00> : vector<64x384xf32>
    %51 = tpu.matmul %50, %20, %cst_28 {dimension_numbers = #tpu.dot_dimension_numbers<[1], [0], [0], [1], [0, 0, 1, 1], [], []>} : vector<64x128xf32>, vector<128x384xf32>, vector<64x384xf32> -> vector<64x384xf32>
    %cst_29 = arith.constant dense<0.000000e+00> : vector<64x256xf32>
    %52 = tpu.matmul %47, %21, %cst_29 {dimension_numbers = #tpu.dot_dimension_numbers<[1], [0], [0], [1], [0, 0, 1, 1], [], []>} : vector<64x128xf32>, vector<128x256xf32>, vector<64x256xf32> -> vector<64x256xf32>
    %53 = arith.addf %52, %9 : vector<64x256xf32>
    %54 = vector.extract_strided_slice %51 {offsets = [0, 0], sizes = [64, 256], strides = [1, 1]} : vector<64x384xf32> to vector<64x256xf32>
    %55 = arith.addf %54, %53 : vector<64x256xf32>
    %56 = arith.negf %55 : vector<64x256xf32>
    %57 = math.exp %56 : vector<64x256xf32>
    %cst_30 = arith.constant 1.000000e+00 : f32
    %58 = vector.broadcast %cst_30 : f32 to vector<64x256xf32>
    %59 = arith.addf %58, %57 : vector<64x256xf32>
    %60 = arith.divf %58, %59 : vector<64x256xf32>
    %61 = vector.extract_strided_slice %60 {offsets = [0, 0], sizes = [64, 128], strides = [1, 1]} : vector<64x256xf32> to vector<64x128xf32>
    %62 = vector.extract_strided_slice %60 {offsets = [0, 128], sizes = [64, 128], strides = [1, 1]} : vector<64x256xf32> to vector<64x128xf32>
    %63 = vector.extract_strided_slice %51 {offsets = [0, 256], sizes = [64, 128], strides = [1, 1]} : vector<64x384xf32> to vector<64x128xf32>
    %64 = arith.mulf %62, %47 : vector<64x128xf32>
    %cst_31 = arith.constant dense<0.000000e+00> : vector<64x128xf32>
    %65 = tpu.matmul %64, %22, %cst_31 {dimension_numbers = #tpu.dot_dimension_numbers<[1], [0], [0], [1], [0, 0, 1, 1], [], []>} : vector<64x128xf32>, vector<128x128xf32>, vector<64x128xf32> -> vector<64x128xf32>
    %66 = arith.addf %63, %65 : vector<64x128xf32>
    %67 = arith.addf %66, %12 : vector<64x128xf32>
    %68 = arith.mulf %6, %67 : vector<64x128xf32>
    %69 = math.tanh %68 : vector<64x128xf32>
    %70 = arith.subf %69, %47 : vector<64x128xf32>
    %71 = arith.mulf %61, %70 : vector<64x128xf32>
    %72 = arith.addf %47, %71 : vector<64x128xf32>
    %c0_32 = arith.constant 0 : index
    %c0_33 = arith.constant 0 : index
    %73 = vector.load %arg11[%c0_32, %c0_33] : memref<128x256xf32, #tpu.memory_space<vmem>>, vector<128x256xf32>
    %cst_34 = arith.constant dense<0.000000e+00> : vector<64x256xf32>
    %74 = tpu.matmul %72, %73, %cst_34 {dimension_numbers = #tpu.dot_dimension_numbers<[1], [0], [0], [1], [0, 0, 1, 1], [], []>} : vector<64x128xf32>, vector<128x256xf32>, vector<64x256xf32> -> vector<64x256xf32>
    %c0_35 = arith.constant 0 : index
    %c0_36 = arith.constant 0 : index
    %75 = vector.load %arg12[%c0_35, %c0_36] : memref<1x256xf32, #tpu.memory_space<vmem>>, vector<1x256xf32>
    %76 = vector.broadcast %75 : vector<1x256xf32> to vector<64x256xf32>
    %77 = arith.addf %74, %76 : vector<64x256xf32>
    %78 = vector.extract_strided_slice %77 {offsets = [0, 0], sizes = [64, 128], strides = [1, 1]} : vector<64x256xf32> to vector<64x128xf32>
    %79 = math.tanh %78 : vector<64x128xf32>
    %80 = vector.extract_strided_slice %77 {offsets = [0, 128], sizes = [64, 128], strides = [1, 1]} : vector<64x256xf32> to vector<64x128xf32>
    %81 = arith.negf %80 : vector<64x128xf32>
    %82 = math.exp %81 : vector<64x128xf32>
    %cst_37 = arith.constant 1.000000e+00 : f32
    %83 = vector.broadcast %cst_37 : f32 to vector<64x128xf32>
    %84 = arith.addf %83, %82 : vector<64x128xf32>
    %85 = arith.divf %83, %84 : vector<64x128xf32>
    %86 = arith.mulf %6, %85 : vector<64x128xf32>
    %87 = arith.mulf %86, %79 : vector<64x128xf32>
    %88 = vector.shape_cast %87 : vector<64x128xf32> to vector<4x16x128xf32>
    %cst_38 = arith.constant dense<0.000000e+00> : vector<4x1xf32>
    %89 = vector.multi_reduction <add>, %2, %cst_38 [1] : vector<4x16x1xf32> to vector<4x1xf32>
    %cst_39 = arith.constant 1.000000e+00 : f32
    %90 = vector.broadcast %cst_39 : f32 to vector<4x1xf32>
    %91 = arith.maximumf %89, %90 : vector<4x1xf32>
    %cst_40 = arith.constant 1.000000e+00 : f32
    %92 = vector.broadcast %cst_40 : f32 to vector<4x16x1xf32>
    %93 = arith.subf %2, %92 : vector<4x16x1xf32>
    %cst_41 = arith.constant 1.000000e+09 : f32
    %94 = vector.broadcast %cst_41 : f32 to vector<4x16x1xf32>
    %95 = arith.mulf %93, %94 : vector<4x16x1xf32>
    %cst_42 = arith.constant dense<0.000000e+00> : vector<4x128xf32>
    %96 = vector.multi_reduction <add>, %88, %cst_42 [1] : vector<4x16x128xf32> to vector<4x128xf32>
    %97 = vector.broadcast %91 : vector<4x1xf32> to vector<4x128xf32>
    %98 = arith.divf %96, %97 : vector<4x128xf32>
    %99 = vector.broadcast %95 : vector<4x16x1xf32> to vector<4x16x128xf32>
    %100 = arith.addf %88, %99 : vector<4x16x128xf32>
    %cst_43 = arith.constant dense<0xFF800000> : vector<4x128xf32>
    %101 = vector.multi_reduction <maximumf>, %100, %cst_43 [1] : vector<4x16x128xf32> to vector<4x128xf32>
    %102 = arith.addf %98, %101 : vector<4x128xf32>
    %c0_44 = arith.constant 0 : index
    %c0_45 = arith.constant 0 : index
    %103 = vector.load %arg13[%c0_44, %c0_45] : memref<128x128xf32, #tpu.memory_space<vmem>>, vector<128x128xf32>
    %cst_46 = arith.constant dense<0.000000e+00> : vector<4x128xf32>
    %104 = tpu.matmul %102, %103, %cst_46 {dimension_numbers = #tpu.dot_dimension_numbers<[1], [0], [0], [1], [0, 0, 1, 1], [], []>} : vector<4x128xf32>, vector<128x128xf32>, vector<4x128xf32> -> vector<4x128xf32>
    %c0_47 = arith.constant 0 : index
    %c0_48 = arith.constant 0 : index
    %105 = vector.load %arg14[%c0_47, %c0_48] : memref<1x128xf32, #tpu.memory_space<vmem>>, vector<1x128xf32>
    %106 = vector.broadcast %105 : vector<1x128xf32> to vector<4x128xf32>
    %107 = arith.addf %104, %106 : vector<4x128xf32>
    %c0_49 = arith.constant 0 : index
    %c0_50 = arith.constant 0 : index
    %c0_51 = arith.constant 0 : index
    %108 = vector.load %arg15[%c0_49, %c0_50, %c0_51] : memref<1x4x128xf32, #tpu.memory_space<vmem>>, vector<1x4x128xf32>
    %109 = vector.shape_cast %108 : vector<1x4x128xf32> to vector<4x128xf32>
    %110 = vector.shape_cast %107 : vector<4x128xf32> to vector<1x4x128xf32>
    tpu.vector_store %arg15[%c0_49, %c0_50, %c0_51], %110 {strides = array<i32>} : memref<1x4x128xf32, #tpu.memory_space<vmem>>, vector<1x4x128xf32>,
    return
  }
  func.func @transform_0(%arg0: i32) -> (i32, i32, i32) {
    %c0_i32 = arith.constant 0 : i32
    %c0_i32_0 = arith.constant 0 : i32
    %c0_i32_1 = arith.constant 0 : i32
    return %arg0, %c0_i32, %c0_i32_0 : i32, i32, i32
  }
  func.func @transform_1(%arg0: i32) -> (i32, i32, i32) {
    %c0_i32 = arith.constant 0 : i32
    %c0_i32_0 = arith.constant 0 : i32
    %c0_i32_1 = arith.constant 0 : i32
    return %arg0, %c0_i32, %c0_i32_0 : i32, i32, i32
  }
  func.func @transform_2(%arg0: i32) -> (i32, i32, i32) {
    %c0_i32 = arith.constant 0 : i32
    %c0_i32_0 = arith.constant 0 : i32
    %c0_i32_1 = arith.constant 0 : i32
    return %arg0, %c0_i32, %c0_i32_0 : i32, i32, i32
  }
  func.func @transform_3(%arg0: i32) -> (i32, i32) {
    %c0_i32 = arith.constant 0 : i32
    %c0_i32_0 = arith.constant 0 : i32
    %c0_i32_1 = arith.constant 0 : i32
    return %c0_i32, %c0_i32_0 : i32, i32
  }
  func.func @transform_4(%arg0: i32) -> (i32, i32) {
    %c0_i32 = arith.constant 0 : i32
    %c0_i32_0 = arith.constant 0 : i32
    %c0_i32_1 = arith.constant 0 : i32
    return %c0_i32, %c0_i32_0 : i32, i32
  }
  func.func @transform_5(%arg0: i32) -> (i32, i32) {
    %c0_i32 = arith.constant 0 : i32
    %c0_i32_0 = arith.constant 0 : i32
    %c0_i32_1 = arith.constant 0 : i32
    return %c0_i32, %c0_i32_0 : i32, i32
  }
  func.func @transform_6(%arg0: i32) -> (i32, i32) {
    %c0_i32 = arith.constant 0 : i32
    %c0_i32_0 = arith.constant 0 : i32
    %c0_i32_1 = arith.constant 0 : i32
    return %c0_i32, %c0_i32_0 : i32, i32
  }
  func.func @transform_7(%arg0: i32) -> (i32, i32) {
    %c0_i32 = arith.constant 0 : i32
    %c0_i32_0 = arith.constant 0 : i32
    %c0_i32_1 = arith.constant 0 : i32
    return %c0_i32, %c0_i32_0 : i32, i32
  }
  func.func @transform_8(%arg0: i32) -> (i32, i32) {
    %c0_i32 = arith.constant 0 : i32
    %c0_i32_0 = arith.constant 0 : i32
    %c0_i32_1 = arith.constant 0 : i32
    return %c0_i32, %c0_i32_0 : i32, i32
  }
  func.func @transform_9(%arg0: i32) -> (i32, i32) {
    %c0_i32 = arith.constant 0 : i32
    %c0_i32_0 = arith.constant 0 : i32
    %c0_i32_1 = arith.constant 0 : i32
    return %c0_i32, %c0_i32_0 : i32, i32
  }
  func.func @transform_10(%arg0: i32) -> (i32, i32) {
    %c0_i32 = arith.constant 0 : i32
    %c0_i32_0 = arith.constant 0 : i32
    %c0_i32_1 = arith.constant 0 : i32
    return %c0_i32, %c0_i32_0 : i32, i32
  }
  func.func @transform_11(%arg0: i32) -> (i32, i32) {
    %c0_i32 = arith.constant 0 : i32
    %c0_i32_0 = arith.constant 0 : i32
    %c0_i32_1 = arith.constant 0 : i32
    return %c0_i32, %c0_i32_0 : i32, i32
  }
  func.func @transform_12(%arg0: i32) -> (i32, i32) {
    %c0_i32 = arith.constant 0 : i32
    %c0_i32_0 = arith.constant 0 : i32
    %c0_i32_1 = arith.constant 0 : i32
    return %c0_i32, %c0_i32_0 : i32, i32
  }
  func.func @transform_13(%arg0: i32) -> (i32, i32) {
    %c0_i32 = arith.constant 0 : i32
    %c0_i32_0 = arith.constant 0 : i32
    %c0_i32_1 = arith.constant 0 : i32
    return %c0_i32, %c0_i32_0 : i32, i32
  }
  func.func @transform_14(%arg0: i32) -> (i32, i32, i32) {
    %c0_i32 = arith.constant 0 : i32
    %c0_i32_0 = arith.constant 0 : i32
    %c0_i32_1 = arith.constant 0 : i32
    return %arg0, %c0_i32, %c0_i32_0 : i32, i32, i32
  }
}

</mosaic_0001>

<bundles_post_ra>
// kernel: tpu_custom_call.1
= control target key start
LH: loop header
LB: loop body
LE: loop exit
PB: predicated region body
PF: predicated region fallthrough
CT: control target
= control target key end

     0   :  { %19 = vsyncpa [#allocation3], 0  ;;  %s5188_s0 = inlined_call_operand.vmem [shape: f32[4,16,32], index: 0, kind: input, shape index: {}]   ;;  %s5189_s1 = inlined_call_operand.vmem [shape: f32[4,16,1], index: 1, kind: input, shape index: {}]   ;;  %s5190_s2 = inlined_call_operand.hbm [shape: f32[4,16,16], index: 2, kind: input, shape index: {}]   ;;  %s5191_s3 = inlined_call_operand.hbm [shape: f32[32,128], index: 3, kind: input, shape index: {}]   ;;  %s5192_s4 = inlined_call_operand.vmem [shape: f32[1,128], index: 4, kind: input, shape index: {}]   ;;  %s5193_s5 = inlined_call_operand.hbm [shape: f32[128,384], index: 5, kind: input, shape index: {}]   ;;  %s5194_s6 = inlined_call_operand.hbm [shape: f32[128,256], index: 6, kind: input, shape index: {}]   ;;  %s5195_s7 = inlined_call_operand.hbm [shape: f32[128,128], index: 7, kind: input, shape index: {}]   ;;  %s5196_s8 = inlined_call_operand.vmem [shape: f32[1,256], index: 8, kind: input, shape index: {}]   ;;  %s5197_s9 = inlined_call_operand.vmem [shape: f32[1,128], index: 9, kind: input, shape index: {}]   ;;  %s5198_s10 = inlined_call_operand.hbm [shape: f32[128,256], index: 10, kind: input, shape index: {}]   ;;  %s5199_s11 = inlined_call_operand.vmem [shape: f32[1,256], index: 11, kind: input, shape index: {}]   ;;  %s5200_s12 = inlined_call_operand.hbm [shape: f32[128,128], index: 12, kind: input, shape index: {}]   ;;  %s5201_s13 = inlined_call_operand.vmem [shape: f32[1,128], index: 13, kind: input, shape index: {}]   ;;  %s5202_s14 = inlined_call_operand.hbm [shape: f32[1,4,128], index: 14, kind: output, shape index: {}]  }
   0x1   :  { %20 = vsyncpa [#allocation6], 0 }
   0x2   :  { %21 = vsyncpa [#allocation9], 0 }
   0x3   :  { %22 = vsyncpa [#allocation12], 0 }
   0x4   :  { %23 = vsyncpa [#allocation4], 0  ;;  %s4262_s29 = smov [#allocation5]   ;;  %s4263_s15 = smov [#allocation8]  }
   0x5   :  { %s45_s30 = sshll.u32 %s4262_s29, 4  ;;  %s71_s16 = sshll.u32 %s4263_s15, 4  ;;  %s46_s30 = int_to_ptr.vmem [resolvable:$true] %s45_s30  ;;  %s4355_s16 = int_to_ptr.vmem [resolvable:$true] %s71_s16 }
   0x6   :  { %s4076_s19 = scalar_lea.hbm %s5191_s3, 512 }
   0x7   :  { %p4077_p0 = scmp.ne.s32.totalorder %s5191_s3, %s4076_s19  ;;  %p4080_p1 = scmp.lt.u32.totalorder %s4076_s19, %s5191_s3 }
   0x9   :  { %p4082_p2 = pnand %p4080_p1, %p4077_p0 }
   0xb   :  { %4085 = shalt.err (!%p4082_p2)
}
   0xc   :  { %s4086_s24 = scalar_lea.vmem %s46_s30, 512  ;;  %p4091_p4 = scmp.lt.s32.totalorder %s46_s30, %s46_s30 }
   0xd   :  { %p4087_p3 = scmp.ne.s32.totalorder %s46_s30, %s4086_s24  ;;  %p4092_p5 = scmp.lt.s32.totalorder %s4086_s24, %s4086_s24 }
   0xf   :  { %p4093_p6 = por %p4092_p5, %p4091_p4 }
  0x11   :  { %p4094_p7 = pnand %p4093_p6, %p4087_p3 }
  0x13   :  { %4097 = shalt.err (!%p4094_p7)
}
  0x14   :  { %s5203_s25 = smov 128   ;;  %s4265_s26 = smov 8  }
  0x15   :  { %51 = dma.hbm_to_vmem [thread:$0]  %s5191_s3, 512, %s46_s30, [#allocation6], %s5203_s25, %s5203_s25, %s4265_s26  }
  0x16   :  { %s4098_s17 = scalar_lea.hbm %s5194_s6, 4096 }
  0x17   :  { %p4099_p8 = scmp.ne.s32.totalorder %s5194_s6, %s4098_s17  ;;  %p4102_p9 = scmp.lt.u32.totalorder %s4098_s17, %s5194_s6 }
  0x19   :  { %p4104_p10 = pnand %p4102_p9, %p4099_p8 }
  0x1b   :  { %4107 = shalt.err (!%p4104_p10)
}
  0x1c   :  { %s4108_s22 = scalar_lea.vmem %s4355_s16, 4096  ;;  %p4113_p12 = scmp.lt.s32.totalorder %s4355_s16, %s4355_s16 }
  0x1d   :  { %p4109_p11 = scmp.ne.s32.totalorder %s4355_s16, %s4108_s22  ;;  %p4114_p13 = scmp.lt.s32.totalorder %s4108_s22, %s4108_s22 }
  0x1f   :  { %p4115_p0 = por %p4114_p13, %p4113_p12 }
  0x21   :  { %p4116_p1 = pnand %p4115_p0, %p4109_p11 }
  0x23   :  { %4119 = shalt.err (!%p4116_p1)
}
  0x24   :  { %s4266_s3 = smov 256   ;;  %s4267_s30 = smov 16  }
  0x25   :  { %77 = dma.hbm_to_vmem [thread:$0]  %s5194_s6, 4096, %s4355_s16, [#allocation9], %s4266_s3, %s4266_s3, %s4267_s30  }
  0x26   :  { %s4268_s27 = smov [#allocation11]   ;;  %s4269_s29 = smov [#allocation2]  }
  0x27   :  { %s99_s28 = sshll.u32 %s4268_s27, 4  ;;  %s33_s15 = sshll.u32 %s4269_s29, 4  ;;  %s100_s28 = int_to_ptr.vmem [resolvable:$true] %s99_s28  ;;  %s4389_s15 = int_to_ptr.vmem [resolvable:$true] %s33_s15 }
  0x28   :  { %s4120_s19 = scalar_lea.hbm %s5198_s10, 4096 }
  0x29   :  { %p4121_p2 = scmp.ne.s32.totalorder %s5198_s10, %s4120_s19  ;;  %p4124_p3 = scmp.lt.u32.totalorder %s4120_s19, %s5198_s10 }
  0x2b   :  { %p4126_p4 = pnand %p4124_p3, %p4121_p2 }
  0x2d   :  { %4129 = shalt.err (!%p4126_p4)
}
  0x2e   :  { %s4130_s6 = scalar_lea.vmem %s100_s28, 4096  ;;  %p4135_p6 = scmp.lt.s32.totalorder %s100_s28, %s100_s28 }
  0x2f   :  { %p4131_p5 = scmp.ne.s32.totalorder %s100_s28, %s4130_s6  ;;  %p4136_p7 = scmp.lt.s32.totalorder %s4130_s6, %s4130_s6 }
  0x31   :  { %p4137_p8 = por %p4136_p7, %p4135_p6 }
  0x33   :  { %p4138_p9 = pnand %p4137_p8, %p4131_p5 }
  0x35   :  { %4141 = shalt.err (!%p4138_p9)
}
  0x36   :  { %105 = dma.hbm_to_vmem [thread:$0]  %s5198_s10, 4096, %s100_s28, [#allocation12], %s4266_s3, %s4266_s3, %s4267_s30  }
  0x37   :  { %s4142_s29 = scalar_lea.hbm %s5190_s2, 1024 }
  0x38   :  { %p4143_p10 = scmp.ne.s32.totalorder %s5190_s2, %s4142_s29  ;;  %p4146_p11 = scmp.lt.u32.totalorder %s4142_s29, %s5190_s2 }
  0x3a   :  { %p4148_p12 = pnand %p4146_p11, %p4143_p10 }
  0x3c   :  { %4151 = shalt.err (!%p4148_p12)
}
  0x3d   :  { %s4152_s20 = scalar_lea.vmem %s4389_s15, 1024  ;;  %p4157_p0 = scmp.lt.s32.totalorder %s4389_s15, %s4389_s15 }
  0x3e   :  { %p4153_p13 = scmp.ne.s32.totalorder %s4389_s15, %s4152_s20  ;;  %p4158_p1 = scmp.lt.s32.totalorder %s4152_s20, %s4152_s20 }
  0x40   :  { %p4159_p2 = por %p4158_p1, %p4157_p0 }
  0x42   :  { %p4160_p3 = pnand %p4159_p2, %p4153_p13 }
  0x44   :  { %4163 = shalt.err (!%p4160_p3)
}
  0x45   :  { %s5232_s10 = smov 128   ;;  %s4270_s28 = smov [#allocation7]  }
  0x46   :  { %39 = dma.hbm_to_vmem [thread:$0]  %s5190_s2, 1024, %s4389_s15, [#allocation3], %s5232_s10, %s5232_s10, %s4265_s26  }
  0x47   :  { %s59_s21 = sshll.u32 %s4270_s28, 4  ;;  %s4164_s16 = scalar_lea.hbm %s5193_s5, 6144  ;;  %s60_s21 = int_to_ptr.vmem [resolvable:$true] %s59_s21 }
  0x48   :  { %p4165_p4 = scmp.ne.s32.totalorder %s5193_s5, %s4164_s16  ;;  %p4168_p5 = scmp.lt.u32.totalorder %s4164_s16, %s5193_s5 }
  0x4a   :  { %p4170_p6 = pnand %p4168_p5, %p4165_p4 }
  0x4c   :  { %4173 = shalt.err (!%p4170_p6)
}
  0x4d   :  { %s4174_s17 = scalar_lea.vmem %s60_s21, 6144  ;;  %p4179_p8 = scmp.lt.s32.totalorder %s60_s21, %s60_s21 }
  0x4e   :  { %p4175_p7 = scmp.ne.s32.totalorder %s60_s21, %s4174_s17  ;;  %p4180_p9 = scmp.lt.s32.totalorder %s4174_s17, %s4174_s17 }
  0x50   :  { %p4181_p10 = por %p4180_p9, %p4179_p8 }
  0x52   :  { %p4182_p11 = pnand %p4181_p10, %p4175_p7 }
  0x54   :  { %4185 = shalt.err (!%p4182_p11)
}
  0x55   :  { %s4271_s2 = smov 384   ;;  %s4272_s15 = smov 24  }
  0x56   :  { %65 = dma.hbm_to_vmem [thread:$0]  %s5193_s5, 6144, %s60_s21, [#allocation6], %s4271_s2, %s4271_s2, %s4272_s15  }
  0x57   :  { %s4273_s19 = smov [#allocation10]   ;;  %s4274_s3 = smov [#allocation13]  }
  0x58   :  { %s83_s20 = sshll.u32 %s4273_s19, 4  ;;  %s113_s30 = sshll.u32 %s4274_s3, 4  ;;  %s84_s20 = int_to_ptr.vmem [resolvable:$true] %s83_s20  ;;  %s114_s30 = int_to_ptr.vmem [resolvable:$true] %s113_s30 }
  0x59   :  { %s4186_s6 = scalar_lea.hbm %s5195_s7, 2048 }
  0x5a   :  { %p4187_p12 = scmp.ne.s32.totalorder %s5195_s7, %s4186_s6  ;;  %p4190_p13 = scmp.lt.u32.totalorder %s4186_s6, %s5195_s7 }
  0x5c   :  { %p4192_p0 = pnand %p4190_p13, %p4187_p12 }
  0x5e   :  { %4195 = shalt.err (!%p4192_p0)
}
  0x5f   :  { %s4196_s5 = scalar_lea.vmem %s84_s20, 2048  ;;  %p4201_p2 = scmp.lt.s32.totalorder %s84_s20, %s84_s20 }
  0x60   :  { %p4197_p1 = scmp.ne.s32.totalorder %s84_s20, %s4196_s5  ;;  %p4202_p3 = scmp.lt.s32.totalorder %s4196_s5, %s4196_s5 }
  0x62   :  { %p4203_p4 = por %p4202_p3, %p4201_p2 }
  0x64   :  { %p4204_p5 = pnand %p4203_p4, %p4197_p1 }
  0x66   :  { %4207 = shalt.err (!%p4204_p5)
}
  0x67   :  { %89 = dma.hbm_to_vmem [thread:$0]  %s5195_s7, 2048, %s84_s20, [#allocation9], %s5232_s10, %s5232_s10, %s4265_s26  }
  0x68   :  { %s4208_s15 = scalar_lea.hbm %s5200_s12, 2048 }
  0x69   :  { %p4209_p6 = scmp.ne.s32.totalorder %s5200_s12, %s4208_s15  ;;  %p4212_p7 = scmp.lt.u32.totalorder %s4208_s15, %s5200_s12 }
  0x6b   :  { %p4214_p8 = pnand %p4212_p7, %p4209_p6 }
  0x6d   :  { %4217 = shalt.err (!%p4214_p8)
}
  0x6e   :  { %s4218_s28 = scalar_lea.vmem %s114_s30, 2048  ;;  %p4223_p10 = scmp.lt.s32.totalorder %s114_s30, %s114_s30 }
  0x6f   :  { %p4219_p9 = scmp.ne.s32.totalorder %s114_s30, %s4218_s28  ;;  %p4224_p11 = scmp.lt.s32.totalorder %s4218_s28, %s4218_s28 }
  0x71   :  { %p4225_p12 = por %p4224_p11, %p4223_p10 }
  0x73   :  { %p4226_p13 = pnand %p4225_p12, %p4219_p9 }
  0x75   :  { %4229 = shalt.err (!%p4226_p13)
}
  0x76   :  { %119 = dma.hbm_to_vmem [thread:$0]  %s5200_s12, 2048, %s114_s30, [#allocation12], %s5232_s10, %s5232_s10, %s4265_s26  }
  0x77   :  { %4252 = dma.done.wait [#allocation3], 1024  }
  0x78   :  { %4253 = vsyncadd [#allocation3], 4294966272 }
  0x79   :  { %4254 = dma.done.wait [#allocation6], 6656  }
  0x7a   :  { %4255 = vsyncadd [#allocation6], 4294960640 }
  0x7b   :  { %4256 = dma.done.wait [#allocation9], 6144  }
  0x7c   :  { %4257 = vsyncadd [#allocation9], 4294961152 }
  0x7d   :  { %4258 = dma.done.wait [#allocation12], 6144  }
  0x7e   :  { %4259 = vsyncadd [#allocation12], 4294961152  ;;  %v4275_v0 = vmov 0   ;;  %vm237_vm0 = vcmask 261120   ;;  %v226_v1 = vld [vmem:[#allocation5] sm:$0xff]  ;;  %v227_v2 = vld [vmem:[#allocation5 + $0x8] sm:$0xff] }
  0x7f   :  { %3842 = vset.pattern.permute.xlu0 %v4275_v0  ;;  %3843 = vset.pattern.permute.xlu1 %v4275_v0  ;;  %v228_v3 = vld [vmem:[#allocation5 + $0x10] sm:$0xff]  ;;  %v3392_v4 = vpack.c.bf16 %v227_v2, %v226_v1  ;;  %v229_v5 = vld [vmem:[#allocation5 + $0x18] sm:$0xff]  ;;  %v143_v6 = vld [vmem:[%s5188_s0] sm:$0xff]  ;;  %vm2557_vm1 = vcmask 7168   ;;  %vm479_vm2 = vcmask 130048   ;;  %vm4278_vm3 = vmmov 0  }
  0x80   :  { %v3396_v7 = vpack.c.bf16 %v229_v5, %v228_v3  ;;  %3113 = vmatprep.mubr.msk.f32.mxu0 %vm237_vm0, %v143_v6  ;;  %v151_v8 = vld [vmem:[%s5189_s1] sm:$0xff]  ;;  %v152_v9 = vld [vmem:[%s5189_s1 + $0x8] sm:$0xff]  ;;  %v153_v10 = vld [vmem:[%s5189_s1 + $0x10] sm:$0xff]  ;;  %vm2777_vm4 = vcmask 1041409   ;;  %vm2779_vm5 = vcmask 1042434   ;;  %vm2781_vm6 = vcmask 1043459  }
  0x81   :  { %3393 = vmatprep.subr.bf16.mxu0 %v3392_v4  ;;  %169 = vperm.xlu0 %3842, %v151_v8   ;;  %v2558_v11 = vsel %vm2557_vm1, %v151_v8, 0.0  ;;  %v2559_v12 = vsel %vm2557_vm1, %v152_v9, 0.0  ;;  %v155_v13 = vld [vmem:[%s5189_s1 + $0x20] sm:$0xff]  ;;  %v2567_v15 = vsel %vm2557_vm1, %v153_v10, 0.0  ;;  %v154_v17 = vld [vmem:[%s5189_s1 + $0x18] sm:$0xff]  ;;  %v157_v18 = vld [vmem:[%s5189_s1 + $0x30] sm:$0xff] }
  0x82   :  { %3395 = vmatpush3.bf16.msra.mxu0 %v3392_v4  ;;  %v2560_v14 = vadd.f32 %v2559_v12, %v2558_v11  ;;  %179 = vperm.xlu1 %3843, %v153_v10   ;;  %v2576_v16 = vsel %vm2557_vm1, %v155_v13, 0.0  ;;  %v2568_v19 = vsel %vm2557_vm1, %v154_v17, 0.0  ;;  %v2585_v20 = vsel %vm2557_vm1, %v157_v18, 0.0  ;;  %v156_v21 = vld [vmem:[%s5189_s1 + $0x28] sm:$0xff]  ;;  %v158_v25 = vld [vmem:[%s5189_s1 + $0x38] sm:$0xff]  ;;  %v145_v26 = vld [vmem:[%s5188_s0 + $0x10] sm:$0xff] }
  0x83   :  { %3397 = vmatprep.subr.bf16.mxu0 %v3396_v7  ;;  %v144_v22 = vld [vmem:[%s5188_s0 + $0x8] sm:$0xff]  ;;  %v2569_v23 = vadd.f32 %v2568_v19, %v2567_v15  ;;  %v2577_v24 = vsel %vm2557_vm1, %v156_v21, 0.0  ;;  %v2586_v29 = vsel %vm2557_vm1, %v158_v25, 0.0  ;;  %v146_v32 = vld [vmem:[%s5188_s0 + $0x18] sm:$0xff]  ;;  %v147_v33 = vld [vmem:[%s5188_s0 + $0x20] sm:$0xff]  ;;  %v2939_v34 = vadd.f32 -1.0, %v151_v8 }
  0x84   :  { %v2561_v27 = vrot.slane %v2560_v14, 4  ;;  %v2578_v28 = vadd.f32 %v2577_v24, %v2576_v16  ;;  %v2587_v31 = vadd.f32 %v2586_v29, %v2585_v20  ;;  %v2940_v37 = vadd.f32 -1.0, %v152_v9  ;;  %v148_v40 = vld [vmem:[%s5188_s0 + $0x28] sm:$0xff]  ;;  %v149_v41 = vld [vmem:[%s5188_s0 + $0x30] sm:$0xff]  ;;  %v150_v50 = vld [vmem:[%s5188_s0 + $0x38] sm:$0xff]  ;;  %s4279_s17 = smov [#allocation14]  }
  0x85   :  { %174 = vperm.xlu0 %3842, %v152_v9   ;;  %v2570_v30 = vrot.slane %v2569_v23, 4  ;;  %v2941_v42 = vadd.f32 -1.0, %v153_v10  ;;  %v2606_v44 = vmul.f32 1e+09, %v2939_v34  ;;  %v2942_v46 = vadd.f32 -1.0, %v154_v17  ;;  %v4529_v15 = vld [vmem:[#allocation2] sm:$0xff] }
  0x86   :  { %3399 = vmatpush3.bf16.msra.mxu0 %v3396_v7  ;;  %184 = vperm.xlu1 %3843, %v154_v17   ;;  %v2562_v35 = vadd.f32 %v2561_v27, %v2560_v14  ;;  %v2579_v36 = vrot.slane %v2578_v28, 4  ;;  %v2588_v39 = vrot.slane %v2587_v31, 4  ;;  %v2607_v48 = vmul.f32 1e+09, %v2940_v37  ;;  %v384_v16 = vld [vmem:[#allocation7 + $0x8] sm:$0xff]  ;;  %v387_v17 = vld [vmem:[#allocation7 + $0x20] sm:$0xff] }
  0x87   :  { %v2571_v38 = vadd.f32 %v2570_v30, %v2569_v23  ;;  %v2943_v51 = vadd.f32 -1.0, %v155_v13  ;;  %v2608_v52 = vmul.f32 1e+09, %v2941_v42  ;;  %v2944_v55 = vadd.f32 -1.0, %v156_v21  ;;  %3129 = vmatprep.mubr.msk.f32.mxu1 %vm479_vm2, %v4529_v15  ;;  %v386_v20 = vld [vmem:[#allocation7 + $0x18] sm:$0xff]  ;;  %v393_v23 = vld [vmem:[#allocation7 + $0x50] sm:$0xff] }
  0x88   :  { %v2580_v43 = vadd.f32 %v2579_v36, %v2578_v28  ;;  %v2563_v45 = vrot.slane %v2562_v35, 2  ;;  %v2589_v47 = vadd.f32 %v2588_v39, %v2587_v31  ;;  %v2609_v56 = vmul.f32 1e+09, %v2942_v46  ;;  %v389_v24 = vld [vmem:[#allocation7 + $0x30] sm:$0xff]  ;;  %v396_v28 = vld [vmem:[#allocation7 + $0x68] sm:$0xff]  ;;  %v399_v29 = vld [vmem:[#allocation7 + $0x80] sm:$0xff] }
  0x89   :  { %3114 = vmatmul.mubr.msk.f32.vlgmr.msra.gmra.mrb[0].mxu0 %vm237_vm0, %v144_v22  ;;  %189 = vperm.xlu0 %3842, %v155_v13   ;;  %v2572_v49 = vrot.slane %v2571_v38, 2  ;;  %v2945_v59 = vadd.f32 -1.0, %v157_v18  ;;  %v2610_v60 = vmul.f32 1e+09, %v2943_v51  ;;  %v2946_v63 = vadd.f32 -1.0, %v158_v25  ;;  %v390_v22 = vld [vmem:[#allocation7 + $0x38] sm:$0xff] }
  0x8a   :  { %3116 = vmatprep.mubr.msk.f32.mxu0 %vm237_vm0, %v145_v26  ;;  %194 = vperm.xlu1 %3843, %v156_v21   ;;  %v2564_v53 = vadd.f32 %v2563_v45, %v2562_v35  ;;  %v2581_v54 = vrot.slane %v2580_v43, 2  ;;  %v2590_v58 = vrot.slane %v2589_v47, 2  ;;  %v2611_v0 = vmul.f32 1e+09, %v2944_v55  ;;  %v392_v26 = vld [vmem:[#allocation7 + $0x48] sm:$0xff]  ;;  %v395_v30 = vld [vmem:[#allocation7 + $0x60] sm:$0xff] }
  0x8b   :  { %v2573_v57 = vadd.f32 %v2572_v49, %v2571_v38  ;;  %v2612_v3 = vmul.f32 1e+09, %v2945_v59  ;;  %v2613_v6 = vmul.f32 1e+09, %v2946_v63  ;;  %v4533_v19 = vpack.c.bf16 %v387_v17, %v384_v16  ;;  %v402_v34 = vld [vmem:[#allocation7 + $0x98] sm:$0xff]  ;;  %v405_v35 = vld [vmem:[#allocation7 + $0xb0] sm:$0xff] }
  0x8c   :  { %v2565_v61 = vrot.slane %v2564_v53, 1  ;;  %v2582_v62 = vadd.f32 %v2581_v54, %v2580_v43  ;;  %v2591_v2 = vadd.f32 %v2590_v58, %v2589_v47  ;;  %v4541_v27 = vpack.c.bf16 %v392_v26, %v389_v24  ;;  %v401_v36 = vld [vmem:[#allocation7 + $0x90] sm:$0xff]  ;;  %v404_v38 = vld [vmem:[#allocation7 + $0xa8] sm:$0xff]  ;;  %v407_v42 = vld [vmem:[#allocation7 + $0xc0] sm:$0xff]  ;;  %s2861_s2 = sshll.u32 %s4279_s17, 4  ;;  %s2862_s2 = int_to_ptr.vmem [resolvable:$true] %s2861_s2 }
  0x8d   :  { %3117 = vmatmul.mubr.msk.f32.gmra.mrb[2].mxu0 %vm237_vm0, %v146_v32  ;;  %199 = vperm.xlu0 %3842, %v157_v18   ;;  %v2574_v1 = vrot.slane %v2573_v57, 1  ;;  %v383_v18 = vld [vmem:[#allocation7] sm:$0xff]  ;;  %v4544_v31 = vpack.c.bf16 %v399_v29, %v396_v28  ;;  %v398_v32 = vld [vmem:[#allocation7 + $0x78] sm:$0xff]  ;;  %v4550_v37 = vpack.c.bf16 %v405_v35, %v402_v34  ;;  %v4553_v39 = vpack.c.bf16 %v404_v38, %v401_v36  ;;  %v417_v47 = vld [vmem:[#allocation7 + $0x110] sm:$0xff]  ;;  %s4230_s15 = scalar_lea.vmem %s2862_s2, 64  ;;  %p4235_p1 = scmp.lt.s32.totalorder %s2862_s2, %s2862_s2 }
  0x8e   :  { %3119 = vmatprep.mubr.msk.f32.mxu0 %vm237_vm0, %v147_v33  ;;  %204 = vperm.xlu1 %3843, %v158_v25   ;;  %v2566_v4 = vadd.f32 %v2565_v61, %v2564_v53  ;;  %v2583_v5 = vrot.slane %v2582_v62, 1  ;;  %v2592_v8 = vrot.slane %v2591_v2, 1  ;;  %v4535_v21 = vpack.c.bf16 %v386_v20, %v383_v18  ;;  %v414_v46 = vld [vmem:[#allocation7 + $0xf8] sm:$0xff]  ;;  %v423_v53 = vld [vmem:[#allocation7 + $0x140] sm:$0xff]  ;;  %v429_v59 = vld [vmem:[#allocation7 + $0x170] sm:$0xff]  ;;  %p4231_p0 = scmp.ne.s32.totalorder %s2862_s2, %s4230_s15  ;;  %p4236_p2 = scmp.lt.s32.totalorder %s4230_s15, %s4230_s15 }
  0x8f   :  { %v2575_v7 = vadd.f32 %v2574_v1, %v2573_v57  ;;  %3417 = vmatprep.subr.bf16.mxu0 %v4533_v19  ;;  %v4538_v25 = vpack.c.bf16 %v393_v23, %v390_v22  ;;  %v4547_v33 = vpack.c.bf16 %v398_v32, %v395_v30  ;;  %v4562_v49 = vpack.c.bf16 %v417_v47, %v414_v46  ;;  %v419_v54 = vld [vmem:[#allocation7 + $0x120] sm:$0xff]  ;;  %v426_v58 = vld [vmem:[#allocation7 + $0x158] sm:$0xff]  ;;  %v4614_v46 = vld [vmem:[#allocation2 + $0x10] sm:$0xff] }
  0x90   :  { %v2594_v9 = vmax.f32 %v2566_v4, 1.0  ;;  %v2584_v10 = vadd.f32 %v2583_v5, %v2582_v62  ;;  %v2593_v12 = vadd.f32 %v2592_v8, %v2591_v2  ;;  %3419 = vmatpush1.bf16.msra.mxu0 %v4535_v21  ;;  %v4574_v61 = vpack.c.bf16 %v429_v59, %v426_v58  ;;  %v428_v62 = vld [vmem:[#allocation7 + $0x168] sm:$0xff]  ;;  %v4632_v58 = vld [vmem:[#allocation2 + $0x20] sm:$0xff]  ;;  %p4237_p3 = por %p4236_p2, %p4235_p1 }
  0x91   :  { %3120 = vmatmul.mubr.msk.f32.gmra.mrb[4].mxu0 %vm237_vm0, %v148_v40  ;;  %2672 = vperm.xlu0 %3842, %v2606_v44   ;;  %v2595_v11 = vmax.f32 %v2575_v7, 1.0  ;;  %v408_v40 = vld [vmem:[#allocation7 + $0xc8] sm:$0xff]  ;;  %v410_v44 = vld [vmem:[#allocation7 + $0xd8] sm:$0xff] }
  0x92   :  { %3122 = vmatprep.mubr.msk.f32.mxu0 %vm237_vm0, %v149_v41  ;;  %2677 = vperm.xlu1 %3843, %v2607_v48   ;;  %v2596_v13 = vmax.f32 %v2584_v10, 1.0  ;;  %v2597_v14 = vmax.f32 %v2593_v12, 1.0  ;;  %v411_v41 = vld [vmem:[#allocation7 + $0xe0] sm:$0xff]  ;;  %v4559_v45 = vpack.c.bf16 %v410_v44, %v407_v42  ;;  %v413_v48 = vld [vmem:[#allocation7 + $0xf0] sm:$0xff]  ;;  %p4238_p4 = pnand %p4237_p3, %p4231_p0 }
  0x93   :  { %3421 = vmatprep.subr.bf16.mxu0 %v4538_v25  ;;  %v4556_v43 = vpack.c.bf16 %v411_v41, %v408_v40  ;;  %v4610_v41 = vld [vmem:[#allocation2 + $0x8] sm:$0xff] }
  0x94   :  { %3423 = vmatpush1.bf16.msra.mxu0 %v4541_v27 }
  0x95   :  { %3123 = vmatmul.mubr.msk.f32.gmra.mrb[6].mxu0 %vm237_vm0, %v150_v50  ;;  %2682 = vperm.xlu0 %3842, %v2608_v52   ;;  %v416_v50 = vld [vmem:[#allocation7 + $0x108] sm:$0xff] }
  0x96   :  { %2687 = vperm.xlu1 %3843, %v2609_v56   ;;  %3425 = vmatprep.subr.bf16.mxu0 %v4544_v31  ;;  %v4565_v51 = vpack.c.bf16 %v416_v50, %v413_v48  ;;  %v420_v52 = vld [vmem:[#allocation7 + $0x128] sm:$0xff]  ;;  %v422_v56 = vld [vmem:[#allocation7 + $0x138] sm:$0xff] }
  0x97   :  { %v4568_v55 = vpack.c.bf16 %v423_v53, %v420_v52  ;;  %v4571_v57 = vpack.c.bf16 %v422_v56, %v419_v54  ;;  %v4626_v52 = vld [vmem:[#allocation2 + $0x18] sm:$0xff] }
  0x98   :  { %3427 = vmatpush1.bf16.msra.mxu0 %v4547_v33 }
  0x99   :  { %2692 = vperm.xlu0 %3842, %v2610_v60   ;;  %3429 = vmatprep.subr.bf16.mxu0 %v4550_v37  ;;  %v425_v60 = vld [vmem:[#allocation7 + $0x150] sm:$0xff] }
  0x9a   :  { %2697 = vperm.xlu1 %3843, %v2611_v0   ;;  %v4577_v63 = vpack.c.bf16 %v428_v62, %v425_v60  ;;  %v2874_v0 = vld [vmem:[%s5192_s4] ss:$0 sm:$0xff] }
  0x9c   :  { %3431 = vmatpush1.bf16.msra.mxu0 %v4553_v39 }
  0x9d   :  { %2702 = vperm.xlu0 %3842, %v2612_v3   ;;  %3433 = vmatprep.subr.bf16.mxu0 %v4556_v43 }
  0x9e   :  { %2707 = vperm.xlu1 %3843, %v2613_v6  }
  0xa0   :  { %3435 = vmatpush1.bf16.msra.mxu0 %v4559_v45 }
  0xa1   :  { %2644 = vperm.xlu0 %3842, %v2594_v9   ;;  %3437 = vmatprep.subr.bf16.mxu0 %v4562_v49 }
  0xa2   :  { %2649 = vperm.xlu1 %3843, %v2595_v11  }
  0xa4   :  { %3439 = vmatpush1.bf16.msra.mxu0 %v4565_v51 }
  0xa5   :  { %2654 = vperm.xlu0 %3842, %v2596_v13   ;;  %3441 = vmatprep.subr.bf16.mxu0 %v4568_v55 }
  0xa6   :  { %2659 = vperm.xlu1 %3843, %v2597_v14  }
  0xa8   :  { %3443 = vmatpush1.bf16.msra.mxu0 %v4571_v57 }
  0xa9   :  { %3445 = vmatprep.subr.bf16.mxu0 %v4574_v61 }
  0xac   :  { %3447 = vmatpush1.bf16.msra.mxu0 %v4577_v63 }
 0x100   :  { %v4584_v8 = vpop.permute.xlu0 %169 }
 0x101   :  { %v4586_v10 = vpop.permute.xlu1 %179 }
 0x104   :  { %v4588_v16 = vpop.permute.xlu0 %174 }
 0x105   :  { %v4590_v20 = vpop.permute.xlu1 %184 }
 0x108   :  { %v4608_v40 = vpop.permute.xlu0 %189 }
 0x109   :  { %v4603_v36 = vpop.permute.xlu1 %194 }
 0x10c   :  { %v4634_v60 = vpop.permute.xlu0 %199 }
 0x10d   :  { %v4628_v54 = vpop.permute.xlu1 %204 }
 0x15c   :  { %v3115_v1 = vpop.f32.mrb[0].mxu0 }
 0x15d   :  { %v334_v2 = vadd.f32 %v3115_v1, %v2874_v0  ;;  %v328_v3 = vpop.f32.mrb[1].mxu0  ;;  %v388_v1 = vld [vmem:[#allocation7 + $0x28] sm:$0xff] }
 0x15e   :  { %v329_v4 = vadd.f32 %v2874_v0, %v328_v3  ;;  %v4646_v3 = vld [vmem:[#allocation2 + $0x28] sm:$0xff] }
 0x15f   :  { %3844 = vtanh.f32 %v334_v2 }
 0x160   :  { %3846 = vtanh.f32 %v329_v4  ;;  %v3118_v5 = vpop.f32.mrb[2].mxu0 }
 0x161   :  { %v344_v6 = vadd.f32 %v3118_v5, %v2874_v0  ;;  %v338_v7 = vpop.f32.mrb[3].mxu0  ;;  %v4650_v5 = vld [vmem:[#allocation2 + $0x30] sm:$0xff] }
 0x162   :  { %v339_v9 = vadd.f32 %v2874_v0, %v338_v7  ;;  %v391_v7 = vld [vmem:[#allocation7 + $0x40] sm:$0xff] }
 0x163   :  { %3848 = vtanh.f32 %v344_v6 }
 0x164   :  { %3850 = vtanh.f32 %v339_v9  ;;  %v3121_v11 = vpop.f32.mrb[4].mxu0  ;;  %v394_v9 = vld [vmem:[#allocation7 + $0x58] sm:$0xff] }
 0x165   :  { %v354_v12 = vadd.f32 %v3121_v11, %v2874_v0  ;;  %v348_v13 = vpop.f32.mrb[5].mxu0  ;;  %v4658_v11 = vld [vmem:[#allocation2 + $0x38] sm:$0xff] }
 0x166   :  { %v349_v14 = vadd.f32 %v2874_v0, %v348_v13  ;;  %v397_v13 = vld [vmem:[#allocation7 + $0x70] sm:$0xff] }
 0x167   :  { %3852 = vtanh.f32 %v354_v12  ;;  %v4661_v12 = vpack.c.bf16 %v394_v9, %v391_v7  ;;  %v5221_v9 = vmov 0.0  }
 0x168   :  { %3854 = vtanh.f32 %v349_v14  ;;  %v3124_v17 = vpop.f32.mrb[6].mxu0  ;;  %v400_v14 = vld [vmem:[#allocation7 + $0x88] sm:$0xff]  ;;  %868 = vmatprep.mubr.f32.mxu0 %v5221_v9 }
 0x169   :  { %v3845_v18 = vpop.eup %3844  ;;  %v364_v22 = vadd.f32 %v3124_v17, %v2874_v0  ;;  %v358_v23 = vpop.f32.mrb[7].mxu0  ;;  %v4667_v17 = vpack.c.bf16 %v400_v14, %v397_v13  ;;  %v431_v13 = vld [vmem:[#allocation8] sm:$0xff]  ;;  %v433_v14 = vld [vmem:[#allocation8 + $0x10] sm:$0xff] }
 0x16a   :  { %v3847_v24 = vpop.eup %3846  ;;  %v4593_v26 = vmul.f32 %v3845_v18, %v4588_v16  ;;  %v359_v28 = vadd.f32 %v2874_v0, %v358_v23  ;;  %v385_v0 = vld [vmem:[#allocation7 + $0x10] sm:$0xff]  ;;  %v403_v18 = vld [vmem:[#allocation7 + $0xa0] sm:$0xff] }
 0x16b   :  { %v4596_v29 = vmul.f32 %v3847_v24, %v4584_v8  ;;  %3856 = vtanh.f32 %v364_v22  ;;  %v4652_v6 = vpack.c.bf16 %v388_v1, %v385_v0  ;;  %v406_v22 = vld [vmem:[#allocation7 + $0xb8] sm:$0xff]  ;;  %v409_v24 = vld [vmem:[#allocation7 + $0xd0] sm:$0xff]  ;;  %v432_v1 = vld [vmem:[#allocation8 + $0x8] sm:$0xff] }
 0x16c   :  { %3858 = vtanh.f32 %v359_v28  ;;  %v4671_v23 = vpack.c.bf16 %v406_v22, %v403_v18  ;;  %v412_v28 = vld [vmem:[#allocation7 + $0xe8] sm:$0xff]  ;;  %v438_v22 = vld [vmem:[#allocation8 + $0x38] sm:$0xff] }
 0x16d   :  { %v3849_v30 = vpop.eup %3848  ;;  %v3400_v32 = vpack.c.bf16 %v4593_v26, %v4596_v29  ;;  %v436_v18 = vld [vmem:[#allocation8 + $0x28] sm:$0xff] }
 0x16e   :  { %v3851_v34 = vpop.eup %3850  ;;  %v4601_v35 = vmul.f32 %v3849_v30, %v4590_v20  ;;  %v4675_v30 = vpack.c.bf16 %v412_v28, %v409_v24  ;;  %v4696_v24 = vpack.c.bf16 %v433_v14, %v431_v13  ;;  %v439_v14 = vld [vmem:[#allocation8 + $0x40] sm:$0xff] }
 0x16f   :  { %v4606_v38 = vmul.f32 %v3851_v34, %v4586_v10  ;;  %3401 = vmatprep.subr.bf16.mxu1 %v3400_v32  ;;  %v418_v34 = vld [vmem:[#allocation7 + $0x118] sm:$0xff] }
 0x170   :  { %3403 = vmatpush3.bf16.msra.mxu1 %v3400_v32  ;;  %5233 = vst [vmem:[#allocation20_spill] sm:$0xff] %v4675_v30  ;;  %v415_v32 = vld [vmem:[#allocation7 + $0x100] sm:$0xff]  ;;  %5237 = vst [vmem:[#allocation24_spill] sm:$0xff] %v4696_v24 }
 0x171   :  { %v3853_v42 = vpop.eup %3852  ;;  %v3404_v44 = vpack.c.bf16 %v4601_v35, %v4606_v38 }
 0x172   :  { %v3855_v47 = vpop.eup %3854  ;;  %v4617_v48 = vmul.f32 %v3853_v42, %v4603_v36  ;;  %v4679_v42 = vpack.c.bf16 %v418_v34, %v415_v32  ;;  %v4698_v32 = vpack.c.bf16 %v438_v22, %v436_v18  ;;  %v435_v34 = vld [vmem:[#allocation8 + $0x20] sm:$0xff]  ;;  %v441_v18 = vld [vmem:[#allocation8 + $0x50] sm:$0xff] }
 0x173   :  { %v4620_v50 = vmul.f32 %v3855_v47, %v4608_v40  ;;  %3130 = vmatmul.mubr.msk.f32.vlgmr.msra.gmra.mrb[0].mxu1 %vm479_vm2, %v4610_v41  ;;  %3405 = vmatprep.subr.bf16.mxu1 %v3404_v44  ;;  %v424_v47 = vld [vmem:[#allocation7 + $0x148] sm:$0xff] }
 0x174   :  { %3407 = vmatpush3.bf16.msra.mxu1 %v3404_v44  ;;  %3136 = vmatprep.mubr.msk.f32.mxu1 %vm479_vm2, %v4614_v46  ;;  %5234 = vst [vmem:[#allocation21_spill] sm:$0xff] %v4679_v42  ;;  %v421_v44 = vld [vmem:[#allocation7 + $0x130] sm:$0xff]  ;;  %5238 = vst [vmem:[#allocation25_spill] sm:$0xff] %v4698_v32 }
 0x175   :  { %v3857_v53 = vpop.eup %3856  ;;  %v3408_v56 = vpack.c.bf16 %v4617_v48, %v4620_v50 }
 0x176   :  { %v3859_v59 = vpop.eup %3858  ;;  %v4637_v62 = vmul.f32 %v3857_v53, %v4628_v54  ;;  %v4683_v53 = vpack.c.bf16 %v424_v47, %v421_v44  ;;  %v437_v44 = vld [vmem:[#allocation8 + $0x30] sm:$0xff] }
 0x177   :  { %v4640_v2 = vmul.f32 %v3859_v59, %v4634_v60  ;;  %3409 = vmatprep.subr.bf16.mxu1 %v3408_v56  ;;  %3137 = vmatmul.mubr.msk.f32.vlgmr.msra.gmra.mrb[2].mxu1 %vm479_vm2, %v4626_v52  ;;  %v430_v59 = vld [vmem:[#allocation7 + $0x178] sm:$0xff] }
 0x178   :  { %3411 = vmatpush3.bf16.msra.mxu1 %v3408_v56  ;;  %3143 = vmatprep.mubr.msk.f32.mxu1 %vm479_vm2, %v4632_v58  ;;  %5235 = vst [vmem:[#allocation22_spill] sm:$0xff] %v4683_v53  ;;  %v427_v56 = vld [vmem:[#allocation7 + $0x160] sm:$0xff] }
 0x179   :  { %v3412_v4 = vpack.c.bf16 %v4637_v62, %v4640_v2  ;;  %v4687_v0 = vpack.c.bf16 %v430_v59, %v427_v56  ;;  %v440_v56 = vld [vmem:[#allocation8 + $0x48] sm:$0xff]  ;;  %v442_v59 = vld [vmem:[#allocation8 + $0x58] sm:$0xff] }
 0x17a   :  { %v4705_v13 = vpack.c.bf16 %v442_v59, %v440_v56  ;;  %v443_v56 = vld [vmem:[#allocation8 + $0x60] sm:$0xff]  ;;  %v445_v59 = vld [vmem:[#allocation8 + $0x70] sm:$0xff] }
 0x17b   :  { %3413 = vmatprep.subr.bf16.mxu1 %v3412_v4  ;;  %3144 = vmatmul.mubr.msk.f32.vlgmr.msra.gmra.mrb[4].mxu1 %vm479_vm2, %v4646_v3  ;;  %5236 = vst [vmem:[#allocation23_spill] sm:$0xff] %v4687_v0 }
 0x17c   :  { %3415 = vmatpush3.bf16.msra.mxu1 %v3412_v4  ;;  %3150 = vmatprep.mubr.msk.f32.mxu1 %vm479_vm2, %v4650_v5  ;;  %v434_v4 = vld [vmem:[#allocation8 + $0x18] sm:$0xff]  ;;  %5240 = vst [vmem:[#allocation27_spill] sm:$0xff] %v4705_v13 }
 0x17d   :  { %3449 = vmatprep.subr.bf16.mxu1 %v4652_v6  ;;  %v4692_v7 = vpack.c.bf16 %v434_v4, %v432_v1  ;;  %v4701_v1 = vpack.c.bf16 %v437_v44, %v435_v34  ;;  %v4709_v34 = vpack.c.bf16 %v441_v18, %v439_v14 }
 0x17f   :  { %3151 = vmatmul.mubr.msk.f32.vlgmr.msra.gmra.mrb[6].mxu1 %vm479_vm2, %v4658_v11  ;;  %3481 = vmatprep.subr.bf16.mxu0 %v4692_v7  ;;  %5239 = vst [vmem:[#allocation26_spill] sm:$0xff] %v4701_v1 }
 0x180   :  { %3451 = vmatpush3.bf16.msra.mxu1 %v4652_v6 }
 0x181   :  { %3453 = vmatprep.subr.bf16.mxu1 %v4661_v12 }
 0x184   :  { %3455 = vmatpush3.bf16.msra.mxu1 %v4661_v12 }
 0x185   :  { %3457 = vmatprep.subr.bf16.mxu1 %v4667_v17 }
 0x188   :  { %3459 = vmatpush3.bf16.msra.mxu1 %v4667_v17 }
 0x189   :  { %3461 = vmatprep.subr.bf16.mxu1 %v4671_v23 }
 0x18c   :  { %3463 = vmatpush3.bf16.msra.mxu1 %v4671_v23 }
 0x18d   :  { %3465 = vmatprep.subr.bf16.mxu1 %v4675_v30 }
 0x190   :  { %3467 = vmatpush3.bf16.msra.mxu1 %v4675_v30 }
 0x191   :  { %3469 = vmatprep.subr.bf16.mxu1 %v4679_v42 }
 0x194   :  { %3471 = vmatpush3.bf16.msra.mxu1 %v4679_v42  ;;  %v450_v42 = vld [vmem:[#allocation8 + $0x98] sm:$0xff] }
 0x195   :  { %3473 = vmatprep.subr.bf16.mxu1 %v4683_v53 }
 0x198   :  { %3475 = vmatpush3.bf16.msra.mxu1 %v4683_v53  ;;  %v446_v53 = vld [vmem:[#allocation8 + $0x78] sm:$0xff] }
 0x199   :  { %3477 = vmatprep.subr.bf16.mxu1 %v4687_v0 }
 0x19c   :  { %3479 = vmatpush3.bf16.msra.mxu1 %v4687_v0  ;;  %v444_v0 = vld [vmem:[#allocation8 + $0x68] sm:$0xff] }
 0x246   :  { %v3131_v28 = vpop.f32.mrb[0].mxu1 }
 0x247   :  { %v552_v47 = vpop.f32.mrb[1].mxu1 }
 0x248   :  { %869 = vmatmul.mubr.f32.vlgmr.msra.gmra.mrb[8].mxu0 %v552_v47  ;;  %3185 = vmatprep.mubr.f32.mxu1 %v552_v47  ;;  %v4712_v47 = vpack.c.bf16 %v446_v53, %v444_v0  ;;  %v447_v53 = vld [vmem:[#allocation8 + $0x80] sm:$0xff]  ;;  %v449_v0 = vld [vmem:[#allocation8 + $0x90] sm:$0xff] }
 0x249   :  { %3186 = vmatmul.mubr.f32.vlgmr.msra.gmra.mrb[8].mxu1 %v3131_v28  ;;  %3483 = vmatpush1.bf16.msra.mxu0 %v4696_v24  ;;  %v448_v24 = vld [vmem:[#allocation8 + $0x88] sm:$0xff] }
 0x24a   :  { %874 = vmatprep.mubr.f32.mxu0 %v5221_v9  ;;  %v3138_v4 = vpop.f32.mrb[2].mxu1  ;;  %3485 = vmatprep.subr.bf16.mxu0 %v4698_v32  ;;  %5241 = vst [vmem:[#allocation28_spill] sm:$0xff] %v4712_v47  ;;  %v4719_v14 = vpack.c.bf16 %v450_v42, %v448_v24  ;;  %v451_v42 = vld [vmem:[#allocation8 + $0xa0] sm:$0xff]  ;;  %v453_v24 = vld [vmem:[#allocation8 + $0xb0] sm:$0xff] }
 0x24b   :  { %v633_v22 = vpop.f32.mrb[3].mxu1 }
 0x24c   :  { %875 = vmatmul.mubr.f32.gmra.mrb[10].mxu0 %v3131_v28  ;;  %3188 = vmatprep.mubr.f32.mxu1 %v633_v22  ;;  %v4716_v28 = vpack.c.bf16 %v445_v59, %v443_v56  ;;  %5242 = vst [vmem:[#allocation29_spill] sm:$0xff] %v4719_v14  ;;  %v456_v59 = vld [vmem:[#allocation8 + $0xc8] sm:$0xff] }
 0x24d   :  { %3487 = vmatpush1.bf16.msra.mxu0 %v4701_v1  ;;  %880 = vmatprep.mubr.f32.mxu0 %v5221_v9  ;;  %v454_v1 = vld [vmem:[#allocation8 + $0xb8] sm:$0xff] }
 0x24e   :  { %3189 = vmatmul.mubr.f32.gmra.mrb[10].mxu1 %v3138_v4  ;;  %3489 = vmatprep.subr.bf16.mxu0 %v4705_v13  ;;  %v3145_v44 = vpop.f32.mrb[4].mxu1  ;;  %v452_v13 = vld [vmem:[#allocation8 + $0xa8] sm:$0xff] }
 0x24f   :  { %v714_v32 = vpop.f32.mrb[5].mxu1  ;;  %v4726_v56 = vpack.c.bf16 %v454_v1, %v452_v13  ;;  %v460_v1 = vld [vmem:[#allocation8 + $0xe8] sm:$0xff]  ;;  %v462_v13 = vld [vmem:[#allocation8 + $0xf8] sm:$0xff] }
 0x250   :  { %881 = vmatmul.mubr.f32.gmra.mrb[12].mxu0 %v633_v22  ;;  %3191 = vmatprep.mubr.f32.mxu1 %v714_v32  ;;  %v4723_v22 = vpack.c.bf16 %v449_v0, %v447_v53  ;;  %v455_v0 = vld [vmem:[#allocation8 + $0xc0] sm:$0xff] }
 0x251   :  { %3491 = vmatpush1.bf16.msra.mxu0 %v4709_v34  ;;  %886 = vmatprep.mubr.f32.mxu0 %v5221_v9 }
 0x252   :  { %3493 = vmatprep.subr.bf16.mxu0 %v4712_v47  ;;  %3192 = vmatmul.mubr.f32.gmra.mrb[12].mxu1 %v3145_v44  ;;  %v3152_v18 = vpop.f32.mrb[6].mxu1  ;;  %5243 = vst [vmem:[#allocation30_spill] sm:$0xff] %v4723_v22  ;;  %v458_v47 = vld [vmem:[#allocation8 + $0xd8] sm:$0xff] }
 0x253   :  { %v795_v30 = vpop.f32.mrb[7].mxu1  ;;  %v4733_v53 = vpack.c.bf16 %v458_v47, %v456_v59  ;;  %v477_v59 = vld [vmem:[#allocation10 + $0x70] sm:$0xff] }
 0x254   :  { %887 = vmatmul.mubr.f32.gmra.mrb[14].mxu0 %v3138_v4  ;;  %3194 = vmatprep.mubr.f32.mxu1 %v795_v30  ;;  %v4730_v4 = vpack.c.bf16 %v453_v24, %v451_v42  ;;  %v459_v42 = vld [vmem:[#allocation8 + $0xe0] sm:$0xff]  ;;  %v461_v24 = vld [vmem:[#allocation8 + $0xf0] sm:$0xff] }
 0x255   :  { %3495 = vmatpush1.bf16.msra.mxu0 %v4716_v28  ;;  %892 = vmatprep.mubr.f32.mxu0 %v5221_v9  ;;  %v4744_v47 = vpack.c.bf16 %v461_v24, %v459_v42 }
 0x256   :  { %3497 = vmatprep.subr.bf16.mxu0 %v4719_v14  ;;  %3195 = vmatmul.mubr.f32.gmra.mrb[14].mxu1 %v3152_v18  ;;  %v457_v14 = vld [vmem:[#allocation8 + $0xd0] sm:$0xff] }
 0x257   :  { %5246 = vst [vmem:[#allocation33_spill] sm:$0xff] %v4744_v47 }
 0x258   :  { %893 = vmatmul.mubr.f32.gmra.mrb[16].mxu0 %v714_v32  ;;  %v4737_v32 = vpack.c.bf16 %v457_v14, %v455_v0  ;;  %v476_v14 = vld [vmem:[#allocation10 + $0x68] sm:$0xff]  ;;  %v478_v0 = vld [vmem:[#allocation10 + $0x78] sm:$0xff] }
 0x259   :  { %3499 = vmatpush1.bf16.msra.mxu0 %v4723_v22  ;;  %898 = vmatprep.mubr.f32.mxu0 %v5221_v9  ;;  %v4740_v22 = vpack.c.bf16 %v462_v13, %v460_v1  ;;  %v4810_v1 = vpack.c.bf16 %v478_v0, %v477_v59  ;;  %v209_v13 = vlaneseq }
 0x25a   :  { %3501 = vmatprep.subr.bf16.mxu0 %v4726_v56  ;;  %5244 = vst [vmem:[#allocation31_spill] sm:$0xff] %v4737_v32 }
 0x25b   :  { %5245 = vst [vmem:[#allocation32_spill] sm:$0xff] %v4740_v22  ;;  %5249 = vst [vmem:[#allocation36_spill] sm:$0xff] %v4810_v1  ;;  %v4814_v42 = vshrl.u32 %v209_v13, 7 }
 0x25c   :  { %899 = vmatmul.mubr.f32.gmra.mrb[18].mxu0 %v3145_v44  ;;  %v475_v44 = vld [vmem:[#allocation10 + $0x60] sm:$0xff] }
 0x25d   :  { %3503 = vmatpush1.bf16.msra.mxu0 %v4730_v4  ;;  %904 = vmatprep.mubr.f32.mxu0 %v5221_v9  ;;  %v5220_v24 = vsub.s32 1, %v4814_v42 }
 0x25e   :  { %3505 = vmatprep.subr.bf16.mxu0 %v4733_v53 }
 0x260   :  { %905 = vmatmul.mubr.f32.gmra.mrb[20].mxu0 %v795_v30  ;;  %v474_v30 = vld [vmem:[#allocation10 + $0x58] sm:$0xff] }
 0x261   :  { %3507 = vmatpush1.bf16.msra.mxu0 %v4737_v32  ;;  %910 = vmatprep.mubr.f32.mxu0 %v5221_v9 }
 0x262   :  { %3509 = vmatprep.subr.bf16.mxu0 %v4740_v22 }
 0x264   :  { %911 = vmatmul.mubr.f32.gmra.mrb[22].mxu0 %v3152_v18  ;;  %v4806_v18 = vpack.c.bf16 %v476_v14, %v475_v44 }
 0x265   :  { %3511 = vmatpush1.bf16.msra.mxu0 %v4744_v47  ;;  %1086 = vmatprep.mubr.f32.mxu0 %v5221_v9 }
 0x266   :  { %3561 = vmatprep.subr.bf16.mxu0 %v4533_v19  ;;  %v463_v19 = vld [vmem:[#allocation10] sm:$0xff]  ;;  %5248 = vst [vmem:[#allocation35_spill] sm:$0xff] %v4806_v18 }
 0x268   :  { %1087 = vmatmul.mubr.f32.vlgmr.msra.gmra.mrb[8].mxu0 %v4596_v29 }
 0x269   :  { %1092 = vmatprep.mubr.f32.mxu0 %v5221_v9  ;;  %3563 = vmatpush1.bf16.msra.mxu0 %v4535_v21  ;;  %v464_v21 = vld [vmem:[#allocation10 + $0x8] sm:$0xff] }
 0x26a   :  { %3565 = vmatprep.subr.bf16.mxu0 %v4538_v25  ;;  %v4782_v25 = vpack.c.bf16 %v464_v21, %v463_v19  ;;  %v4820_v19 = vld [vmem:[%s5196_s8] sm:$0x3] }
 0x26b   :  { %v4825_v21 = vrot.slane %v4820_v19, %v5220_v24 }
 0x26c   :  { %1093 = vmatmul.mubr.f32.gmra.mrb[10].mxu0 %v4593_v26  ;;  %3513 = vmatprep.subr.bf16.mxu1 %v4782_v25 }
 0x26d   :  { %1098 = vmatprep.mubr.f32.mxu0 %v5221_v9  ;;  %3567 = vmatpush1.bf16.msra.mxu0 %v4541_v27  ;;  %v465_v27 = vld [vmem:[#allocation10 + $0x10] sm:$0xff] }
 0x26e   :  { %3569 = vmatprep.subr.bf16.mxu0 %v4544_v31  ;;  %3515 = vmatpush3.bf16.msra.mxu1 %v4782_v25  ;;  %v466_v31 = vld [vmem:[#allocation10 + $0x18] sm:$0xff] }
 0x270   :  { %1099 = vmatmul.mubr.f32.gmra.mrb[12].mxu0 %v4606_v38 }
 0x271   :  { %1104 = vmatprep.mubr.f32.mxu0 %v5221_v9  ;;  %3571 = vmatpush1.bf16.msra.mxu0 %v4547_v33  ;;  %v4786_v33 = vpack.c.bf16 %v466_v31, %v465_v27 }
 0x272   :  { %3573 = vmatprep.subr.bf16.mxu0 %v4550_v37  ;;  %v467_v37 = vld [vmem:[#allocation10 + $0x20] sm:$0xff] }
 0x273   :  { %3517 = vmatprep.subr.bf16.mxu1 %v4786_v33 }
 0x274   :  { %1105 = vmatmul.mubr.f32.gmra.mrb[14].mxu0 %v4601_v35  ;;  %3519 = vmatpush3.bf16.msra.mxu1 %v4786_v33 }
 0x275   :  { %1110 = vmatprep.mubr.f32.mxu0 %v5221_v9  ;;  %3575 = vmatpush1.bf16.msra.mxu0 %v4553_v39  ;;  %v468_v39 = vld [vmem:[#allocation10 + $0x28] sm:$0xff] }
 0x276   :  { %3577 = vmatprep.subr.bf16.mxu0 %v4556_v43  ;;  %v4790_v43 = vpack.c.bf16 %v468_v39, %v467_v37 }
 0x278   :  { %1111 = vmatmul.mubr.f32.gmra.mrb[16].mxu0 %v4620_v50  ;;  %3521 = vmatprep.subr.bf16.mxu1 %v4790_v43 }
 0x279   :  { %1116 = vmatprep.mubr.f32.mxu0 %v5221_v9  ;;  %3579 = vmatpush1.bf16.msra.mxu0 %v4559_v45  ;;  %v469_v45 = vld [vmem:[#allocation10 + $0x30] sm:$0xff] }
 0x27a   :  { %3581 = vmatprep.subr.bf16.mxu0 %v4562_v49  ;;  %3523 = vmatpush3.bf16.msra.mxu1 %v4790_v43  ;;  %v470_v49 = vld [vmem:[#allocation10 + $0x38] sm:$0xff] }
 0x27c   :  { %1117 = vmatmul.mubr.f32.gmra.mrb[18].mxu0 %v4617_v48 }
 0x27d   :  { %1122 = vmatprep.mubr.f32.mxu0 %v5221_v9  ;;  %3583 = vmatpush1.bf16.msra.mxu0 %v4565_v51  ;;  %v4794_v51 = vpack.c.bf16 %v470_v49, %v469_v45 }
 0x27e   :  { %3585 = vmatprep.subr.bf16.mxu0 %v4568_v55  ;;  %v471_v55 = vld [vmem:[#allocation10 + $0x40] sm:$0xff] }
 0x27f   :  { %3525 = vmatprep.subr.bf16.mxu1 %v4794_v51 }
 0x280   :  { %1123 = vmatmul.mubr.f32.gmra.mrb[20].mxu0 %v4640_v2  ;;  %3527 = vmatpush3.bf16.msra.mxu1 %v4794_v51 }
 0x281   :  { %1128 = vmatprep.mubr.f32.mxu0 %v5221_v9  ;;  %3587 = vmatpush1.bf16.msra.mxu0 %v4571_v57  ;;  %v472_v57 = vld [vmem:[#allocation10 + $0x48] sm:$0xff] }
 0x282   :  { %3589 = vmatprep.subr.bf16.mxu0 %v4574_v61  ;;  %v4798_v61 = vpack.c.bf16 %v472_v57, %v471_v55 }
 0x284   :  { %1129 = vmatmul.mubr.f32.gmra.mrb[22].mxu0 %v4637_v62  ;;  %3529 = vmatprep.subr.bf16.mxu1 %v4798_v61 }
 0x285   :  { %3591 = vmatpush1.bf16.msra.mxu0 %v4577_v63  ;;  %1780 = vmatprep.mubr.f32.mxu0 %v5221_v9  ;;  %v473_v63 = vld [vmem:[#allocation10 + $0x50] sm:$0xff] }
 0x286   :  { %3625 = vmatprep.subr.bf16.mxu0 %v4692_v7  ;;  %3531 = vmatpush3.bf16.msra.mxu1 %v4798_v61  ;;  %v4802_v7 = vpack.c.bf16 %v474_v30, %v473_v63 }
 0x288   :  { %5247 = vst [vmem:[#allocation34_spill] sm:$0xff] %v4802_v7  ;;  %3533 = vmatprep.subr.bf16.mxu1 %v4802_v7 }
 0x28a   :  { %3535 = vmatpush3.bf16.msra.mxu1 %v4802_v7 }
 0x28b   :  { %3537 = vmatprep.subr.bf16.mxu1 %v4806_v18 }
 0x28e   :  { %3539 = vmatpush3.bf16.msra.mxu1 %v4806_v18 }
 0x28f   :  { %3541 = vmatprep.subr.bf16.mxu1 %v4810_v1 }
 0x292   :  { %3543 = vmatpush3.bf16.msra.mxu1 %v4810_v1 }
 0x33b   :  { %v4827_v27 = vpop.f32.mrb[8].mxu0 }
 0x33c   :  { %v1090_v31 = vpop.f32.mrb[9].mxu0 }
 0x33d   :  { %v1091_v37 = vadd.f32 %v1090_v31, %v4825_v21 }
 0x33f   :  { %v2892_v39 = vmul.f32 -1.442695, %v1091_v37  ;;  %v4830_v45 = vpop.f32.mrb[10].mxu0 }
 0x340   :  { %v1096_v49 = vpop.f32.mrb[11].mxu0 }
 0x341   :  { %3860 = vpow2.f32 %v2892_v39  ;;  %v1097_v55 = vadd.f32 %v1096_v49, %v4825_v21 }
 0x343   :  { %v2894_v57 = vmul.f32 -1.442695, %v1097_v55  ;;  %v4833_v63 = vpop.f32.mrb[12].mxu0 }
 0x344   :  { %v1102_v30 = vpop.f32.mrb[13].mxu0 }
 0x345   :  { %3862 = vpow2.f32 %v2894_v57  ;;  %v1103_v44 = vadd.f32 %v1102_v30, %v4825_v21 }
 0x347   :  { %v2896_v14 = vmul.f32 -1.442695, %v1103_v44  ;;  %v4836_v59 = vpop.f32.mrb[14].mxu0 }
 0x348   :  { %v1108_v0 = vpop.f32.mrb[15].mxu0 }
 0x349   :  { %3864 = vpow2.f32 %v2896_v14  ;;  %v1109_v13 = vadd.f32 %v1108_v0, %v4825_v21 }
 0x34b   :  { %v3861_v31 = vpop.eup %3860  ;;  %v2898_v37 = vmul.f32 -1.442695, %v1109_v13  ;;  %v4839_v24 = vpop.f32.mrb[16].mxu0 }
 0x34c   :  { %v1200_v39 = vadd.f32 1.0, %v3861_v31  ;;  %v1114_v49 = vpop.f32.mrb[17].mxu0 }
 0x34d   :  { %v1115_v55 = vadd.f32 %v1114_v49, %v4825_v21 }
 0x34e   :  { %3866 = vrcp.f32 %v1200_v39 }
 0x34f   :  { %v3863_v9 = vpop.eup %3862  ;;  %3868 = vpow2.f32 %v2898_v37  ;;  %v2900_v57 = vmul.f32 -1.442695, %v1115_v55  ;;  %v4842_v30 = vpop.f32.mrb[18].mxu0 }
 0x350   :  { %v1202_v44 = vadd.f32 1.0, %v3863_v9  ;;  %v1120_v1 = vpop.f32.mrb[19].mxu0 }
 0x351   :  { %v1121_v14 = vadd.f32 %v1120_v1, %v4825_v21 }
 0x352   :  { %3870 = vrcp.f32 %v1202_v44 }
 0x353   :  { %v3865_v0 = vpop.eup %3864  ;;  %3872 = vpow2.f32 %v2900_v57  ;;  %v2902_v13 = vmul.f32 -1.442695, %v1121_v14  ;;  %v4845_v47 = vpop.f32.mrb[20].mxu0 }
 0x354   :  { %v1204_v31 = vadd.f32 1.0, %v3865_v0  ;;  %v1126_v18 = vpop.f32.mrb[21].mxu0 }
 0x355   :  { %v1127_v49 = vadd.f32 %v1126_v18, %v4825_v21 }
 0x356   :  { %3874 = vrcp.f32 %v1204_v31 }
 0x357   :  { %3876 = vpow2.f32 %v2902_v13  ;;  %v2904_v37 = vmul.f32 -1.442695, %v1127_v49  ;;  %v4848_v39 = vpop.f32.mrb[22].mxu0 }
 0x358   :  { %v3867_v55 = vpop.eup %3866  ;;  %v1132_v9 = vpop.f32.mrb[23].mxu0 }
 0x359   :  { %v3869_v22 = vpop.eup %3868  ;;  %v1133_v1 = vadd.f32 %v1132_v9, %v4825_v21  ;;  %v1247_v44 = vmul.f32 %v3867_v55, %v4596_v29  ;;  %3878 = vpow2.f32 %v2904_v37 }
 0x35a   :  { %v1206_v57 = vadd.f32 1.0, %v3869_v22 }
 0x35b   :  { %v2906_v14 = vmul.f32 -1.442695, %v1133_v1  ;;  %3229 = vmatprep.mubr.f32.mxu1 %v1247_v44 }
 0x35c   :  { %v3871_v0 = vpop.eup %3870  ;;  %3880 = vrcp.f32 %v1206_v57 }
 0x35d   :  { %v3873_v32 = vpop.eup %3872  ;;  %v1248_v18 = vmul.f32 %v3871_v0, %v4593_v26  ;;  %3882 = vpow2.f32 %v2906_v14 }
 0x35e   :  { %v1208_v13 = vadd.f32 1.0, %v3873_v32 }
 0x35f   :  { %3230 = vmatmul.mubr.f32.vlgmr.msra.gmra.mrb[8].mxu1 %v1248_v18 }
 0x360   :  { %v3875_v31 = vpop.eup %3874  ;;  %3884 = vrcp.f32 %v1208_v13 }
 0x361   :  { %v3877_v49 = vpop.eup %3876  ;;  %v1249_v7 = vmul.f32 %v3875_v31, %v4606_v38 }
 0x362   :  { %v1210_v9 = vadd.f32 1.0, %v3877_v49 }
 0x363   :  { %3232 = vmatprep.mubr.f32.mxu1 %v1249_v7  ;;  %v3879_v55 = vpop.eup %3878 }
 0x364   :  { %3886 = vrcp.f32 %v1210_v9  ;;  %v1212_v22 = vadd.f32 1.0, %v3879_v55  ;;  %v211_v9 = vsub.s32 0, %v4814_v42 }
 0x366   :  { %v3881_v37 = vpop.eup %3880  ;;  %3888 = vrcp.f32 %v1212_v22  ;;  %v4865_v55 = vrot.slane %v4820_v19, %v211_v9 }
 0x367   :  { %v1250_v1 = vmul.f32 %v3881_v37, %v4601_v35  ;;  %v3883_v44 = vpop.eup %3882 }
 0x368   :  { %v1214_v32 = vadd.f32 1.0, %v3883_v44  ;;  %v1089_v22 = vadd.f32 %v4827_v27, %v4865_v55  ;;  %v1095_v37 = vadd.f32 %v4830_v45, %v4865_v55  ;;  %v4878_v27 = vld [vmem:[%s5197_s9] ss:$0 sm:$0xff] }
 0x369   :  { %3233 = vmatmul.mubr.f32.gmra.mrb[10].mxu1 %v1250_v1 }
 0x36a   :  { %v3885_v57 = vpop.eup %3884  ;;  %3890 = vrcp.f32 %v1214_v32  ;;  %v2891_v1 = vmul.f32 -1.442695, %v1089_v22  ;;  %v2893_v44 = vmul.f32 -1.442695, %v1095_v37 }
 0x36b   :  { %v1251_v14 = vmul.f32 %v3885_v57, %v4620_v50  ;;  %v1101_v57 = vadd.f32 %v4833_v63, %v4865_v55 }
 0x36c   :  { %3892 = vpow2.f32 %v2891_v1 }
 0x36d   :  { %3235 = vmatprep.mubr.f32.mxu1 %v1251_v14  ;;  %3894 = vpow2.f32 %v2893_v44  ;;  %v2895_v19 = vmul.f32 -1.442695, %v1101_v57 }
 0x36e   :  { %v3887_v0 = vpop.eup %3886 }
 0x36f   :  { %v1252_v18 = vmul.f32 %v3887_v0, %v4617_v48 }
 0x370   :  { %v3889_v13 = vpop.eup %3888 }
 0x371   :  { %3236 = vmatmul.mubr.f32.gmra.mrb[12].mxu1 %v1252_v18  ;;  %v1253_v7 = vmul.f32 %v3889_v13, %v4640_v2  ;;  %v1119_v18 = vadd.f32 %v4842_v30, %v4865_v55  ;;  %v1125_v30 = vadd.f32 %v4845_v47, %v4865_v55 }
 0x373   :  { %3238 = vmatprep.mubr.f32.mxu1 %v1253_v7  ;;  %v2901_v37 = vmul.f32 -1.442695, %v1119_v18 }
 0x374   :  { %v3891_v31 = vpop.eup %3890 }
 0x375   :  { %v1254_v49 = vmul.f32 %v3891_v31, %v4637_v62 }
 0x376   :  { %v3893_v14 = vpop.eup %3892 }
 0x377   :  { %3239 = vmatmul.mubr.f32.gmra.mrb[14].mxu1 %v1254_v49  ;;  %v3895_v0 = vpop.eup %3894  ;;  %v1199_v45 = vadd.f32 1.0, %v3893_v14 }
 0x378   :  { %3245 = vmatprep.mubr.msk.f32.mxu1 %vm479_vm2, %v4529_v15  ;;  %v1107_v15 = vadd.f32 %v4836_v59, %v4865_v55  ;;  %v1113_v59 = vadd.f32 %v4839_v24, %v4865_v55  ;;  %v1201_v49 = vadd.f32 1.0, %v3895_v0  ;;  %v1131_v24 = vadd.f32 %v4848_v39, %v4865_v55 }
 0x37a   :  { %v2897_v32 = vmul.f32 -1.442695, %v1107_v15  ;;  %v2899_v44 = vmul.f32 -1.442695, %v1113_v59  ;;  %v2903_v15 = vmul.f32 -1.442695, %v1125_v30 }
 0x37c   :  { %3896 = vpow2.f32 %v2897_v32  ;;  %v2905_v32 = vmul.f32 -1.442695, %v1131_v24 }
 0x37d   :  { %3898 = vpow2.f32 %v2895_v19 }
 0x37e   :  { %3900 = vrcp.f32 %v1199_v45 }
 0x386   :  { %v3897_v57 = vpop.eup %3896 }
 0x387   :  { %v3899_v19 = vpop.eup %3898 }
 0x388   :  { %v3901_v59 = vpop.eup %3900  ;;  %v1203_v39 = vadd.f32 1.0, %v3899_v19 }
 0x432   :  { %v3231_v13 = vpop.f32.mrb[8].mxu1 }
 0x433   :  { %v1369_v63 = vadd.f32 %v3231_v13, %v4878_v27  ;;  %v1321_v7 = vpop.f32.mrb[9].mxu1  ;;  %v1205_v13 = vadd.f32 1.0, %v3897_v57 }
 0x434   :  { %v1368_v31 = vadd.f32 %v4878_v27, %v1321_v7 }
 0x435   :  { %v1377_v22 = vmul.f32 %v1369_v63, %v4588_v16 }
 0x436   :  { %v1376_v1 = vmul.f32 %v1368_v31, %v4584_v8 }
 0x437   :  { %3902 = vtanh.f32 %v1377_v22 }
 0x438   :  { %3904 = vtanh.f32 %v1376_v1 }
 0x439   :  { %3906 = vrcp.f32 %v1201_v49 }
 0x43a   :  { %3908 = vpow2.f32 %v2901_v37 }
 0x43b   :  { %3910 = vpow2.f32 %v2899_v44 }
 0x43c   :  { %v3234_v14 = vpop.f32.mrb[10].mxu1  ;;  %3912 = vpow2.f32 %v2903_v15 }
 0x43d   :  { %v1371_v0 = vadd.f32 %v3234_v14, %v4878_v27  ;;  %v1331_v45 = vpop.f32.mrb[11].mxu1  ;;  %3914 = vpow2.f32 %v2905_v32 }
 0x43e   :  { %v1370_v18 = vadd.f32 %v4878_v27, %v1331_v45 }
 0x43f   :  { %v1379_v47 = vmul.f32 %v1371_v0, %v4590_v20 }
 0x440   :  { %v1378_v63 = vmul.f32 %v1370_v18, %v4586_v10 }
 0x441   :  { %v3903_v7 = vpop.eup %3902  ;;  %3916 = vtanh.f32 %v1379_v47 }
 0x442   :  { %v3905_v31 = vpop.eup %3904  ;;  %v1393_v49 = vsub.f32 %v3903_v7, %v4593_v26  ;;  %3918 = vtanh.f32 %v1378_v63 }
 0x443   :  { %v3907_v22 = vpop.eup %3906  ;;  %3920 = vrcp.f32 %v1205_v13  ;;  %v1392_v37 = vsub.f32 %v3905_v31, %v4596_v29 }
 0x444   :  { %v3909_v1 = vpop.eup %3908  ;;  %3922 = vrcp.f32 %v1203_v39  ;;  %v1401_v44 = vmul.f32 %v3907_v22, %v1393_v49  ;;  %v3237_v30 = vpop.f32.mrb[12].mxu1 }
 0x445   :  { %v3911_v24 = vpop.eup %3910  ;;  %v1400_v15 = vmul.f32 %v3901_v59, %v1392_v37  ;;  %v1373_v57 = vadd.f32 %v3237_v30, %v4878_v27  ;;  %v1341_v32 = vpop.f32.mrb[13].mxu1  ;;  %v1209_v0 = vadd.f32 1.0, %v3909_v1 }
 0x446   :  { %v1372_v14 = vadd.f32 %v4878_v27, %v1341_v32  ;;  %v4901_v19 = vadd.f32 %v1401_v44, %v4593_v26  ;;  %v1207_v13 = vadd.f32 1.0, %v3911_v24  ;;  %v3913_v39 = vpop.eup %3912 }
 0x447   :  { %v1381_v45 = vmul.f32 %v1373_v57, %v4603_v36  ;;  %v4905_v18 = vadd.f32 %v1400_v15, %v4596_v29  ;;  %v3915_v63 = vpop.eup %3914 }
 0x448   :  { %v1380_v47 = vmul.f32 %v1372_v14, %v4608_v40  ;;  %v1213_v15 = vadd.f32 1.0, %v3915_v63  ;;  %v1211_v14 = vadd.f32 1.0, %v3913_v39 }
 0x449   :  { %3924 = vtanh.f32 %v1381_v45  ;;  %v3544_v59 = vpack.c.bf16 %v4901_v19, %v4905_v18 }
 0x44a   :  { %3926 = vtanh.f32 %v1380_v47  ;;  %v3240_v49 = vpop.f32.mrb[14].mxu1 }
 0x44b   :  { %v3917_v7 = vpop.eup %3916  ;;  %3928 = vrcp.f32 %v1209_v0  ;;  %3545 = vmatprep.subr.bf16.mxu1 %v3544_v59  ;;  %v1375_v37 = vadd.f32 %v3240_v49, %v4878_v27  ;;  %v1351_v1 = vpop.f32.mrb[15].mxu1 }
 0x44c   :  { %v3919_v26 = vpop.eup %3918  ;;  %3930 = vrcp.f32 %v1207_v13  ;;  %v1395_v31 = vsub.f32 %v3917_v7, %v4601_v35  ;;  %3547 = vmatpush3.bf16.msra.mxu1 %v3544_v59  ;;  %v1374_v24 = vadd.f32 %v4878_v27, %v1351_v1 }
 0x44d   :  { %v3921_v29 = vpop.eup %3920  ;;  %v1394_v22 = vsub.f32 %v3919_v26, %v4606_v38  ;;  %v1383_v32 = vmul.f32 %v1375_v37, %v4628_v54 }
 0x44e   :  { %v3923_v44 = vpop.eup %3922  ;;  %v1403_v30 = vmul.f32 %v3921_v29, %v1395_v31  ;;  %v1382_v0 = vmul.f32 %v1374_v24, %v4634_v60 }
 0x44f   :  { %v1402_v57 = vmul.f32 %v3923_v44, %v1394_v22  ;;  %3246 = vmatmul.mubr.msk.f32.vlgmr.msra.gmra.mrb[16].mxu1 %vm479_vm2, %v4610_v41  ;;  %3932 = vtanh.f32 %v1383_v32 }
 0x450   :  { %v4919_v45 = vadd.f32 %v1403_v30, %v4601_v35  ;;  %3252 = vmatprep.mubr.msk.f32.mxu1 %vm479_vm2, %v4614_v46  ;;  %3934 = vtanh.f32 %v1382_v0  ;;  %v5259_v0 = vld [vmem:[#allocation28_spill] sm:$0xff] }
 0x451   :  { %v4924_v13 = vadd.f32 %v1402_v57, %v4606_v38  ;;  %3936 = vrcp.f32 %v1213_v15  ;;  %v5257_v15 = vld [vmem:[#allocation26_spill] sm:$0xff]  ;;  %v5258_v57 = vld [vmem:[#allocation27_spill] sm:$0xff] }
 0x452   :  { %3938 = vrcp.f32 %v1211_v14 }
 0x453   :  { %v3925_v47 = vpop.eup %3924  ;;  %v3548_v59 = vpack.c.bf16 %v4919_v45, %v4924_v13 }
 0x454   :  { %v3927_v41 = vpop.eup %3926  ;;  %v1397_v39 = vsub.f32 %v3925_v47, %v4617_v48  ;;  %v5261_v47 = vld [vmem:[#allocation30_spill] sm:$0xff] }
 0x455   :  { %v3929_v63 = vpop.eup %3928  ;;  %v1396_v35 = vsub.f32 %v3927_v41, %v4620_v50  ;;  %3549 = vmatprep.subr.bf16.mxu1 %v3548_v59  ;;  %v2329_v41 = vld [vmem:[#allocation11 + $0x8] sm:$0xff] }
 0x456   :  { %v3931_v7 = vpop.eup %3930  ;;  %v1405_v46 = vmul.f32 %v3929_v63, %v1397_v39  ;;  %3551 = vmatpush3.bf16.msra.mxu1 %v3548_v59  ;;  %v5264_v59 = vld [vmem:[#allocation32_spill] sm:$0xff]  ;;  %v2331_v39 = vld [vmem:[#allocation11 + $0x18] sm:$0xff] }
 0x457   :  { %v1404_v26 = vmul.f32 %v3931_v7, %v1396_v35  ;;  %v2328_v63 = vld [vmem:[#allocation11] sm:$0xff]  ;;  %v3688_v35 = vpack.c.bf16 %v2331_v39, %v2329_v41  ;;  %v2330_v7 = vld [vmem:[#allocation11 + $0x10] sm:$0xff] }
 0x458   :  { %v4931_v38 = vadd.f32 %v1405_v46, %v4617_v48  ;;  %v2333_v46 = vld [vmem:[#allocation11 + $0x28] sm:$0xff] }
 0x459   :  { %3253 = vmatmul.mubr.msk.f32.vlgmr.msra.gmra.mrb[18].mxu1 %vm479_vm2, %v4626_v52  ;;  %v4936_v31 = vadd.f32 %v1404_v26, %v4620_v50  ;;  %v3933_v49 = vpop.eup %3932  ;;  %v2335_v26 = vld [vmem:[#allocation11 + $0x38] sm:$0xff] }
 0x45a   :  { %3259 = vmatprep.mubr.msk.f32.mxu1 %vm479_vm2, %v4632_v58  ;;  %v3935_v22 = vpop.eup %3934  ;;  %v1399_v37 = vsub.f32 %v3933_v49, %v4637_v62  ;;  %v3690_v49 = vpack.c.bf16 %v2330_v7, %v2328_v63 }
 0x45b   :  { %v3552_v29 = vpack.c.bf16 %v4931_v38, %v4936_v31  ;;  %v3937_v1 = vpop.eup %3936  ;;  %v1398_v48 = vsub.f32 %v3935_v22, %v4640_v2  ;;  %v2332_v22 = vld [vmem:[#allocation11 + $0x20] sm:$0xff] }
 0x45c   :  { %v3939_v44 = vpop.eup %3938  ;;  %v1407_v30 = vmul.f32 %v3937_v1, %v1399_v37  ;;  %v2334_v37 = vld [vmem:[#allocation11 + $0x30] sm:$0xff]  ;;  %v2337_v1 = vld [vmem:[#allocation11 + $0x48] sm:$0xff] }
 0x45d   :  { %3553 = vmatprep.subr.bf16.mxu1 %v3552_v29  ;;  %v1406_v52 = vmul.f32 %v3939_v44, %v1398_v48  ;;  %v2339_v48 = vld [vmem:[#allocation11 + $0x58] sm:$0xff]  ;;  %v3694_v44 = vpack.c.bf16 %v2334_v37, %v2332_v22 }
 0x45e   :  { %3555 = vmatpush3.bf16.msra.mxu1 %v3552_v29  ;;  %v4945_v50 = vadd.f32 %v1407_v30, %v4637_v62  ;;  %v5250_v62 = vld [vmem:[#allocation20_spill] sm:$0xff]  ;;  %v3692_v29 = vpack.c.bf16 %v2335_v26, %v2333_v46  ;;  %v3696_v30 = vpack.c.bf16 %v2339_v48, %v2337_v1 }
 0x45f   :  { %v4950_v58 = vadd.f32 %v1406_v52, %v4640_v2  ;;  %v5251_v2 = vld [vmem:[#allocation21_spill] sm:$0xff] }
 0x461   :  { %3260 = vmatmul.mubr.msk.f32.vlgmr.msra.gmra.mrb[20].mxu1 %vm479_vm2, %v4646_v3  ;;  %v3556_v24 = vpack.c.bf16 %v4945_v50, %v4950_v58  ;;  %v5252_v3 = vld [vmem:[#allocation22_spill] sm:$0xff] }
 0x462   :  { %3266 = vmatprep.mubr.msk.f32.mxu1 %vm479_vm2, %v4650_v5  ;;  %v5253_v5 = vld [vmem:[#allocation23_spill] sm:$0xff] }
 0x463   :  { %3557 = vmatprep.subr.bf16.mxu1 %v3556_v24 }
 0x464   :  { %3559 = vmatpush3.bf16.msra.mxu1 %v3556_v24 }
 0x465   :  { %3593 = vmatprep.subr.bf16.mxu1 %v4652_v6 }
 0x467   :  { %3267 = vmatmul.mubr.msk.f32.vlgmr.msra.gmra.mrb[22].mxu1 %vm479_vm2, %v4658_v11 }
 0x468   :  { %3595 = vmatpush3.bf16.msra.mxu1 %v4652_v6 }
 0x469   :  { %3597 = vmatprep.subr.bf16.mxu1 %v4661_v12 }
 0x46c   :  { %3599 = vmatpush3.bf16.msra.mxu1 %v4661_v12  ;;  %v5254_v12 = vld [vmem:[#allocation24_spill] sm:$0xff] }
 0x46d   :  { %3601 = vmatprep.subr.bf16.mxu1 %v4667_v17 }
 0x470   :  { %3603 = vmatpush3.bf16.msra.mxu1 %v4667_v17  ;;  %v5255_v17 = vmov 0.0  }
 0x471   :  { %3605 = vmatprep.subr.bf16.mxu1 %v4671_v23 }
 0x474   :  { %3607 = vmatpush3.bf16.msra.mxu1 %v4671_v23  ;;  %v5256_v23 = vld [vmem:[#allocation25_spill] sm:$0xff] }
 0x475   :  { %3609 = vmatprep.subr.bf16.mxu1 %v5250_v62 }
 0x478   :  { %3611 = vmatpush3.bf16.msra.mxu1 %v5250_v62 }
 0x479   :  { %3613 = vmatprep.subr.bf16.mxu1 %v5251_v2 }
 0x47c   :  { %3615 = vmatpush3.bf16.msra.mxu1 %v5251_v2 }
 0x47d   :  { %3617 = vmatprep.subr.bf16.mxu1 %v5252_v3 }
 0x480   :  { %3619 = vmatpush3.bf16.msra.mxu1 %v5252_v3 }
 0x481   :  { %3621 = vmatprep.subr.bf16.mxu1 %v5253_v5 }
 0x484   :  { %3623 = vmatpush3.bf16.msra.mxu1 %v5253_v5 }
 0x485   :  { %3657 = vmatprep.subr.bf16.mxu1 %v4782_v25 }
 0x522   :  { %v3247_v6 = vpop.f32.mrb[16].mxu1 }
 0x523   :  { %v1482_v11 = vpop.f32.mrb[17].mxu1 }
 0x524   :  { %1781 = vmatmul.mubr.f32.vlgmr.msra.gmra.mrb[24].mxu0 %v1482_v11  ;;  %3301 = vmatprep.mubr.f32.mxu1 %v1482_v11 }
 0x525   :  { %3627 = vmatpush1.bf16.msra.mxu0 %v5254_v12  ;;  %1786 = vmatprep.mubr.f32.mxu0 %v5255_v17 }
 0x526   :  { %3629 = vmatprep.subr.bf16.mxu0 %v5256_v23  ;;  %3302 = vmatmul.mubr.f32.vlgmr.msra.gmra.mrb[24].mxu1 %v3247_v6 }
 0x527   :  { %3659 = vmatpush3.bf16.msra.mxu1 %v4782_v25  ;;  %v5260_v25 = vld [vmem:[#allocation29_spill] sm:$0xff] }
 0x528   :  { %1787 = vmatmul.mubr.f32.gmra.mrb[26].mxu0 %v3247_v6  ;;  %3661 = vmatprep.subr.bf16.mxu1 %v4786_v33 }
 0x529   :  { %3631 = vmatpush1.bf16.msra.mxu0 %v5257_v15  ;;  %1792 = vmatprep.mubr.f32.mxu0 %v5255_v17 }
 0x52a   :  { %3633 = vmatprep.subr.bf16.mxu0 %v5258_v57 }
 0x52b   :  { %3663 = vmatpush3.bf16.msra.mxu1 %v4786_v33 }
 0x52c   :  { %v3254_v32 = vpop.f32.mrb[18].mxu1  ;;  %3665 = vmatprep.subr.bf16.mxu1 %v4790_v43 }
 0x52d   :  { %v1557_v14 = vpop.f32.mrb[19].mxu1  ;;  %3635 = vmatpush1.bf16.msra.mxu0 %v4709_v34 }
 0x52e   :  { %1793 = vmatmul.mubr.f32.gmra.mrb[28].mxu0 %v1557_v14  ;;  %3637 = vmatprep.subr.bf16.mxu0 %v5259_v0 }
 0x52f   :  { %1798 = vmatprep.mubr.f32.mxu0 %v5255_v17  ;;  %3304 = vmatprep.mubr.f32.mxu1 %v1557_v14 }
 0x530   :  { %3305 = vmatmul.mubr.f32.gmra.mrb[26].mxu1 %v3254_v32 }
 0x531   :  { %3639 = vmatpush1.bf16.msra.mxu0 %v4716_v28  ;;  %3667 = vmatpush3.bf16.msra.mxu1 %v4790_v43  ;;  %v5262_v28 = vld [vmem:[#allocation34_spill] sm:$0xff] }
 0x532   :  { %1799 = vmatmul.mubr.f32.gmra.mrb[30].mxu0 %v3254_v32  ;;  %3641 = vmatprep.subr.bf16.mxu0 %v5260_v25 }
 0x533   :  { %1804 = vmatprep.mubr.f32.mxu0 %v5255_v17  ;;  %3669 = vmatprep.subr.bf16.mxu1 %v4794_v51 }
 0x534   :  { %v3261_v33 = vpop.f32.mrb[20].mxu1 }
 0x535   :  { %v1632_v34 = vpop.f32.mrb[21].mxu1  ;;  %3643 = vmatpush1.bf16.msra.mxu0 %v5261_v47  ;;  %3671 = vmatpush3.bf16.msra.mxu1 %v4794_v51 }
 0x536   :  { %1805 = vmatmul.mubr.f32.gmra.mrb[32].mxu0 %v1632_v34  ;;  %3645 = vmatprep.subr.bf16.mxu0 %v4726_v56  ;;  %v5263_v56 = vld [vmem:[#allocation31_spill] sm:$0xff] }
 0x537   :  { %1810 = vmatprep.mubr.f32.mxu0 %v5255_v17  ;;  %3307 = vmatprep.mubr.f32.mxu1 %v1632_v34 }
 0x538   :  { %3308 = vmatmul.mubr.f32.gmra.mrb[28].mxu1 %v3261_v33  ;;  %3673 = vmatprep.subr.bf16.mxu1 %v4798_v61 }
 0x539   :  { %3647 = vmatpush1.bf16.msra.mxu0 %v4730_v4  ;;  %3675 = vmatpush3.bf16.msra.mxu1 %v4798_v61  ;;  %v5265_v4 = vld [vmem:[#allocation35_spill] sm:$0xff]  ;;  %v5267_v61 = vld [vmem:[#allocation36_spill] sm:$0xff] }
 0x53a   :  { %1811 = vmatmul.mubr.f32.gmra.mrb[34].mxu0 %v3261_v33  ;;  %3649 = vmatprep.subr.bf16.mxu0 %v4733_v53  ;;  %v3268_v43 = vpop.f32.mrb[22].mxu1  ;;  %v5266_v53 = vld [vmem:[#allocation33_spill] sm:$0xff] }
 0x53b   :  { %1816 = vmatprep.mubr.f32.mxu0 %v5255_v17  ;;  %3677 = vmatprep.subr.bf16.mxu1 %v5262_v28  ;;  %v1707_v51 = vpop.f32.mrb[23].mxu1 }
 0x53c   :  { %3310 = vmatprep.mubr.f32.mxu1 %v1707_v51 }
 0x53d   :  { %3651 = vmatpush1.bf16.msra.mxu0 %v5263_v56  ;;  %3679 = vmatpush3.bf16.msra.mxu1 %v5262_v28 }
 0x53e   :  { %1817 = vmatmul.mubr.f32.gmra.mrb[36].mxu0 %v1707_v51  ;;  %3653 = vmatprep.subr.bf16.mxu0 %v5264_v59 }
 0x53f   :  { %1822 = vmatprep.mubr.f32.mxu0 %v5255_v17  ;;  %3311 = vmatmul.mubr.f32.gmra.mrb[30].mxu1 %v3268_v43 }
 0x540   :  { %3681 = vmatprep.subr.bf16.mxu1 %v5265_v4 }
 0x541   :  { %3655 = vmatpush1.bf16.msra.mxu0 %v5266_v53  ;;  %3683 = vmatpush3.bf16.msra.mxu1 %v5265_v4 }
 0x542   :  { %1823 = vmatmul.mubr.f32.gmra.mrb[38].mxu0 %v3268_v43  ;;  %3685 = vmatprep.subr.bf16.mxu1 %v5267_v61 }
 0x543   :  { %1998 = vmatprep.mubr.f32.mxu0 %v5255_v17  ;;  %3689 = vmatprep.subr.bf16.mxu0 %v3688_v35 }
 0x545   :  { %3687 = vmatpush3.bf16.msra.mxu1 %v5267_v61 }
 0x546   :  { %1999 = vmatmul.mubr.f32.vlgmr.msra.gmra.mrb[24].mxu0 %v4905_v18 }
 0x547   :  { %2004 = vmatprep.mubr.f32.mxu0 %v5255_v17  ;;  %3691 = vmatpush1.bf16.msra.mxu0 %v3690_v49 }
 0x548   :  { %3693 = vmatprep.subr.bf16.mxu0 %v3692_v29 }
 0x54a   :  { %2005 = vmatmul.mubr.f32.gmra.mrb[26].mxu0 %v4901_v19 }
 0x54b   :  { %2010 = vmatprep.mubr.f32.mxu0 %v5255_v17  ;;  %3695 = vmatpush1.bf16.msra.mxu0 %v3694_v44 }
 0x54c   :  { %3697 = vmatprep.subr.bf16.mxu0 %v3696_v30 }
 0x54e   :  { %2011 = vmatmul.mubr.f32.gmra.mrb[28].mxu0 %v4924_v13 }
 0x54f   :  { %2016 = vmatprep.mubr.f32.mxu0 %v5255_v17 }
 0x552   :  { %2017 = vmatmul.mubr.f32.gmra.mrb[30].mxu0 %v4919_v45 }
 0x553   :  { %2022 = vmatprep.mubr.f32.mxu0 %v5255_v17 }
 0x556   :  { %2023 = vmatmul.mubr.f32.gmra.mrb[32].mxu0 %v4936_v31 }
 0x557   :  { %2028 = vmatprep.mubr.f32.mxu0 %v5255_v17 }
 0x55a   :  { %2029 = vmatmul.mubr.f32.gmra.mrb[34].mxu0 %v4931_v38 }
 0x55b   :  { %2034 = vmatprep.mubr.f32.mxu0 %v5255_v17 }
 0x55e   :  { %2035 = vmatmul.mubr.f32.gmra.mrb[36].mxu0 %v4950_v58 }
 0x55f   :  { %2040 = vmatprep.mubr.f32.mxu0 %v5255_v17 }
 0x562   :  { %2041 = vmatmul.mubr.f32.gmra.mrb[38].mxu0 %v4945_v50 }
 0x563   :  { %2436 = vmatprep.mubr.f32.mxu0 %v5255_v17 }
 0x619   :  { %v5029_v52 = vpop.f32.mrb[24].mxu0 }
 0x61a   :  { %v2002_v24 = vpop.f32.mrb[25].mxu0 }
 0x61b   :  { %v2003_v62 = vadd.f32 %v2002_v24, %v4825_v21 }
 0x61d   :  { %v2916_v2 = vmul.f32 -1.442695, %v2003_v62  ;;  %v5032_v3 = vpop.f32.mrb[26].mxu0 }
 0x61e   :  { %v2008_v5 = vpop.f32.mrb[27].mxu0 }
 0x61f   :  { %3940 = vpow2.f32 %v2916_v2  ;;  %v2009_v6 = vadd.f32 %v2008_v5, %v4825_v21 }
 0x621   :  { %v2918_v11 = vmul.f32 -1.442695, %v2009_v6  ;;  %v5035_v12 = vpop.f32.mrb[28].mxu0 }
 0x622   :  { %v2014_v23 = vpop.f32.mrb[29].mxu0 }
 0x623   :  { %3942 = vpow2.f32 %v2918_v11  ;;  %v2015_v15 = vadd.f32 %v2014_v23, %v4825_v21 }
 0x625   :  { %v2920_v57 = vmul.f32 -1.442695, %v2015_v15  ;;  %v5038_v32 = vpop.f32.mrb[30].mxu0 }
 0x626   :  { %v2020_v14 = vpop.f32.mrb[31].mxu0 }
 0x627   :  { %3944 = vpow2.f32 %v2920_v57  ;;  %v2021_v0 = vadd.f32 %v2020_v14, %v4825_v21 }
 0x629   :  { %v3941_v25 = vpop.eup %3940  ;;  %v2922_v33 = vmul.f32 -1.442695, %v2021_v0  ;;  %v5041_v34 = vpop.f32.mrb[32].mxu0 }
 0x62a   :  { %v2112_v47 = vadd.f32 1.0, %v3941_v25  ;;  %v2026_v28 = vpop.f32.mrb[33].mxu0 }
 0x62b   :  { %v2027_v43 = vadd.f32 %v2026_v28, %v4825_v21 }
 0x62c   :  { %3946 = vrcp.f32 %v2112_v47 }
 0x62d   :  { %v3943_v51 = vpop.eup %3942  ;;  %3948 = vpow2.f32 %v2922_v33  ;;  %v2924_v56 = vmul.f32 -1.442695, %v2027_v43  ;;  %v5044_v59 = vpop.f32.mrb[34].mxu0 }
 0x62e   :  { %v2114_v4 = vadd.f32 1.0, %v3943_v51  ;;  %v2032_v53 = vpop.f32.mrb[35].mxu0 }
 0x62f   :  { %v2033_v61 = vadd.f32 %v2032_v53, %v4825_v21 }
 0x630   :  { %3950 = vrcp.f32 %v2114_v4 }
 0x631   :  { %v3945_v41 = vpop.eup %3944  ;;  %3952 = vpow2.f32 %v2924_v56  ;;  %v2926_v39 = vmul.f32 -1.442695, %v2033_v61  ;;  %v5047_v63 = vpop.f32.mrb[36].mxu0 }
 0x632   :  { %v2116_v35 = vadd.f32 1.0, %v3945_v41  ;;  %v2038_v7 = vpop.f32.mrb[37].mxu0  ;;  %v2336_v41 = vld [vmem:[#allocation11 + $0x40] sm:$0xff] }
 0x633   :  { %v2039_v46 = vadd.f32 %v2038_v7, %v4825_v21  ;;  %v2341_v7 = vld [vmem:[#allocation11 + $0x68] sm:$0xff] }
 0x634   :  { %3954 = vrcp.f32 %v2116_v35 }
 0x635   :  { %3956 = vpow2.f32 %v2926_v39  ;;  %v2928_v26 = vmul.f32 -1.442695, %v2039_v46  ;;  %v5050_v49 = vpop.f32.mrb[38].mxu0  ;;  %v2338_v39 = vld [vmem:[#allocation11 + $0x50] sm:$0xff]  ;;  %v2343_v46 = vld [vmem:[#allocation11 + $0x78] sm:$0xff] }
 0x636   :  { %v3947_v29 = vpop.eup %3946  ;;  %v2044_v22 = vpop.f32.mrb[39].mxu0  ;;  %v3698_v35 = vpack.c.bf16 %v2338_v39, %v2336_v41 }
 0x637   :  { %v3949_v37 = vpop.eup %3948  ;;  %v2045_v1 = vadd.f32 %v2044_v22, %v4825_v21  ;;  %v2159_v48 = vmul.f32 %v3947_v29, %v4905_v18  ;;  %3958 = vpow2.f32 %v2928_v26  ;;  %v3700_v26 = vpack.c.bf16 %v2343_v46, %v2341_v7  ;;  %v2340_v29 = vld [vmem:[#allocation11 + $0x60] sm:$0xff]  ;;  %v2342_v22 = vld [vmem:[#allocation11 + $0x70] sm:$0xff] }
 0x638   :  { %v2118_v44 = vadd.f32 1.0, %v3949_v37  ;;  %3699 = vmatpush1.bf16.msra.mxu0 %v3698_v35  ;;  %v3702_v37 = vpack.c.bf16 %v2342_v22, %v2340_v29  ;;  %v2019_v35 = vadd.f32 %v5038_v32, %v4865_v55  ;;  %v2013_v7 = vadd.f32 %v5035_v12, %v4865_v55 }
 0x639   :  { %v2930_v30 = vmul.f32 -1.442695, %v2045_v1  ;;  %3345 = vmatprep.mubr.f32.mxu1 %v2159_v48  ;;  %3701 = vmatprep.subr.bf16.mxu0 %v3700_v26  ;;  %v2345_v1 = vld [vmem:[#allocation11 + $0x88] sm:$0xff]  ;;  %v2347_v48 = vld [vmem:[#allocation11 + $0x98] sm:$0xff] }
 0x63a   :  { %v3951_v24 = vpop.eup %3950  ;;  %3960 = vrcp.f32 %v2118_v44  ;;  %v3704_v44 = vpack.c.bf16 %v2347_v48, %v2345_v1  ;;  %v2921_v46 = vmul.f32 -1.442695, %v2019_v35  ;;  %v2919_v29 = vmul.f32 -1.442695, %v2013_v7 }
 0x63b   :  { %v3953_v62 = vpop.eup %3952  ;;  %v2160_v2 = vmul.f32 %v3951_v24, %v4901_v19  ;;  %3962 = vpow2.f32 %v2930_v30  ;;  %v2344_v30 = vld [vmem:[#allocation11 + $0x80] sm:$0xff]  ;;  %v2346_v24 = vld [vmem:[#allocation11 + $0x90] sm:$0xff]  ;;  %v2025_v1 = vadd.f32 %v5041_v34, %v4865_v55  ;;  %v2043_v34 = vadd.f32 %v5050_v49, %v4865_v55 }
 0x63c   :  { %v2120_v5 = vadd.f32 1.0, %v3953_v62  ;;  %3703 = vmatpush1.bf16.msra.mxu0 %v3702_v37  ;;  %v3706_v62 = vpack.c.bf16 %v2346_v24, %v2344_v30 }
 0x63d   :  { %3346 = vmatmul.mubr.f32.vlgmr.msra.gmra.mrb[24].mxu1 %v2160_v2  ;;  %3705 = vmatprep.subr.bf16.mxu0 %v3704_v44  ;;  %v2349_v2 = vld [vmem:[#allocation11 + $0xa8] sm:$0xff] }
 0x63e   :  { %v3955_v6 = vpop.eup %3954  ;;  %3964 = vrcp.f32 %v2120_v5  ;;  %v2351_v5 = vld [vmem:[#allocation11 + $0xb8] sm:$0xff] }
 0x63f   :  { %v3957_v11 = vpop.eup %3956  ;;  %v2161_v23 = vmul.f32 %v3955_v6, %v4924_v13  ;;  %v3708_v6 = vpack.c.bf16 %v2351_v5, %v2349_v2  ;;  %v2923_v2 = vmul.f32 -1.442695, %v2025_v1 }
 0x640   :  { %v2122_v21 = vadd.f32 1.0, %v3957_v11  ;;  %3707 = vmatpush1.bf16.msra.mxu0 %v3706_v62  ;;  %v2348_v11 = vld [vmem:[#allocation11 + $0xa0] sm:$0xff] }
 0x641   :  { %3348 = vmatprep.mubr.f32.mxu1 %v2161_v23  ;;  %v3959_v15 = vpop.eup %3958  ;;  %v2350_v23 = vld [vmem:[#allocation11 + $0xb0] sm:$0xff]  ;;  %3709 = vmatprep.subr.bf16.mxu0 %v3708_v6 }
 0x642   :  { %3966 = vrcp.f32 %v2122_v21  ;;  %v2124_v57 = vadd.f32 1.0, %v3959_v15  ;;  %v3710_v21 = vpack.c.bf16 %v2350_v23, %v2348_v11  ;;  %v2353_v15 = vld [vmem:[#allocation11 + $0xc8] sm:$0xff]  ;;  %v2929_v11 = vmul.f32 -1.442695, %v2043_v34 }
 0x644   :  { %v3961_v14 = vpop.eup %3960  ;;  %3968 = vrcp.f32 %v2124_v57  ;;  %3711 = vmatpush1.bf16.msra.mxu0 %v3710_v21  ;;  %v2355_v57 = vld [vmem:[#allocation11 + $0xd8] sm:$0xff] }
 0x645   :  { %v2162_v0 = vmul.f32 %v3961_v14, %v4919_v45  ;;  %v3963_v25 = vpop.eup %3962  ;;  %v3712_v14 = vpack.c.bf16 %v2355_v57, %v2353_v15 }
 0x646   :  { %v2126_v47 = vadd.f32 1.0, %v3963_v25  ;;  %v2354_v25 = vld [vmem:[#allocation11 + $0xd0] sm:$0xff] }
 0x647   :  { %3349 = vmatmul.mubr.f32.gmra.mrb[26].mxu1 %v2162_v0  ;;  %v2352_v0 = vld [vmem:[#allocation11 + $0xc0] sm:$0xff]  ;;  %3713 = vmatprep.subr.bf16.mxu0 %v3712_v14 }
 0x648   :  { %v3965_v33 = vpop.eup %3964  ;;  %3970 = vrcp.f32 %v2126_v47  ;;  %v2357_v47 = vld [vmem:[#allocation11 + $0xe8] sm:$0xff] }
 0x649   :  { %v2163_v28 = vmul.f32 %v3965_v33, %v4936_v31  ;;  %v3714_v33 = vpack.c.bf16 %v2354_v25, %v2352_v0 }
 0x64b   :  { %3351 = vmatprep.mubr.f32.mxu1 %v2163_v28  ;;  %3715 = vmatpush1.bf16.msra.mxu0 %v3714_v33  ;;  %v2359_v28 = vld [vmem:[#allocation11 + $0xf8] sm:$0xff] }
 0x64c   :  { %v3967_v43 = vpop.eup %3966 }
 0x64d   :  { %v2164_v51 = vmul.f32 %v3967_v43, %v4931_v38  ;;  %v3716_v43 = vpack.c.bf16 %v2359_v28, %v2357_v47 }
 0x64e   :  { %v3969_v56 = vpop.eup %3968 }
 0x64f   :  { %3352 = vmatmul.mubr.f32.gmra.mrb[28].mxu1 %v2164_v51  ;;  %v2165_v4 = vmul.f32 %v3969_v56, %v4950_v58  ;;  %v2356_v51 = vld [vmem:[#allocation11 + $0xe0] sm:$0xff]  ;;  %v2358_v56 = vld [vmem:[#allocation11 + $0xf0] sm:$0xff]  ;;  %3717 = vmatprep.subr.bf16.mxu0 %v3716_v43 }
 0x651   :  { %3354 = vmatprep.mubr.f32.mxu1 %v2165_v4  ;;  %v3718_v4 = vpack.c.bf16 %v2358_v56, %v2356_v51 }
 0x652   :  { %v3971_v53 = vpop.eup %3970 }
 0x653   :  { %v2166_v61 = vmul.f32 %v3971_v53, %v4945_v50  ;;  %3719 = vmatpush1.bf16.msra.mxu0 %v3718_v4  ;;  %v2001_v53 = vadd.f32 %v5029_v52, %v4865_v55  ;;  %v2031_v52 = vadd.f32 %v5044_v59, %v4865_v55  ;;  %v2037_v59 = vadd.f32 %v5047_v63, %v4865_v55 }
 0x655   :  { %3355 = vmatmul.mubr.f32.gmra.mrb[30].mxu1 %v2166_v61  ;;  %v2007_v61 = vadd.f32 %v5032_v3, %v4865_v55  ;;  %v2915_v41 = vmul.f32 -1.442695, %v2001_v53  ;;  %v2925_v24 = vmul.f32 -1.442695, %v2031_v52  ;;  %v2927_v5 = vmul.f32 -1.442695, %v2037_v59 }
 0x657   :  { %v2917_v39 = vmul.f32 -1.442695, %v2007_v61  ;;  %3972 = vpow2.f32 %v2915_v41 }
 0x659   :  { %3974 = vpow2.f32 %v2917_v39 }
 0x65a   :  { %3976 = vpow2.f32 %v2921_v46 }
 0x65b   :  { %3978 = vpow2.f32 %v2919_v29 }
 0x661   :  { %v3973_v26 = vpop.eup %3972 }
 0x662   :  { %v2111_v37 = vadd.f32 1.0, %v3973_v26 }
 0x663   :  { %v3975_v22 = vpop.eup %3974 }
 0x664   :  { %v2113_v12 = vadd.f32 1.0, %v3975_v22  ;;  %3980 = vrcp.f32 %v2111_v37  ;;  %v3977_v6 = vpop.eup %3976 }
 0x665   :  { %v3979_v21 = vpop.eup %3978  ;;  %v2117_v0 = vadd.f32 1.0, %v3977_v6 }
 0x666   :  { %v2115_v55 = vadd.f32 1.0, %v3979_v21 }
 0x66e   :  { %v3981_v25 = vpop.eup %3980 }
 0x710   :  { %v3347_v3 = vpop.f32.mrb[24].mxu1 }
 0x711   :  { %v2281_v48 = vadd.f32 %v3347_v3, %v4878_v27  ;;  %v2233_v32 = vpop.f32.mrb[25].mxu1 }
 0x712   :  { %v2280_v44 = vadd.f32 %v4878_v27, %v2233_v32 }
 0x713   :  { %v2289_v30 = vmul.f32 %v2281_v48, %v4588_v16 }
 0x714   :  { %v2288_v62 = vmul.f32 %v2280_v44, %v4584_v8 }
 0x715   :  { %3982 = vtanh.f32 %v2289_v30 }
 0x716   :  { %3984 = vtanh.f32 %v2288_v62 }
 0x717   :  { %3986 = vrcp.f32 %v2113_v12 }
 0x718   :  { %3988 = vpow2.f32 %v2925_v24 }
 0x719   :  { %3990 = vpow2.f32 %v2923_v2 }
 0x71a   :  { %v3350_v23 = vpop.f32.mrb[26].mxu1  ;;  %3992 = vpow2.f32 %v2927_v5 }
 0x71b   :  { %v2283_v15 = vadd.f32 %v3350_v23, %v4878_v27  ;;  %v2243_v57 = vpop.f32.mrb[27].mxu1  ;;  %3994 = vpow2.f32 %v2929_v11 }
 0x71c   :  { %v2282_v14 = vadd.f32 %v4878_v27, %v2243_v57 }
 0x71d   :  { %v2291_v63 = vmul.f32 %v2283_v15, %v4590_v20 }
 0x71e   :  { %v2290_v49 = vmul.f32 %v2282_v14, %v4586_v10 }
 0x71f   :  { %v3983_v33 = vpop.eup %3982  ;;  %3996 = vtanh.f32 %v2291_v63 }
 0x720   :  { %v3985_v47 = vpop.eup %3984  ;;  %3998 = vtanh.f32 %v2290_v49  ;;  %v2305_v28 = vsub.f32 %v3983_v33, %v4901_v19 }
 0x721   :  { %v3987_v43 = vpop.eup %3986  ;;  %4000 = vrcp.f32 %v2117_v0  ;;  %v2304_v51 = vsub.f32 %v3985_v47, %v4905_v18 }
 0x722   :  { %v3989_v56 = vpop.eup %3988  ;;  %4002 = vrcp.f32 %v2115_v55  ;;  %v3353_v4 = vpop.f32.mrb[28].mxu1  ;;  %v2313_v53 = vmul.f32 %v3987_v43, %v2305_v28 }
 0x723   :  { %v3991_v61 = vpop.eup %3990  ;;  %v2285_v41 = vadd.f32 %v3353_v4, %v4878_v27  ;;  %v2253_v39 = vpop.f32.mrb[29].mxu1  ;;  %v2312_v35 = vmul.f32 %v3981_v25, %v2304_v51  ;;  %v2121_v46 = vadd.f32 1.0, %v3989_v56 }
 0x724   :  { %v2284_v7 = vadd.f32 %v4878_v27, %v2253_v39  ;;  %v2119_v22 = vadd.f32 1.0, %v3991_v61  ;;  %v3993_v52 = vpop.eup %3992  ;;  %v2321_v48 = vadd.f32 %v2313_v53, %v4901_v19  ;;  %v2751_v39 = vld [vmem:[#allocation13 + $0x8] sm:$0xff] }
 0x725   :  { %v2293_v26 = vmul.f32 %v2285_v41, %v4603_v36  ;;  %v2320_v29 = vadd.f32 %v2312_v35, %v4905_v18  ;;  %v3995_v3 = vpop.eup %3994  ;;  %v2123_v11 = vadd.f32 1.0, %v3993_v52  ;;  %v2750_v41 = vld [vmem:[#allocation13] sm:$0xff] }
 0x726   :  { %v2292_v37 = vmul.f32 %v2284_v7, %v4608_v40  ;;  %v2125_v5 = vadd.f32 1.0, %v3995_v3  ;;  %v3721_v35 = vpack.c.bf16 %v2751_v39, %v2750_v41  ;;  %v2752_v7 = vld [vmem:[#allocation13 + $0x10] sm:$0xff]  ;;  %v2758_v3 = vld [vmem:[#allocation13 + $0x40] sm:$0xff] }
 0x727   :  { %4004 = vtanh.f32 %v2293_v26  ;;  %2437 = vmatmul.mubr.f32.vlgmr.msra.gmra.mrb[40].mxu0 %v2320_v29  ;;  %v2754_v29 = vld [vmem:[#allocation13 + $0x20] sm:$0xff] }
 0x728   :  { %4006 = vtanh.f32 %v2292_v37  ;;  %2442 = vmatprep.mubr.f32.mxu0 %v5255_v17  ;;  %v3356_v44 = vpop.f32.mrb[30].mxu1  ;;  %v2756_v37 = vld [vmem:[#allocation13 + $0x30] sm:$0xff] }
 0x729   :  { %v3997_v1 = vpop.eup %3996  ;;  %4008 = vrcp.f32 %v2121_v46  ;;  %v2287_v30 = vadd.f32 %v3356_v44, %v4878_v27  ;;  %v2263_v24 = vpop.f32.mrb[31].mxu1  ;;  %v2753_v46 = vld [vmem:[#allocation13 + $0x18] sm:$0xff] }
 0x72a   :  { %v3999_v32 = vpop.eup %3998  ;;  %4010 = vrcp.f32 %v2119_v22  ;;  %v2307_v12 = vsub.f32 %v3997_v1, %v4919_v45  ;;  %v2286_v59 = vadd.f32 %v4878_v27, %v2263_v24  ;;  %v3724_v26 = vpack.c.bf16 %v2753_v46, %v2752_v7  ;;  %v2759_v1 = vld [vmem:[#allocation13 + $0x48] sm:$0xff]  ;;  %v2761_v44 = vld [vmem:[#allocation13 + $0x58] sm:$0xff] }
 0x72b   :  { %v4001_v18 = vpop.eup %4000  ;;  %2443 = vmatmul.mubr.f32.gmra.mrb[42].mxu0 %v2321_v48  ;;  %v2306_v62 = vsub.f32 %v3999_v32, %v4924_v13  ;;  %v2295_v19 = vmul.f32 %v2287_v30, %v4628_v54  ;;  %v3733_v48 = vpack.c.bf16 %v2759_v1, %v2758_v3  ;;  %v2760_v32 = vld [vmem:[#allocation13 + $0x50] sm:$0xff]  ;;  %v2763_v30 = vld [vmem:[#allocation13 + $0x68] sm:$0xff] }
 0x72c   :  { %v4003_v2 = vpop.eup %4002  ;;  %2448 = vmatprep.mubr.f32.mxu0 %v5255_v17  ;;  %v2315_v34 = vmul.f32 %v4001_v18, %v2307_v12  ;;  %v2294_v23 = vmul.f32 %v2286_v59, %v4634_v60  ;;  %v3736_v12 = vpack.c.bf16 %v2761_v44, %v2760_v32  ;;  %v2762_v18 = vld [vmem:[#allocation13 + $0x60] sm:$0xff] }
 0x72d   :  { %v2314_v6 = vmul.f32 %v4003_v2, %v2306_v62  ;;  %4012 = vtanh.f32 %v2295_v19  ;;  %v3739_v24 = vpack.c.bf16 %v2763_v30, %v2762_v18  ;;  %v2764_v62 = vld [vmem:[#allocation13 + $0x70] sm:$0xff]  ;;  %v2765_v2 = vld [vmem:[#allocation13 + $0x78] sm:$0xff] }
 0x72e   :  { %4014 = vtanh.f32 %v2294_v23  ;;  %v2323_v0 = vadd.f32 %v2315_v34, %v4919_v45  ;;  %v3742_v59 = vpack.c.bf16 %v2765_v2, %v2764_v62  ;;  %v5268_v34 = vsub.s32 1, %v4814_v42  ;;  %v2678_v42 = vpop.permute.xlu1 %2677 }
 0x72f   :  { %v2322_v21 = vadd.f32 %v2314_v6, %v4924_v13  ;;  %4016 = vrcp.f32 %v2125_v5 }
 0x730   :  { %4018 = vrcp.f32 %v2123_v11 }
 0x731   :  { %v4005_v15 = vpop.eup %4004  ;;  %2449 = vmatmul.mubr.f32.gmra.mrb[44].mxu0 %v2322_v21 }
 0x732   :  { %v4007_v57 = vpop.eup %4006  ;;  %2454 = vmatprep.mubr.f32.mxu0 %v5255_v17  ;;  %v2309_v27 = vsub.f32 %v4005_v15, %v4931_v38 }
 0x733   :  { %v4009_v14 = vpop.eup %4008  ;;  %v2308_v63 = vsub.f32 %v4007_v57, %v4936_v31 }
 0x734   :  { %v4011_v25 = vpop.eup %4010  ;;  %v2317_v55 = vmul.f32 %v4009_v14, %v2309_v27 }
 0x735   :  { %2455 = vmatmul.mubr.f32.gmra.mrb[46].mxu0 %v2323_v0  ;;  %v2316_v49 = vmul.f32 %v4011_v25, %v2308_v63 }
 0x736   :  { %2460 = vmatprep.mubr.f32.mxu0 %v5255_v17  ;;  %v2325_v45 = vadd.f32 %v2317_v55, %v4931_v38  ;;  %v4277_v38 = vmov 0.0|0.0  }
 0x737   :  { %v2324_v13 = vadd.f32 %v2316_v49, %v4936_v31  ;;  %v4013_v33 = vpop.eup %4012  ;;  %3720 = vmatprep.subr.bf16.mxu0 %v4277_v38 }
 0x738   :  { %v4015_v47 = vpop.eup %4014  ;;  %v2311_v28 = vsub.f32 %v4013_v33, %v4945_v50  ;;  %3722 = vmatpush3.bf16.msra.mxu0 %v3721_v35 }
 0x739   :  { %2461 = vmatmul.mubr.f32.gmra.mrb[48].mxu0 %v2324_v13  ;;  %v4017_v43 = vpop.eup %4016  ;;  %v2310_v51 = vsub.f32 %v4015_v47, %v4950_v58  ;;  %3723 = vmatprep.subr.bf16.mxu0 %v4277_v38  ;;  %v5131_v13 = vpop.permute.xlu0 %2672 }
 0x73a   :  { %2466 = vmatprep.mubr.f32.mxu0 %v5255_v17  ;;  %v4019_v56 = vpop.eup %4018  ;;  %v2319_v4 = vmul.f32 %v4017_v43, %v2311_v28 }
 0x73b   :  { %v2318_v53 = vmul.f32 %v4019_v56, %v2310_v51 }
 0x73c   :  { %v2327_v61 = vadd.f32 %v2319_v4, %v4945_v50  ;;  %3725 = vmatpush3.bf16.msra.mxu0 %v3724_v26  ;;  %v2757_v50 = vld [vmem:[#allocation13 + $0x38] sm:$0xff]  ;;  %v5140_v26 = vpop.permute.xlu1 %2687 }
 0x73d   :  { %2467 = vmatmul.mubr.f32.gmra.mrb[50].mxu0 %v2325_v45  ;;  %v2326_v31 = vadd.f32 %v2318_v53, %v4950_v58  ;;  %3726 = vmatprep.subr.bf16.mxu0 %v4277_v38  ;;  %v2755_v58 = vld [vmem:[#allocation13 + $0x28] sm:$0xff]  ;;  %v3730_v52 = vpack.c.bf16 %v2757_v50, %v2756_v37 }
 0x73e   :  { %2472 = vmatprep.mubr.f32.mxu0 %v5255_v17  ;;  %v3727_v22 = vpack.c.bf16 %v2755_v58, %v2754_v29 }
 0x740   :  { %3728 = vmatpush3.bf16.msra.mxu0 %v3727_v22 }
 0x741   :  { %2473 = vmatmul.mubr.f32.gmra.mrb[52].mxu0 %v2326_v31  ;;  %3729 = vmatprep.subr.bf16.mxu0 %v4277_v38  ;;  %v5136_v31 = vpop.permute.xlu0 %2682 }
 0x742   :  { %2478 = vmatprep.mubr.f32.mxu0 %v5255_v17 }
 0x744   :  { %3731 = vmatpush3.bf16.msra.mxu0 %v3730_v52 }
 0x745   :  { %2479 = vmatmul.mubr.f32.gmra.mrb[54].mxu0 %v2327_v61  ;;  %3732 = vmatprep.subr.bf16.mxu0 %v4277_v38  ;;  %v5142_v22 = vpop.permute.xlu0 %2692 }
 0x746   :  { %3389 = vmatprep.mubr.msk.f32.mxu0 %vm4278_vm3, %v5255_v17  ;;  %v2360_v17 = vld [vmem:[%s5199_s11] sm:$0x3] }
 0x747   :  { %v5122_v5 = vrot.slane %v2360_v17, %v5268_v34  ;;  %v5129_v25 = vrot.slane %v2360_v17, %v211_v9 }
 0x748   :  { %3734 = vmatpush3.bf16.msra.mxu0 %v3733_v48 }
 0x749   :  { %3735 = vmatprep.subr.bf16.mxu0 %v4277_v38  ;;  %v5149_v34 = vpop.permute.xlu0 %2702 }
 0x74c   :  { %3737 = vmatpush3.bf16.msra.mxu0 %v3736_v12 }
 0x74d   :  { %3738 = vmatprep.subr.bf16.mxu0 %v4277_v38 }
 0x750   :  { %3740 = vmatpush3.bf16.msra.mxu0 %v3739_v24 }
 0x751   :  { %3741 = vmatprep.subr.bf16.mxu0 %v4277_v38 }
 0x754   :  { %3743 = vmatpush3.bf16.msra.mxu0 %v3742_v59 }
 0x7fa   :  { %v2438_v19 = vpop.f32.mrb[40].mxu0 }
 0x7fb   :  { %v2440_v6 = vpop.f32.mrb[41].mxu0  ;;  %v2439_v43 = vadd.f32 %v2438_v19, %v5129_v25  ;;  %v5151_v19 = vpop.permute.xlu1 %2697 }
 0x7fc   :  { %v2441_v11 = vadd.f32 %v2440_v6, %v5122_v5 }
 0x7fe   :  { %v2931_v23 = vmul.f32 -1.442695, %v2441_v11  ;;  %v2444_v21 = vpop.f32.mrb[42].mxu0 }
 0x7ff   :  { %v2446_v15 = vpop.f32.mrb[43].mxu0  ;;  %v2445_v61 = vadd.f32 %v2444_v21, %v5129_v25 }
 0x800   :  { %4020 = vpow2.f32 %v2931_v23  ;;  %v2447_v57 = vadd.f32 %v2446_v15, %v5122_v5 }
 0x802   :  { %v2932_v27 = vmul.f32 -1.442695, %v2447_v57 }
 0x804   :  { %4022 = vpow2.f32 %v2932_v27  ;;  %v2450_v14 = vpop.f32.mrb[44].mxu0 }
 0x805   :  { %v2452_v0 = vpop.f32.mrb[45].mxu0  ;;  %v2451_v37 = vadd.f32 %v2450_v14, %v5129_v25 }
 0x806   :  { %v2453_v63 = vadd.f32 %v2452_v0, %v5122_v5 }
 0x808   :  { %v2933_v55 = vmul.f32 -1.442695, %v2453_v63  ;;  %v2456_v49 = vpop.f32.mrb[46].mxu0 }
 0x809   :  { %v2458_v33 = vpop.f32.mrb[47].mxu0  ;;  %v2457_v30 = vadd.f32 %v2456_v49, %v5129_v25  ;;  %v5156_v49 = vpop.permute.xlu1 %2707 }
 0x80a   :  { %v4021_v47 = vpop.eup %4020  ;;  %4024 = vpow2.f32 %v2933_v55  ;;  %v2459_v28 = vadd.f32 %v2458_v33, %v5122_v5  ;;  %v2645_v55 = vpop.permute.xlu0 %2644 }
 0x80b   :  { %v2517_v45 = vadd.f32 1.0, %v4021_v47 }
 0x80c   :  { %v2934_v51 = vmul.f32 -1.442695, %v2459_v28  ;;  %v2462_v56 = vpop.f32.mrb[48].mxu0 }
 0x80d   :  { %4026 = vrcp.f32 %v2517_v45  ;;  %v2464_v4 = vpop.f32.mrb[49].mxu0  ;;  %v2463_v21 = vadd.f32 %v2462_v56, %v5129_v25 }
 0x80e   :  { %v4023_v53 = vpop.eup %4022  ;;  %4028 = vpow2.f32 %v2934_v51  ;;  %v2465_v9 = vadd.f32 %v2464_v4, %v5122_v5 }
 0x80f   :  { %4030 = vtanh.f32 %v2439_v43  ;;  %v2518_v41 = vadd.f32 1.0, %v4023_v53 }
 0x810   :  { %v2935_v39 = vmul.f32 -1.442695, %v2465_v9  ;;  %v2468_v35 = vpop.f32.mrb[50].mxu0 }
 0x811   :  { %4032 = vrcp.f32 %v2518_v41  ;;  %v2470_v38 = vpop.f32.mrb[51].mxu0 }
 0x812   :  { %4034 = vpow2.f32 %v2935_v39  ;;  %v2471_v7 = vadd.f32 %v2470_v38, %v5122_v5  ;;  %v2650_v38 = vpop.permute.xlu1 %2649 }
 0x813   :  { %4036 = vtanh.f32 %v2445_v61 }
 0x814   :  { %v4025_v46 = vpop.eup %4024  ;;  %v2936_v29 = vmul.f32 -1.442695, %v2471_v7  ;;  %v2474_v58 = vpop.f32.mrb[52].mxu0 }
 0x815   :  { %v2519_v50 = vadd.f32 1.0, %v4025_v46  ;;  %v2476_v52 = vpop.f32.mrb[53].mxu0 }
 0x816   :  { %4038 = vpow2.f32 %v2936_v29  ;;  %v2477_v3 = vadd.f32 %v2476_v52, %v5122_v5 }
 0x817   :  { %v4027_v1 = vpop.eup %4026  ;;  %4040 = vrcp.f32 %v2519_v50 }
 0x818   :  { %v4029_v48 = vpop.eup %4028  ;;  %v2541_v32 = vmul.f32 %v4027_v1, %v4584_v8  ;;  %v2937_v44 = vmul.f32 -1.442695, %v2477_v3  ;;  %v2480_v12 = vpop.f32.mrb[54].mxu0  ;;  %4042 = vtanh.f32 %v2451_v37 }
 0x819   :  { %v4031_v18 = vpop.eup %4030  ;;  %v2520_v24 = vadd.f32 1.0, %v4029_v48  ;;  %v2482_v62 = vpop.f32.mrb[55].mxu0  ;;  %v2481_v52 = vadd.f32 %v2480_v12, %v5129_v25 }
 0x81a   :  { %v2549_v2 = vmul.f32 %v4031_v18, %v2541_v32  ;;  %4044 = vpow2.f32 %v2937_v44  ;;  %v2483_v59 = vadd.f32 %v2482_v62, %v5122_v5 }
 0x81b   :  { %v4033_v17 = vpop.eup %4032  ;;  %4046 = vrcp.f32 %v2520_v24 }
 0x81c   :  { %v4035_v6 = vpop.eup %4034  ;;  %v2542_v8 = vmul.f32 %v4033_v17, %v4588_v16  ;;  %v2938_v11 = vmul.f32 -1.442695, %v2483_v59  ;;  %4048 = vtanh.f32 %v2457_v30  ;;  %v2710_v5 = vadd.f32 %v5131_v13, %v2549_v2 }
 0x81d   :  { %v4037_v23 = vpop.eup %4036  ;;  %v2521_v15 = vadd.f32 1.0, %v4035_v6  ;;  %v2469_v16 = vadd.f32 %v2468_v35, %v5129_v25 }
 0x81e   :  { %v2550_v57 = vmul.f32 %v4037_v23, %v2542_v8  ;;  %4050 = vpow2.f32 %v2938_v11 }
 0x81f   :  { %4052 = vrcp.f32 %v2521_v15 }
 0x820   :  { %v4039_v27 = vpop.eup %4038  ;;  %v2614_v14 = vadd.f32 %v2550_v57, %v2549_v2  ;;  %v2711_v0 = vadd.f32 %v2678_v42, %v2550_v57  ;;  %4054 = vtanh.f32 %v2463_v21  ;;  %v2475_v42 = vadd.f32 %v2474_v58, %v5129_v25 }
 0x821   :  { %v4041_v63 = vpop.eup %4040  ;;  %v2522_v33 = vadd.f32 1.0, %v4039_v27  ;;  %4056 = vrcp.f32 %v2645_v55 }
 0x822   :  { %v2615_v47 = vrot.slane %v2614_v14, 4  ;;  %v2718_v28 = vmax.f32 %v2710_v5, %v2711_v0  ;;  %v2543_v43 = vmul.f32 %v4041_v63, %v4586_v10  ;;  %v4043_v45 = vpop.eup %4042  ;;  %v2655_v5 = vpop.permute.xlu0 %2654 }
 0x823   :  { %4058 = vrcp.f32 %v2522_v33 }
 0x824   :  { %v4045_v51 = vpop.eup %4044  ;;  %v2616_v56 = vadd.f32 %v2615_v47, %v2614_v14  ;;  %v2551_v13 = vmul.f32 %v4043_v45, %v2543_v43  ;;  %v2719_v4 = vrot.slane %v2718_v28, 4  ;;  %4060 = vtanh.f32 %v2469_v16 }
 0x825   :  { %v4047_v53 = vpop.eup %4046  ;;  %v2523_v9 = vadd.f32 1.0, %v4045_v51 }
 0x826   :  { %v2544_v61 = vmul.f32 %v4047_v53, %v4590_v20  ;;  %v2617_v41 = vrot.slane %v2616_v56, 2  ;;  %v2720_v39 = vmax.f32 %v2718_v28, %v2719_v4  ;;  %v4049_v35 = vpop.eup %4048  ;;  %v2712_v50 = vadd.f32 %v5136_v31, %v2551_v13 }
 0x827   :  { %4062 = vrcp.f32 %v2523_v9 }
 0x828   :  { %v4051_v7 = vpop.eup %4050  ;;  %4064 = vrcp.f32 %v2650_v38  ;;  %v2552_v10 = vmul.f32 %v4049_v35, %v2544_v61  ;;  %v2618_v46 = vadd.f32 %v2617_v41, %v2616_v56  ;;  %v2721_v29 = vrot.slane %v2720_v39, 2 }
 0x829   :  { %v4053_v37 = vpop.eup %4052  ;;  %4066 = vtanh.f32 %v2475_v42  ;;  %v2524_v58 = vadd.f32 1.0, %v4051_v7 }
 0x82a   :  { %v2621_v3 = vadd.f32 %v2552_v10, %v2551_v13  ;;  %v2713_v20 = vadd.f32 %v5140_v26, %v2552_v10  ;;  %v2545_v1 = vmul.f32 %v4053_v37, %v4608_v40  ;;  %v2619_v48 = vrot.slane %v2618_v46, 1  ;;  %v4055_v32 = vpop.eup %4054 }
 0x82b   :  { %4068 = vrcp.f32 %v2524_v58  ;;  %v2722_v44 = vmax.f32 %v2720_v39, %v2721_v29  ;;  %v4057_v18 = vpop.eup %4056  ;;  %v2660_v39 = vpop.permute.xlu1 %2659 }
 0x82c   :  { %v2622_v30 = vrot.slane %v2621_v3, 4  ;;  %v2725_v24 = vmax.f32 %v2712_v50, %v2713_v20  ;;  %v2553_v62 = vmul.f32 %v4055_v32, %v2545_v1  ;;  %v2620_v2 = vadd.f32 %v2619_v48, %v2618_v46 }
 0x82d   :  { %v4059_v59 = vpop.eup %4058  ;;  %4070 = vtanh.f32 %v2481_v52  ;;  %v2723_v31 = vrot.slane %v2722_v44, 1 }
 0x82e   :  { %v2623_v17 = vadd.f32 %v2622_v30, %v2621_v3  ;;  %v2546_v25 = vmul.f32 %v4059_v59, %v4603_v36  ;;  %v2663_v12 = vmul.f32 %v4057_v18, %v2620_v2  ;;  %v4061_v6 = vpop.eup %4060  ;;  %v2726_v8 = vrot.slane %v2725_v24, 4 }
 0x82f   :  { %v2724_v26 = vmax.f32 %v2722_v44, %v2723_v31  ;;  %v2714_v21 = vadd.f32 %v5142_v22, %v2553_v62  ;;  %4072 = vrcp.f32 %v2655_v5 }
 0x830   :  { %v2554_v40 = vmul.f32 %v4061_v6, %v2546_v25  ;;  %v2624_v11 = vrot.slane %v2623_v17, 2  ;;  %v2727_v15 = vmax.f32 %v2725_v24, %v2726_v8  ;;  %4074 = vrcp.f32 %v2660_v39 }
 0x831   :  { %v4063_v23 = vpop.eup %4062  ;;  %v2746_v57 = vadd.f32 %v2724_v26, %v2663_v12 }
 0x832   :  { %v4065_v27 = vpop.eup %4064  ;;  %v2628_v14 = vadd.f32 %v2554_v40, %v2553_v62  ;;  %v2715_v0 = vadd.f32 %v5151_v19, %v2554_v40  ;;  %v2547_v63 = vmul.f32 %v4063_v23, %v4634_v60  ;;  %v2625_v55 = vadd.f32 %v2624_v11, %v2623_v17  ;;  %v2947_v11 = vld [vmem:[%s5201_s13] ss:$0 sm:$0xff] }
 0x833   :  { %v4067_v36 = vpop.eup %4066  ;;  %v2728_v16 = vrot.slane %v2727_v15, 2 }
 0x834   :  { %v2629_v33 = vrot.slane %v2628_v14, 4  ;;  %v2555_v47 = vmul.f32 %v4067_v36, %v2547_v63  ;;  %v2626_v28 = vrot.slane %v2625_v55, 1  ;;  %v2732_v43 = vmax.f32 %v2714_v21, %v2715_v0 }
 0x835   :  { %v4069_v45 = vpop.eup %4068  ;;  %v2729_v51 = vmax.f32 %v2727_v15, %v2728_v16 }
 0x836   :  { %v2548_v22 = vmul.f32 %v4069_v45, %v4628_v54  ;;  %v2627_v56 = vadd.f32 %v2626_v28, %v2625_v55  ;;  %v2630_v13 = vadd.f32 %v2629_v33, %v2628_v14  ;;  %v2733_v42 = vrot.slane %v2732_v43, 4 }
 0x837   :  { %v4071_v4 = vpop.eup %4070  ;;  %v2730_v53 = vrot.slane %v2729_v51, 1  ;;  %v2716_v35 = vadd.f32 %v5149_v34, %v2555_v47 }
 0x838   :  { %v2556_v19 = vmul.f32 %v4071_v4, %v2548_v22  ;;  %v2631_v9 = vrot.slane %v2630_v13, 2  ;;  %v2665_v60 = vmul.f32 %v4065_v27, %v2627_v56  ;;  %v2734_v41 = vmax.f32 %v2732_v43, %v2733_v42 }
 0x839   :  { %v2731_v61 = vmax.f32 %v2729_v51, %v2730_v53  ;;  %v4073_v48 = vpop.eup %4072 }
 0x83a   :  { %v2635_v38 = vadd.f32 %v2556_v19, %v2555_v47  ;;  %v2717_v7 = vadd.f32 %v5156_v49, %v2556_v19  ;;  %v2632_v10 = vadd.f32 %v2631_v9, %v2630_v13  ;;  %v2735_v46 = vrot.slane %v2734_v41, 2  ;;  %v4075_v12 = vpop.eup %4074 }
 0x83b   :  { %v2747_v54 = vadd.f32 %v2731_v61, %v2665_v60 }
 0x83c   :  { %v2633_v29 = vrot.slane %v2632_v10, 1  ;;  %v2636_v37 = vrot.slane %v2635_v38, 4  ;;  %v2739_v50 = vmax.f32 %v2716_v35, %v2717_v7  ;;  %v2736_v52 = vmax.f32 %v2734_v41, %v2735_v46 }
 0x83d   :  { %v2778_v58 = vsel %vm2777_vm4, %v2747_v54, %v2746_v57 }
 0x83e   :  { %v2634_v3 = vadd.f32 %v2633_v29, %v2632_v10  ;;  %v2637_v20 = vadd.f32 %v2636_v37, %v2635_v38  ;;  %v2740_v1 = vrot.slane %v2739_v50, 4  ;;  %v2737_v32 = vrot.slane %v2736_v52, 1 }
 0x840   :  { %v2638_v44 = vrot.slane %v2637_v20, 2  ;;  %v2667_v18 = vmul.f32 %v4073_v48, %v2634_v3  ;;  %v2741_v34 = vmax.f32 %v2739_v50, %v2740_v1  ;;  %v2738_v30 = vmax.f32 %v2736_v52, %v2737_v32 }
 0x842   :  { %v2639_v24 = vadd.f32 %v2638_v44, %v2637_v20  ;;  %v2742_v49 = vrot.slane %v2741_v34, 2  ;;  %v2748_v62 = vadd.f32 %v2738_v30, %v2667_v18 }
 0x844   :  { %v2640_v2 = vrot.slane %v2639_v24, 1  ;;  %v2743_v59 = vmax.f32 %v2741_v34, %v2742_v49  ;;  %v2780_v31 = vsel %vm2779_vm5, %v2748_v62, %v2778_v58 }
 0x846   :  { %v2641_v17 = vadd.f32 %v2640_v2, %v2639_v24  ;;  %v2744_v25 = vrot.slane %v2743_v59, 1 }
 0x848   :  { %v2669_v6 = vmul.f32 %v4075_v12, %v2641_v17  ;;  %v2745_v26 = vmax.f32 %v2743_v59, %v2744_v25 }
 0x84a   :  { %v2749_v8 = vadd.f32 %v2745_v26, %v2669_v6 }
 0x84c   :  { %v2782_v40 = vsel %vm2781_vm6, %v2749_v8, %v2780_v31 }
 0x84d   :  { %3390 = vmatmul.mubr.f32.vlgmr.msra.gmra.mrb[56].mxu0 %v2782_v40 }
 0x920   :  { %v2850_v23 = vpop.f32.mrb[56].mxu0 }
 0x921   :  { %v2851_v21 = vadd.f32 %v2947_v11, %v2850_v23  ;;  %v3391_v15 = vpop.f32.mrb[57].mxu0 }
 0x923   :  { %2854 = vst [vmem:[#allocation14] sm:$0xf] %v2851_v21 }
 0x924   :  { %4241 = shalt.err (!%p4238_p4)
}
 0x925   :  { %s4242_s19 = scalar_lea.hbm %s5202_s14, 64 }
 0x926   :  { %p4243_p5 = scmp.ne.s32.totalorder %s5202_s14, %s4242_s19  ;;  %p4246_p6 = scmp.lt.u32.totalorder %s4242_s19, %s5202_s14 }
 0x928   :  { %p4248_p7 = pnand %p4246_p6, %p4243_p5 }
 0x92a   :  { %4251 = shalt.err (!%p4248_p7)
}
 0x92b   :  { %2864 = dma.vmem_to_hbm [thread:$0]  %s2862_s2, 64, %s5202_s14, [#allocation4]  }
 0x92c   :  { %4260 = dma.done.wait [#allocation4], 64  }
 0x92d   :  { %4261 = vsyncadd [#allocation4], 4294967232 }
 0x92e   :  { %2868 = vsyncpa [#allocation3], 1 }
 0x92f   :  { %2869 = vsyncpa [#allocation6], 1 }
 0x930   :  { %2870 = vsyncpa [#allocation9], 1 }
 0x931   :  { %2871 = vsyncpa [#allocation12], 1 }
 0x932   :  { %2872 = vsyncpa [#allocation4], 1 }

// kernel: tpu_custom_call.1
= control target key start
LH: loop header
LB: loop body
LE: loop exit
PB: predicated region body
PF: predicated region fallthrough
CT: control target
= control target key end

     0   :  { %19 = vsyncpa [#allocation3], 0  ;;  %s5188_s0 = inlined_call_operand.vmem [shape: f32[4,16,32], index: 0, kind: input, shape index: {}]   ;;  %s5189_s1 = inlined_call_operand.vmem [shape: f32[4,16,1], index: 1, kind: input, shape index: {}]   ;;  %s5190_s2 = inlined_call_operand.hbm [shape: f32[4,16,16], index: 2, kind: input, shape index: {}]   ;;  %s5191_s3 = inlined_call_operand.hbm [shape: f32[32,128], index: 3, kind: input, shape index: {}]   ;;  %s5192_s4 = inlined_call_operand.vmem [shape: f32[1,128], index: 4, kind: input, shape index: {}]   ;;  %s5193_s5 = inlined_call_operand.hbm [shape: f32[128,384], index: 5, kind: input, shape index: {}]   ;;  %s5194_s6 = inlined_call_operand.hbm [shape: f32[128,256], index: 6, kind: input, shape index: {}]   ;;  %s5195_s7 = inlined_call_operand.hbm [shape: f32[128,128], index: 7, kind: input, shape index: {}]   ;;  %s5196_s8 = inlined_call_operand.vmem [shape: f32[1,256], index: 8, kind: input, shape index: {}]   ;;  %s5197_s9 = inlined_call_operand.vmem [shape: f32[1,128], index: 9, kind: input, shape index: {}]   ;;  %s5198_s10 = inlined_call_operand.hbm [shape: f32[128,256], index: 10, kind: input, shape index: {}]   ;;  %s5199_s11 = inlined_call_operand.vmem [shape: f32[1,256], index: 11, kind: input, shape index: {}]   ;;  %s5200_s12 = inlined_call_operand.hbm [shape: f32[128,128], index: 12, kind: input, shape index: {}]   ;;  %s5201_s13 = inlined_call_operand.vmem [shape: f32[1,128], index: 13, kind: input, shape index: {}]   ;;  %s5202_s14 = inlined_call_operand.hbm [shape: f32[1,4,128], index: 14, kind: output, shape index: {}]  }
   0x1   :  { %20 = vsyncpa [#allocation6], 0 }
   0x2   :  { %21 = vsyncpa [#allocation9], 0 }
   0x3   :  { %22 = vsyncpa [#allocation12], 0 }
   0x4   :  { %23 = vsyncpa [#allocation4], 0  ;;  %s4262_s29 = smov [#allocation5]   ;;  %s4263_s15 = smov [#allocation8]  }
   0x5   :  { %s45_s30 = sshll.u32 %s4262_s29, 4  ;;  %s71_s16 = sshll.u32 %s4263_s15, 4  ;;  %s46_s30 = int_to_ptr.vmem [resolvable:$true] %s45_s30  ;;  %s4355_s16 = int_to_ptr.vmem [resolvable:$true] %s71_s16 }
   0x6   :  { %s4076_s19 = scalar_lea.hbm %s5191_s3, 512 }
   0x7   :  { %p4077_p0 = scmp.ne.s32.totalorder %s5191_s3, %s4076_s19  ;;  %p4080_p1 = scmp.lt.u32.totalorder %s4076_s19, %s5191_s3 }
   0x9   :  { %p4082_p2 = pnand %p4080_p1, %p4077_p0 }
   0xb   :  { %4085 = shalt.err (!%p4082_p2)
}
   0xc   :  { %s4086_s24 = scalar_lea.vmem %s46_s30, 512  ;;  %p4091_p4 = scmp.lt.s32.totalorder %s46_s30, %s46_s30 }
   0xd   :  { %p4087_p3 = scmp.ne.s32.totalorder %s46_s30, %s4086_s24  ;;  %p4092_p5 = scmp.lt.s32.totalorder %s4086_s24, %s4086_s24 }
   0xf   :  { %p4093_p6 = por %p4092_p5, %p4091_p4 }
  0x11   :  { %p4094_p7 = pnand %p4093_p6, %p4087_p3 }
  0x13   :  { %4097 = shalt.err (!%p4094_p7)
}
  0x14   :  { %s5203_s25 = smov 128   ;;  %s4265_s26 = smov 8  }
  0x15   :  { %51 = dma.hbm_to_vmem [thread:$0]  %s5191_s3, 512, %s46_s30, [#allocation6], %s5203_s25, %s5203_s25, %s4265_s26  }
  0x16   :  { %s4098_s17 = scalar_lea.hbm %s5194_s6, 4096 }
  0x17   :  { %p4099_p8 = scmp.ne.s32.totalorder %s5194_s6, %s4098_s17  ;;  %p4102_p9 = scmp.lt.u32.totalorder %s4098_s17, %s5194_s6 }
  0x19   :  { %p4104_p10 = pnand %p4102_p9, %p4099_p8 }
  0x1b   :  { %4107 = shalt.err (!%p4104_p10)
}
  0x1c   :  { %s4108_s22 = scalar_lea.vmem %s4355_s16, 4096  ;;  %p4113_p12 = scmp.lt.s32.totalorder %s4355_s16, %s4355_s16 }
  0x1d   :  { %p4109_p11 = scmp.ne.s32.totalorder %s4355_s16, %s4108_s22  ;;  %p4114_p13 = scmp.lt.s32.totalorder %s4108_s22, %s4108_s22 }
  0x1f   :  { %p4115_p0 = por %p4114_p13, %p4113_p12 }
  0x21   :  { %p4116_p1 = pnand %p4115_p0, %p4109_p11 }
  0x23   :  { %4119 = shalt.err (!%p4116_p1)
}
  0x24   :  { %s4266_s3 = smov 256   ;;  %s4267_s30 = smov 16  }
  0x25   :  { %77 = dma.hbm_to_vmem [thread:$0]  %s5194_s6, 4096, %s4355_s16, [#allocation9], %s4266_s3, %s4266_s3, %s4267_s30  }
  0x26   :  { %s4268_s27 = smov [#allocation11]   ;;  %s4269_s29 = smov [#allocation2]  }
  0x27   :  { %s99_s28 = sshll.u32 %s4268_s27, 4  ;;  %s33_s15 = sshll.u32 %s4269_s29, 4  ;;  %s100_s28 = int_to_ptr.vmem [resolvable:$true] %s99_s28  ;;  %s4389_s15 = int_to_ptr.vmem [resolvable:$true] %s33_s15 }
  0x28   :  { %s4120_s19 = scalar_lea.hbm %s5198_s10, 4096 }
  0x29   :  { %p4121_p2 = scmp.ne.s32.totalorder %s5198_s10, %s4120_s19  ;;  %p4124_p3 = scmp.lt.u32.totalorder %s4120_s19, %s5198_s10 }
  0x2b   :  { %p4126_p4 = pnand %p4124_p3, %p4121_p2 }
  0x2d   :  { %4129 = shalt.err (!%p4126_p4)
}
  0x2e   :  { %s4130_s6 = scalar_lea.vmem %s100_s28, 4096  ;;  %p4135_p6 = scmp.lt.s32.totalorder %s100_s28, %s100_s28 }
  0x2f   :  { %p4131_p5 = scmp.ne.s32.totalorder %s100_s28, %s4130_s6  ;;  %p4136_p7 = scmp.lt.s32.totalorder %s4130_s6, %s4130_s6 }
  0x31   :  { %p4137_p8 = por %p4136_p7, %p4135_p6 }
  0x33   :  { %p4138_p9 = pnand %p4137_p8, %p4131_p5 }
  0x35   :  { %4141 = shalt.err (!%p4138_p9)
}
  0x36   :  { %105 = dma.hbm_to_vmem [thread:$0]  %s5198_s10, 4096, %s100_s28, [#allocation12], %s4266_s3, %s4266_s3, %s4267_s30  }
  0x37   :  { %s4142_s29 = scalar_lea.hbm %s5190_s2, 1024 }
  0x38   :  { %p4143_p10 = scmp.ne.s32.totalorder %s5190_s2, %s4142_s29  ;;  %p4146_p11 = scmp.lt.u32.totalorder %s4142_s29, %s5190_s2 }
  0x3a   :  { %p4148_p12 = pnand %p4146_p11, %p4143_p10 }
  0x3c   :  { %4151 = shalt.err (!%p4148_p12)
}
  0x3d   :  { %s4152_s20 = scalar_lea.vmem %s4389_s15, 1024  ;;  %p4157_p0 = scmp.lt.s32.totalorder %s4389_s15, %s4389_s15 }
  0x3e   :  { %p4153_p13 = scmp.ne.s32.totalorder %s4389_s15, %s4152_s20  ;;  %p4158_p1 = scmp.lt.s32.totalorder %s4152_s20, %s4152_s20 }
  0x40   :  { %p4159_p2 = por %p4158_p1, %p4157_p0 }
  0x42   :  { %p4160_p3 = pnand %p4159_p2, %p4153_p13 }
  0x44   :  { %4163 = shalt.err (!%p4160_p3)
}
  0x45   :  { %s5232_s10 = smov 128   ;;  %s4270_s28 = smov [#allocation7]  }
  0x46   :  { %39 = dma.hbm_to_vmem [thread:$0]  %s5190_s2, 1024, %s4389_s15, [#allocation3], %s5232_s10, %s5232_s10, %s4265_s26  }
  0x47   :  { %s59_s21 = sshll.u32 %s4270_s28, 4  ;;  %s4164_s16 = scalar_lea.hbm %s5193_s5, 6144  ;;  %s60_s21 = int_to_ptr.vmem [resolvable:$true] %s59_s21 }
  0x48   :  { %p4165_p4 = scmp.ne.s32.totalorder %s5193_s5, %s4164_s16  ;;  %p4168_p5 = scmp.lt.u32.totalorder %s4164_s16, %s5193_s5 }
  0x4a   :  { %p4170_p6 = pnand %p4168_p5, %p4165_p4 }
  0x4c   :  { %4173 = shalt.err (!%p4170_p6)
}
  0x4d   :  { %s4174_s17 = scalar_lea.vmem %s60_s21, 6144  ;;  %p4179_p8 = scmp.lt.s32.totalorder %s60_s21, %s60_s21 }
  0x4e   :  { %p4175_p7 = scmp.ne.s32.totalorder %s60_s21, %s4174_s17  ;;  %p4180_p9 = scmp.lt.s32.totalorder %s4174_s17, %s4174_s17 }
  0x50   :  { %p4181_p10 = por %p4180_p9, %p4179_p8 }
  0x52   :  { %p4182_p11 = pnand %p4181_p10, %p4175_p7 }
  0x54   :  { %4185 = shalt.err (!%p4182_p11)
}
  0x55   :  { %s4271_s2 = smov 384   ;;  %s4272_s15 = smov 24  }
  0x56   :  { %65 = dma.hbm_to_vmem [thread:$0]  %s5193_s5, 6144, %s60_s21, [#allocation6], %s4271_s2, %s4271_s2, %s4272_s15  }
  0x57   :  { %s4273_s19 = smov [#allocation10]   ;;  %s4274_s3 = smov [#allocation13]  }
  0x58   :  { %s83_s20 = sshll.u32 %s4273_s19, 4  ;;  %s113_s30 = sshll.u32 %s4274_s3, 4  ;;  %s84_s20 = int_to_ptr.vmem [resolvable:$true] %s83_s20  ;;  %s114_s30 = int_to_ptr.vmem [resolvable:$true] %s113_s30 }
  0x59   :  { %s4186_s6 = scalar_lea.hbm %s5195_s7, 2048 }
  0x5a   :  { %p4187_p12 = scmp.ne.s32.totalorder %s5195_s7, %s4186_s6  ;;  %p4190_p13 = scmp.lt.u32.totalorder %s4186_s6, %s5195_s7 }
  0x5c   :  { %p4192_p0 = pnand %p4190_p13, %p4187_p12 }
  0x5e   :  { %4195 = shalt.err (!%p4192_p0)
}
  0x5f   :  { %s4196_s5 = scalar_lea.vmem %s84_s20, 2048  ;;  %p4201_p2 = scmp.lt.s32.totalorder %s84_s20, %s84_s20 }
  0x60   :  { %p4197_p1 = scmp.ne.s32.totalorder %s84_s20, %s4196_s5  ;;  %p4202_p3 = scmp.lt.s32.totalorder %s4196_s5, %s4196_s5 }
  0x62   :  { %p4203_p4 = por %p4202_p3, %p4201_p2 }
  0x64   :  { %p4204_p5 = pnand %p4203_p4, %p4197_p1 }
  0x66   :  { %4207 = shalt.err (!%p4204_p5)
}
  0x67   :  { %89 = dma.hbm_to_vmem [thread:$0]  %s5195_s7, 2048, %s84_s20, [#allocation9], %s5232_s10, %s5232_s10, %s4265_s26  }
  0x68   :  { %s4208_s15 = scalar_lea.hbm %s5200_s12, 2048 }
  0x69   :  { %p4209_p6 = scmp.ne.s32.totalorder %s5200_s12, %s4208_s15  ;;  %p4212_p7 = scmp.lt.u32.totalorder %s4208_s15, %s5200_s12 }
  0x6b   :  { %p4214_p8 = pnand %p4212_p7, %p4209_p6 }
  0x6d   :  { %4217 = shalt.err (!%p4214_p8)
}
  0x6e   :  { %s4218_s28 = scalar_lea.vmem %s114_s30, 2048  ;;  %p4223_p10 = scmp.lt.s32.totalorder %s114_s30, %s114_s30 }
  0x6f   :  { %p4219_p9 = scmp.ne.s32.totalorder %s114_s30, %s4218_s28  ;;  %p4224_p11 = scmp.lt.s32.totalorder %s4218_s28, %s4218_s28 }
  0x71   :  { %p4225_p12 = por %p4224_p11, %p4223_p10 }
  0x73   :  { %p4226_p13 = pnand %p4225_p12, %p4219_p9 }
  0x75   :  { %4229 = shalt.err (!%p4226_p13)
}
  0x76   :  { %119 = dma.hbm_to_vmem [thread:$0]  %s5200_s12, 2048, %s114_s30, [#allocation12], %s5232_s10, %s5232_s10, %s4265_s26  }
  0x77   :  { %4252 = dma.done.wait [#allocation3], 1024  }
  0x78   :  { %4253 = vsyncadd [#allocation3], 4294966272 }
  0x79   :  { %4254 = dma.done.wait [#allocation6], 6656  }
  0x7a   :  { %4255 = vsyncadd [#allocation6], 4294960640 }
  0x7b   :  { %4256 = dma.done.wait [#allocation9], 6144  }
  0x7c   :  { %4257 = vsyncadd [#allocation9], 4294961152 }
  0x7d   :  { %4258 = dma.done.wait [#allocation12], 6144  }
  0x7e   :  { %4259 = vsyncadd [#allocation12], 4294961152  ;;  %v4275_v0 = vmov 0   ;;  %vm237_vm0 = vcmask 261120   ;;  %v226_v1 = vld [vmem:[#allocation5] sm:$0xff]  ;;  %v227_v2 = vld [vmem:[#allocation5 + $0x8] sm:$0xff] }
  0x7f   :  { %3842 = vset.pattern.permute.xlu0 %v4275_v0  ;;  %3843 = vset.pattern.permute.xlu1 %v4275_v0  ;;  %v228_v3 = vld [vmem:[#allocation5 + $0x10] sm:$0xff]  ;;  %v3392_v4 = vpack.c.bf16 %v227_v2, %v226_v1  ;;  %v229_v5 = vld [vmem:[#allocation5 + $0x18] sm:$0xff]  ;;  %v143_v6 = vld [vmem:[%s5188_s0] sm:$0xff]  ;;  %vm2557_vm1 = vcmask 7168   ;;  %vm479_vm2 = vcmask 130048   ;;  %vm4278_vm3 = vmmov 0  }
  0x80   :  { %v3396_v7 = vpack.c.bf16 %v229_v5, %v228_v3  ;;  %3113 = vmatprep.mubr.msk.f32.mxu0 %vm237_vm0, %v143_v6  ;;  %v151_v8 = vld [vmem:[%s5189_s1] sm:$0xff]  ;;  %v152_v9 = vld [vmem:[%s5189_s1 + $0x8] sm:$0xff]  ;;  %v153_v10 = vld [vmem:[%s5189_s1 + $0x10] sm:$0xff]  ;;  %vm2777_vm4 = vcmask 1041409   ;;  %vm2779_vm5 = vcmask 1042434   ;;  %vm2781_vm6 = vcmask 1043459  }
  0x81   :  { %3393 = vmatprep.subr.bf16.mxu0 %v3392_v4  ;;  %169 = vperm.xlu0 %3842, %v151_v8   ;;  %v2558_v11 = vsel %vm2557_vm1, %v151_v8, 0.0  ;;  %v2559_v12 = vsel %vm2557_vm1, %v152_v9, 0.0  ;;  %v155_v13 = vld [vmem:[%s5189_s1 + $0x20] sm:$0xff]  ;;  %v2567_v15 = vsel %vm2557_vm1, %v153_v10, 0.0  ;;  %v154_v17 = vld [vmem:[%s5189_s1 + $0x18] sm:$0xff]  ;;  %v157_v18 = vld [vmem:[%s5189_s1 + $0x30] sm:$0xff] }
  0x82   :  { %3395 = vmatpush3.bf16.msra.mxu0 %v3392_v4  ;;  %v2560_v14 = vadd.f32 %v2559_v12, %v2558_v11  ;;  %179 = vperm.xlu1 %3843, %v153_v10   ;;  %v2576_v16 = vsel %vm2557_vm1, %v155_v13, 0.0  ;;  %v2568_v19 = vsel %vm2557_vm1, %v154_v17, 0.0  ;;  %v2585_v20 = vsel %vm2557_vm1, %v157_v18, 0.0  ;;  %v156_v21 = vld [vmem:[%s5189_s1 + $0x28] sm:$0xff]  ;;  %v158_v25 = vld [vmem:[%s5189_s1 + $0x38] sm:$0xff]  ;;  %v145_v26 = vld [vmem:[%s5188_s0 + $0x10] sm:$0xff] }
  0x83   :  { %3397 = vmatprep.subr.bf16.mxu0 %v3396_v7  ;;  %v144_v22 = vld [vmem:[%s5188_s0 + $0x8] sm:$0xff]  ;;  %v2569_v23 = vadd.f32 %v2568_v19, %v2567_v15  ;;  %v2577_v24 = vsel %vm2557_vm1, %v156_v21, 0.0  ;;  %v2586_v29 = vsel %vm2557_vm1, %v158_v25, 0.0  ;;  %v146_v32 = vld [vmem:[%s5188_s0 + $0x18] sm:$0xff]  ;;  %v147_v33 = vld [vmem:[%s5188_s0 + $0x20] sm:$0xff]  ;;  %v2939_v34 = vadd.f32 -1.0, %v151_v8 }
  0x84   :  { %v2561_v27 = vrot.slane %v2560_v14, 4  ;;  %v2578_v28 = vadd.f32 %v2577_v24, %v2576_v16  ;;  %v2587_v31 = vadd.f32 %v2586_v29, %v2585_v20  ;;  %v2940_v37 = vadd.f32 -1.0, %v152_v9  ;;  %v148_v40 = vld [vmem:[%s5188_s0 + $0x28] sm:$0xff]  ;;  %v149_v41 = vld [vmem:[%s5188_s0 + $0x30] sm:$0xff]  ;;  %v150_v50 = vld [vmem:[%s5188_s0 + $0x38] sm:$0xff]  ;;  %s4279_s17 = smov [#allocation14]  }
  0x85   :  { %174 = vperm.xlu0 %3842, %v152_v9   ;;  %v2570_v30 = vrot.slane %v2569_v23, 4  ;;  %v2941_v42 = vadd.f32 -1.0, %v153_v10  ;;  %v2606_v44 = vmul.f32 1e+09, %v2939_v34  ;;  %v2942_v46 = vadd.f32 -1.0, %v154_v17  ;;  %v4529_v15 = vld [vmem:[#allocation2] sm:$0xff] }
  0x86   :  { %3399 = vmatpush3.bf16.msra.mxu0 %v3396_v7  ;;  %184 = vperm.xlu1 %3843, %v154_v17   ;;  %v2562_v35 = vadd.f32 %v2561_v27, %v2560_v14  ;;  %v2579_v36 = vrot.slane %v2578_v28, 4  ;;  %v2588_v39 = vrot.slane %v2587_v31, 4  ;;  %v2607_v48 = vmul.f32 1e+09, %v2940_v37  ;;  %v384_v16 = vld [vmem:[#allocation7 + $0x8] sm:$0xff]  ;;  %v387_v17 = vld [vmem:[#allocation7 + $0x20] sm:$0xff] }
  0x87   :  { %v2571_v38 = vadd.f32 %v2570_v30, %v2569_v23  ;;  %v2943_v51 = vadd.f32 -1.0, %v155_v13  ;;  %v2608_v52 = vmul.f32 1e+09, %v2941_v42  ;;  %v2944_v55 = vadd.f32 -1.0, %v156_v21  ;;  %3129 = vmatprep.mubr.msk.f32.mxu1 %vm479_vm2, %v4529_v15  ;;  %v386_v20 = vld [vmem:[#allocation7 + $0x18] sm:$0xff]  ;;  %v393_v23 = vld [vmem:[#allocation7 + $0x50] sm:$0xff] }
  0x88   :  { %v2580_v43 = vadd.f32 %v2579_v36, %v2578_v28  ;;  %v2563_v45 = vrot.slane %v2562_v35, 2  ;;  %v2589_v47 = vadd.f32 %v2588_v39, %v2587_v31  ;;  %v2609_v56 = vmul.f32 1e+09, %v2942_v46  ;;  %v389_v24 = vld [vmem:[#allocation7 + $0x30] sm:$0xff]  ;;  %v396_v28 = vld [vmem:[#allocation7 + $0x68] sm:$0xff]  ;;  %v399_v29 = vld [vmem:[#allocation7 + $0x80] sm:$0xff] }
  0x89   :  { %3114 = vmatmul.mubr.msk.f32.vlgmr.msra.gmra.mrb[0].mxu0 %vm237_vm0, %v144_v22  ;;  %189 = vperm.xlu0 %3842, %v155_v13   ;;  %v2572_v49 = vrot.slane %v2571_v38, 2  ;;  %v2945_v59 = vadd.f32 -1.0, %v157_v18  ;;  %v2610_v60 = vmul.f32 1e+09, %v2943_v51  ;;  %v2946_v63 = vadd.f32 -1.0, %v158_v25  ;;  %v390_v22 = vld [vmem:[#allocation7 + $0x38] sm:$0xff] }
  0x8a   :  { %3116 = vmatprep.mubr.msk.f32.mxu0 %vm237_vm0, %v145_v26  ;;  %194 = vperm.xlu1 %3843, %v156_v21   ;;  %v2564_v53 = vadd.f32 %v2563_v45, %v2562_v35  ;;  %v2581_v54 = vrot.slane %v2580_v43, 2  ;;  %v2590_v58 = vrot.slane %v2589_v47, 2  ;;  %v2611_v0 = vmul.f32 1e+09, %v2944_v55  ;;  %v392_v26 = vld [vmem:[#allocation7 + $0x48] sm:$0xff]  ;;  %v395_v30 = vld [vmem:[#allocation7 + $0x60] sm:$0xff] }
  0x8b   :  { %v2573_v57 = vadd.f32 %v2572_v49, %v2571_v38  ;;  %v2612_v3 = vmul.f32 1e+09, %v2945_v59  ;;  %v2613_v6 = vmul.f32 1e+09, %v2946_v63  ;;  %v4533_v19 = vpack.c.bf16 %v387_v17, %v384_v16  ;;  %v402_v34 = vld [vmem:[#allocation7 + $0x98] sm:$0xff]  ;;  %v405_v35 = vld [vmem:[#allocation7 + $0xb0] sm:$0xff] }
  0x8c   :  { %v2565_v61 = vrot.slane %v2564_v53, 1  ;;  %v2582_v62 = vadd.f32 %v2581_v54, %v2580_v43  ;;  %v2591_v2 = vadd.f32 %v2590_v58, %v2589_v47  ;;  %v4541_v27 = vpack.c.bf16 %v392_v26, %v389_v24  ;;  %v401_v36 = vld [vmem:[#allocation7 + $0x90] sm:$0xff]  ;;  %v404_v38 = vld [vmem:[#allocation7 + $0xa8] sm:$0xff]  ;;  %v407_v42 = vld [vmem:[#allocation7 + $0xc0] sm:$0xff]  ;;  %s2861_s2 = sshll.u32 %s4279_s17, 4  ;;  %s2862_s2 = int_to_ptr.vmem [resolvable:$true] %s2861_s2 }
  0x8d   :  { %3117 = vmatmul.mubr.msk.f32.gmra.mrb[2].mxu0 %vm237_vm0, %v146_v32  ;;  %199 = vperm.xlu0 %3842, %v157_v18   ;;  %v2574_v1 = vrot.slane %v2573_v57, 1  ;;  %v383_v18 = vld [vmem:[#allocation7] sm:$0xff]  ;;  %v4544_v31 = vpack.c.bf16 %v399_v29, %v396_v28  ;;  %v398_v32 = vld [vmem:[#allocation7 + $0x78] sm:$0xff]  ;;  %v4550_v37 = vpack.c.bf16 %v405_v35, %v402_v34  ;;  %v4553_v39 = vpack.c.bf16 %v404_v38, %v401_v36  ;;  %v417_v47 = vld [vmem:[#allocation7 + $0x110] sm:$0xff]  ;;  %s4230_s15 = scalar_lea.vmem %s2862_s2, 64  ;;  %p4235_p1 = scmp.lt.s32.totalorder %s2862_s2, %s2862_s2 }
  0x8e   :  { %3119 = vmatprep.mubr.msk.f32.mxu0 %vm237_vm0, %v147_v33  ;;  %204 = vperm.xlu1 %3843, %v158_v25   ;;  %v2566_v4 = vadd.f32 %v2565_v61, %v2564_v53  ;;  %v2583_v5 = vrot.slane %v2582_v62, 1  ;;  %v2592_v8 = vrot.slane %v2591_v2, 1  ;;  %v4535_v21 = vpack.c.bf16 %v386_v20, %v383_v18  ;;  %v414_v46 = vld [vmem:[#allocation7 + $0xf8] sm:$0xff]  ;;  %v423_v53 = vld [vmem:[#allocation7 + $0x140] sm:$0xff]  ;;  %v429_v59 = vld [vmem:[#allocation7 + $0x170] sm:$0xff]  ;;  %p4231_p0 = scmp.ne.s32.totalorder %s2862_s2, %s4230_s15  ;;  %p4236_p2 = scmp.lt.s32.totalorder %s4230_s15, %s4230_s15 }
  0x8f   :  { %v2575_v7 = vadd.f32 %v2574_v1, %v2573_v57  ;;  %3417 = vmatprep.subr.bf16.mxu0 %v4533_v19  ;;  %v4538_v25 = vpack.c.bf16 %v393_v23, %v390_v22  ;;  %v4547_v33 = vpack.c.bf16 %v398_v32, %v395_v30  ;;  %v4562_v49 = vpack.c.bf16 %v417_v47, %v414_v46  ;;  %v419_v54 = vld [vmem:[#allocation7 + $0x120] sm:$0xff]  ;;  %v426_v58 = vld [vmem:[#allocation7 + $0x158] sm:$0xff]  ;;  %v4614_v46 = vld [vmem:[#allocation2 + $0x10] sm:$0xff] }
  0x90   :  { %v2594_v9 = vmax.f32 %v2566_v4, 1.0  ;;  %v2584_v10 = vadd.f32 %v2583_v5, %v2582_v62  ;;  %v2593_v12 = vadd.f32 %v2592_v8, %v2591_v2  ;;  %3419 = vmatpush1.bf16.msra.mxu0 %v4535_v21  ;;  %v4574_v61 = vpack.c.bf16 %v429_v59, %v426_v58  ;;  %v428_v62 = vld [vmem:[#allocation7 + $0x168] sm:$0xff]  ;;  %v4632_v58 = vld [vmem:[#allocation2 + $0x20] sm:$0xff]  ;;  %p4237_p3 = por %p4236_p2, %p4235_p1 }
  0x91   :  { %3120 = vmatmul.mubr.msk.f32.gmra.mrb[4].mxu0 %vm237_vm0, %v148_v40  ;;  %2672 = vperm.xlu0 %3842, %v2606_v44   ;;  %v2595_v11 = vmax.f32 %v2575_v7, 1.0  ;;  %v408_v40 = vld [vmem:[#allocation7 + $0xc8] sm:$0xff]  ;;  %v410_v44 = vld [vmem:[#allocation7 + $0xd8] sm:$0xff] }
  0x92   :  { %3122 = vmatprep.mubr.msk.f32.mxu0 %vm237_vm0, %v149_v41  ;;  %2677 = vperm.xlu1 %3843, %v2607_v48   ;;  %v2596_v13 = vmax.f32 %v2584_v10, 1.0  ;;  %v2597_v14 = vmax.f32 %v2593_v12, 1.0  ;;  %v411_v41 = vld [vmem:[#allocation7 + $0xe0] sm:$0xff]  ;;  %v4559_v45 = vpack.c.bf16 %v410_v44, %v407_v42  ;;  %v413_v48 = vld [vmem:[#allocation7 + $0xf0] sm:$0xff]  ;;  %p4238_p4 = pnand %p4237_p3, %p4231_p0 }
  0x93   :  { %3421 = vmatprep.subr.bf16.mxu0 %v4538_v25  ;;  %v4556_v43 = vpack.c.bf16 %v411_v41, %v408_v40  ;;  %v4610_v41 = vld [vmem:[#allocation2 + $0x8] sm:$0xff] }
  0x94   :  { %3423 = vmatpush1.bf16.msra.mxu0 %v4541_v27 }
  0x95   :  { %3123 = vmatmul.mubr.msk.f32.gmra.mrb[6].mxu0 %vm237_vm0, %v150_v50  ;;  %2682 = vperm.xlu0 %3842, %v2608_v52   ;;  %v416_v50 = vld [vmem:[#allocation7 + $0x108] sm:$0xff] }
  0x96   :  { %2687 = vperm.xlu1 %3843, %v2609_v56   ;;  %3425 = vmatprep.subr.bf16.mxu0 %v4544_v31  ;;  %v4565_v51 = vpack.c.bf16 %v416_v50, %v413_v48  ;;  %v420_v52 = vld [vmem:[#allocation7 + $0x128] sm:$0xff]  ;;  %v422_v56 = vld [vmem:[#allocation7 + $0x138] sm:$0xff] }
  0x97   :  { %v4568_v55 = vpack.c.bf16 %v423_v53, %v420_v52  ;;  %v4571_v57 = vpack.c.bf16 %v422_v56, %v419_v54  ;;  %v4626_v52 = vld [vmem:[#allocation2 + $0x18] sm:$0xff] }
  0x98   :  { %3427 = vmatpush1.bf16.msra.mxu0 %v4547_v33 }
  0x99   :  { %2692 = vperm.xlu0 %3842, %v2610_v60   ;;  %3429 = vmatprep.subr.bf16.mxu0 %v4550_v37  ;;  %v425_v60 = vld [vmem:[#allocation7 + $0x150] sm:$0xff] }
  0x9a   :  { %2697 = vperm.xlu1 %3843, %v2611_v0   ;;  %v4577_v63 = vpack.c.bf16 %v428_v62, %v425_v60  ;;  %v2874_v0 = vld [vmem:[%s5192_s4] ss:$0 sm:$0xff] }
  0x9c   :  { %3431 = vmatpush1.bf16.msra.mxu0 %v4553_v39 }
  0x9d   :  { %2702 = vperm.xlu0 %3842, %v2612_v3   ;;  %3433 = vmatprep.subr.bf16.mxu0 %v4556_v43 }
  0x9e   :  { %2707 = vperm.xlu1 %3843, %v2613_v6  }
  0xa0   :  { %3435 = vmatpush1.bf16.msra.mxu0 %v4559_v45 }
  0xa1   :  { %2644 = vperm.xlu0 %3842, %v2594_v9   ;;  %3437 = vmatprep.subr.bf16.mxu0 %v4562_v49 }
  0xa2   :  { %2649 = vperm.xlu1 %3843, %v2595_v11  }
  0xa4   :  { %3439 = vmatpush1.bf16.msra.mxu0 %v4565_v51 }
  0xa5   :  { %2654 = vperm.xlu0 %3842, %v2596_v13   ;;  %3441 = vmatprep.subr.bf16.mxu0 %v4568_v55 }
  0xa6   :  { %2659 = vperm.xlu1 %3843, %v2597_v14  }
  0xa8   :  { %3443 = vmatpush1.bf16.msra.mxu0 %v4571_v57 }
  0xa9   :  { %3445 = vmatprep.subr.bf16.mxu0 %v4574_v61 }
  0xac   :  { %3447 = vmatpush1.bf16.msra.mxu0 %v4577_v63 }
 0x100   :  { %v4584_v8 = vpop.permute.xlu0 %169 }
 0x101   :  { %v4586_v10 = vpop.permute.xlu1 %179 }
 0x104   :  { %v4588_v16 = vpop.permute.xlu0 %174 }
 0x105   :  { %v4590_v20 = vpop.permute.xlu1 %184 }
 0x108   :  { %v4608_v40 = vpop.permute.xlu0 %189 }
 0x109   :  { %v4603_v36 = vpop.permute.xlu1 %194 }
 0x10c   :  { %v4634_v60 = vpop.permute.xlu0 %199 }
 0x10d   :  { %v4628_v54 = vpop.permute.xlu1 %204 }
 0x15c   :  { %v3115_v1 = vpop.f32.mrb[0].mxu0 }
 0x15d   :  { %v334_v2 = vadd.f32 %v3115_v1, %v2874_v0  ;;  %v328_v3 = vpop.f32.mrb[1].mxu0  ;;  %v388_v1 = vld [vmem:[#allocation7 + $0x28] sm:$0xff] }
 0x15e   :  { %v329_v4 = vadd.f32 %v2874_v0, %v328_v3  ;;  %v4646_v3 = vld [vmem:[#allocation2 + $0x28] sm:$0xff] }
 0x15f   :  { %3844 = vtanh.f32 %v334_v2 }
 0x160   :  { %3846 = vtanh.f32 %v329_v4  ;;  %v3118_v5 = vpop.f32.mrb[2].mxu0 }
 0x161   :  { %v344_v6 = vadd.f32 %v3118_v5, %v2874_v0  ;;  %v338_v7 = vpop.f32.mrb[3].mxu0  ;;  %v4650_v5 = vld [vmem:[#allocation2 + $0x30] sm:$0xff] }
 0x162   :  { %v339_v9 = vadd.f32 %v2874_v0, %v338_v7  ;;  %v391_v7 = vld [vmem:[#allocation7 + $0x40] sm:$0xff] }
 0x163   :  { %3848 = vtanh.f32 %v344_v6 }
 0x164   :  { %3850 = vtanh.f32 %v339_v9  ;;  %v3121_v11 = vpop.f32.mrb[4].mxu0  ;;  %v394_v9 = vld [vmem:[#allocation7 + $0x58] sm:$0xff] }
 0x165   :  { %v354_v12 = vadd.f32 %v3121_v11, %v2874_v0  ;;  %v348_v13 = vpop.f32.mrb[5].mxu0  ;;  %v4658_v11 = vld [vmem:[#allocation2 + $0x38] sm:$0xff] }
 0x166   :  { %v349_v14 = vadd.f32 %v2874_v0, %v348_v13  ;;  %v397_v13 = vld [vmem:[#allocation7 + $0x70] sm:$0xff] }
 0x167   :  { %3852 = vtanh.f32 %v354_v12  ;;  %v4661_v12 = vpack.c.bf16 %v394_v9, %v391_v7  ;;  %v5221_v9 = vmov 0.0  }
 0x168   :  { %3854 = vtanh.f32 %v349_v14  ;;  %v3124_v17 = vpop.f32.mrb[6].mxu0  ;;  %v400_v14 = vld [vmem:[#allocation7 + $0x88] sm:$0xff]  ;;  %868 = vmatprep.mubr.f32.mxu0 %v5221_v9 }
 0x169   :  { %v3845_v18 = vpop.eup %3844  ;;  %v364_v22 = vadd.f32 %v3124_v17, %v2874_v0  ;;  %v358_v23 = vpop.f32.mrb[7].mxu0  ;;  %v4667_v17 = vpack.c.bf16 %v400_v14, %v397_v13  ;;  %v431_v13 = vld [vmem:[#allocation8] sm:$0xff]  ;;  %v433_v14 = vld [vmem:[#allocation8 + $0x10] sm:$0xff] }
 0x16a   :  { %v3847_v24 = vpop.eup %3846  ;;  %v4593_v26 = vmul.f32 %v3845_v18, %v4588_v16  ;;  %v359_v28 = vadd.f32 %v2874_v0, %v358_v23  ;;  %v385_v0 = vld [vmem:[#allocation7 + $0x10] sm:$0xff]  ;;  %v403_v18 = vld [vmem:[#allocation7 + $0xa0] sm:$0xff] }
 0x16b   :  { %v4596_v29 = vmul.f32 %v3847_v24, %v4584_v8  ;;  %3856 = vtanh.f32 %v364_v22  ;;  %v4652_v6 = vpack.c.bf16 %v388_v1, %v385_v0  ;;  %v406_v22 = vld [vmem:[#allocation7 + $0xb8] sm:$0xff]  ;;  %v409_v24 = vld [vmem:[#allocation7 + $0xd0] sm:$0xff]  ;;  %v432_v1 = vld [vmem:[#allocation8 + $0x8] sm:$0xff] }
 0x16c   :  { %3858 = vtanh.f32 %v359_v28  ;;  %v4671_v23 = vpack.c.bf16 %v406_v22, %v403_v18  ;;  %v412_v28 = vld [vmem:[#allocation7 + $0xe8] sm:$0xff]  ;;  %v438_v22 = vld [vmem:[#allocation8 + $0x38] sm:$0xff] }
 0x16d   :  { %v3849_v30 = vpop.eup %3848  ;;  %v3400_v32 = vpack.c.bf16 %v4593_v26, %v4596_v29  ;;  %v436_v18 = vld [vmem:[#allocation8 + $0x28] sm:$0xff] }
 0x16e   :  { %v3851_v34 = vpop.eup %3850  ;;  %v4601_v35 = vmul.f32 %v3849_v30, %v4590_v20  ;;  %v4675_v30 = vpack.c.bf16 %v412_v28, %v409_v24  ;;  %v4696_v24 = vpack.c.bf16 %v433_v14, %v431_v13  ;;  %v439_v14 = vld [vmem:[#allocation8 + $0x40] sm:$0xff] }
 0x16f   :  { %v4606_v38 = vmul.f32 %v3851_v34, %v4586_v10  ;;  %3401 = vmatprep.subr.bf16.mxu1 %v3400_v32  ;;  %v418_v34 = vld [vmem:[#allocation7 + $0x118] sm:$0xff] }
 0x170   :  { %3403 = vmatpush3.bf16.msra.mxu1 %v3400_v32  ;;  %5233 = vst [vmem:[#allocation20_spill] sm:$0xff] %v4675_v30  ;;  %v415_v32 = vld [vmem:[#allocation7 + $0x100] sm:$0xff]  ;;  %5237 = vst [vmem:[#allocation24_spill] sm:$0xff] %v4696_v24 }
 0x171   :  { %v3853_v42 = vpop.eup %3852  ;;  %v3404_v44 = vpack.c.bf16 %v4601_v35, %v4606_v38 }
 0x172   :  { %v3855_v47 = vpop.eup %3854  ;;  %v4617_v48 = vmul.f32 %v3853_v42, %v4603_v36  ;;  %v4679_v42 = vpack.c.bf16 %v418_v34, %v415_v32  ;;  %v4698_v32 = vpack.c.bf16 %v438_v22, %v436_v18  ;;  %v435_v34 = vld [vmem:[#allocation8 + $0x20] sm:$0xff]  ;;  %v441_v18 = vld [vmem:[#allocation8 + $0x50] sm:$0xff] }
 0x173   :  { %v4620_v50 = vmul.f32 %v3855_v47, %v4608_v40  ;;  %3130 = vmatmul.mubr.msk.f32.vlgmr.msra.gmra.mrb[0].mxu1 %vm479_vm2, %v4610_v41  ;;  %3405 = vmatprep.subr.bf16.mxu1 %v3404_v44  ;;  %v424_v47 = vld [vmem:[#allocation7 + $0x148] sm:$0xff] }
 0x174   :  { %3407 = vmatpush3.bf16.msra.mxu1 %v3404_v44  ;;  %3136 = vmatprep.mubr.msk.f32.mxu1 %vm479_vm2, %v4614_v46  ;;  %5234 = vst [vmem:[#allocation21_spill] sm:$0xff] %v4679_v42  ;;  %v421_v44 = vld [vmem:[#allocation7 + $0x130] sm:$0xff]  ;;  %5238 = vst [vmem:[#allocation25_spill] sm:$0xff] %v4698_v32 }
 0x175   :  { %v3857_v53 = vpop.eup %3856  ;;  %v3408_v56 = vpack.c.bf16 %v4617_v48, %v4620_v50 }
 0x176   :  { %v3859_v59 = vpop.eup %3858  ;;  %v4637_v62 = vmul.f32 %v3857_v53, %v4628_v54  ;;  %v4683_v53 = vpack.c.bf16 %v424_v47, %v421_v44  ;;  %v437_v44 = vld [vmem:[#allocation8 + $0x30] sm:$0xff] }
 0x177   :  { %v4640_v2 = vmul.f32 %v3859_v59, %v4634_v60  ;;  %3409 = vmatprep.subr.bf16.mxu1 %v3408_v56  ;;  %3137 = vmatmul.mubr.msk.f32.vlgmr.msra.gmra.mrb[2].mxu1 %vm479_vm2, %v4626_v52  ;;  %v430_v59 = vld [vmem:[#allocation7 + $0x178] sm:$0xff] }
 0x178   :  { %3411 = vmatpush3.bf16.msra.mxu1 %v3408_v56  ;;  %3143 = vmatprep.mubr.msk.f32.mxu1 %vm479_vm2, %v4632_v58  ;;  %5235 = vst [vmem:[#allocation22_spill] sm:$0xff] %v4683_v53  ;;  %v427_v56 = vld [vmem:[#allocation7 + $0x160] sm:$0xff] }
 0x179   :  { %v3412_v4 = vpack.c.bf16 %v4637_v62, %v4640_v2  ;;  %v4687_v0 = vpack.c.bf16 %v430_v59, %v427_v56  ;;  %v440_v56 = vld [vmem:[#allocation8 + $0x48] sm:$0xff]  ;;  %v442_v59 = vld [vmem:[#allocation8 + $0x58] sm:$0xff] }
 0x17a   :  { %v4705_v13 = vpack.c.bf16 %v442_v59, %v440_v56  ;;  %v443_v56 = vld [vmem:[#allocation8 + $0x60] sm:$0xff]  ;;  %v445_v59 = vld [vmem:[#allocation8 + $0x70] sm:$0xff] }
 0x17b   :  { %3413 = vmatprep.subr.bf16.mxu1 %v3412_v4  ;;  %3144 = vmatmul.mubr.msk.f32.vlgmr.msra.gmra.mrb[4].mxu1 %vm479_vm2, %v4646_v3  ;;  %5236 = vst [vmem:[#allocation23_spill] sm:$0xff] %v4687_v0 }
 0x17c   :  { %3415 = vmatpush3.bf16.msra.mxu1 %v3412_v4  ;;  %3150 = vmatprep.mubr.msk.f32.mxu1 %vm479_vm2, %v4650_v5  ;;  %v434_v4 = vld [vmem:[#allocation8 + $0x18] sm:$0xff]  ;;  %5240 = vst [vmem:[#allocation27_spill] sm:$0xff] %v4705_v13 }
 0x17d   :  { %3449 = vmatprep.subr.bf16.mxu1 %v4652_v6  ;;  %v4692_v7 = vpack.c.bf16 %v434_v4, %v432_v1  ;;  %v4701_v1 = vpack.c.bf16 %v437_v44, %v435_v34  ;;  %v4709_v34 = vpack.c.bf16 %v441_v18, %v439_v14 }
 0x17f   :  { %3151 = vmatmul.mubr.msk.f32.vlgmr.msra.gmra.mrb[6].mxu1 %vm479_vm2, %v4658_v11  ;;  %3481 = vmatprep.subr.bf16.mxu0 %v4692_v7  ;;  %5239 = vst [vmem:[#allocation26_spill] sm:$0xff] %v4701_v1 }
 0x180   :  { %3451 = vmatpush3.bf16.msra.mxu1 %v4652_v6 }
 0x181   :  { %3453 = vmatprep.subr.bf16.mxu1 %v4661_v12 }
 0x184   :  { %3455 = vmatpush3.bf16.msra.mxu1 %v4661_v12 }
 0x185   :  { %3457 = vmatprep.subr.bf16.mxu1 %v4667_v17 }
 0x188   :  { %3459 = vmatpush3.bf16.msra.mxu1 %v4667_v17 }
 0x189   :  { %3461 = vmatprep.subr.bf16.mxu1 %v4671_v23 }
 0x18c   :  { %3463 = vmatpush3.bf16.msra.mxu1 %v4671_v23 }
 0x18d   :  { %3465 = vmatprep.subr.bf16.mxu1 %v4675_v30 }
 0x190   :  { %3467 = vmatpush3.bf16.msra.mxu1 %v4675_v30 }
 0x191   :  { %3469 = vmatprep.subr.bf16.mxu1 %v4679_v42 }
 0x194   :  { %3471 = vmatpush3.bf16.msra.mxu1 %v4679_v42  ;;  %v450_v42 = vld [vmem:[#allocation8 + $0x98] sm:$0xff] }
 0x195   :  { %3473 = vmatprep.subr.bf16.mxu1 %v4683_v53 }
 0x198   :  { %3475 = vmatpush3.bf16.msra.mxu1 %v4683_v53  ;;  %v446_v53 = vld [vmem:[#allocation8 + $0x78] sm:$0xff] }
 0x199   :  { %3477 = vmatprep.subr.bf16.mxu1 %v4687_v0 }
 0x19c   :  { %3479 = vmatpush3.bf16.msra.mxu1 %v4687_v0  ;;  %v444_v0 = vld [vmem:[#allocation8 + $0x68] sm:$0xff] }
 0x246   :  { %v3131_v28 = vpop.f32.mrb[0].mxu1 }
 0x247   :  { %v552_v47 = vpop.f32.mrb[1].mxu1 }
 0x248   :  { %869 = vmatmul.mubr.f32.vlgmr.msra.gmra.mrb[8].mxu0 %v552_v47  ;;  %3185 = vmatprep.mubr.f32.mxu1 %v552_v47  ;;  %v4712_v47 = vpack.c.bf16 %v446_v53, %v444_v0  ;;  %v447_v53 = vld [vmem:[#allocation8 + $0x80] sm:$0xff]  ;;  %v449_v0 = vld [vmem:[#allocation8 + $0x90] sm:$0xff] }
 0x249   :  { %3186 = vmatmul.mubr.f32.vlgmr.msra.gmra.mrb[8].mxu1 %v3131_v28  ;;  %3483 = vmatpush1.bf16.msra.mxu0 %v4696_v24  ;;  %v448_v24 = vld [vmem:[#allocation8 + $0x88] sm:$0xff] }
 0x24a   :  { %874 = vmatprep.mubr.f32.mxu0 %v5221_v9  ;;  %v3138_v4 = vpop.f32.mrb[2].mxu1  ;;  %3485 = vmatprep.subr.bf16.mxu0 %v4698_v32  ;;  %5241 = vst [vmem:[#allocation28_spill] sm:$0xff] %v4712_v47  ;;  %v4719_v14 = vpack.c.bf16 %v450_v42, %v448_v24  ;;  %v451_v42 = vld [vmem:[#allocation8 + $0xa0] sm:$0xff]  ;;  %v453_v24 = vld [vmem:[#allocation8 + $0xb0] sm:$0xff] }
 0x24b   :  { %v633_v22 = vpop.f32.mrb[3].mxu1 }
 0x24c   :  { %875 = vmatmul.mubr.f32.gmra.mrb[10].mxu0 %v3131_v28  ;;  %3188 = vmatprep.mubr.f32.mxu1 %v633_v22  ;;  %v4716_v28 = vpack.c.bf16 %v445_v59, %v443_v56  ;;  %5242 = vst [vmem:[#allocation29_spill] sm:$0xff] %v4719_v14  ;;  %v456_v59 = vld [vmem:[#allocation8 + $0xc8] sm:$0xff] }
 0x24d   :  { %3487 = vmatpush1.bf16.msra.mxu0 %v4701_v1  ;;  %880 = vmatprep.mubr.f32.mxu0 %v5221_v9  ;;  %v454_v1 = vld [vmem:[#allocation8 + $0xb8] sm:$0xff] }
 0x24e   :  { %3189 = vmatmul.mubr.f32.gmra.mrb[10].mxu1 %v3138_v4  ;;  %3489 = vmatprep.subr.bf16.mxu0 %v4705_v13  ;;  %v3145_v44 = vpop.f32.mrb[4].mxu1  ;;  %v452_v13 = vld [vmem:[#allocation8 + $0xa8] sm:$0xff] }
 0x24f   :  { %v714_v32 = vpop.f32.mrb[5].mxu1  ;;  %v4726_v56 = vpack.c.bf16 %v454_v1, %v452_v13  ;;  %v460_v1 = vld [vmem:[#allocation8 + $0xe8] sm:$0xff]  ;;  %v462_v13 = vld [vmem:[#allocation8 + $0xf8] sm:$0xff] }
 0x250   :  { %881 = vmatmul.mubr.f32.gmra.mrb[12].mxu0 %v633_v22  ;;  %3191 = vmatprep.mubr.f32.mxu1 %v714_v32  ;;  %v4723_v22 = vpack.c.bf16 %v449_v0, %v447_v53  ;;  %v455_v0 = vld [vmem:[#allocation8 + $0xc0] sm:$0xff] }
 0x251   :  { %3491 = vmatpush1.bf16.msra.mxu0 %v4709_v34  ;;  %886 = vmatprep.mubr.f32.mxu0 %v5221_v9 }
 0x252   :  { %3493 = vmatprep.subr.bf16.mxu0 %v4712_v47  ;;  %3192 = vmatmul.mubr.f32.gmra.mrb[12].mxu1 %v3145_v44  ;;  %v3152_v18 = vpop.f32.mrb[6].mxu1  ;;  %5243 = vst [vmem:[#allocation30_spill] sm:$0xff] %v4723_v22  ;;  %v458_v47 = vld [vmem:[#allocation8 + $0xd8] sm:$0xff] }
 0x253   :  { %v795_v30 = vpop.f32.mrb[7].mxu1  ;;  %v4733_v53 = vpack.c.bf16 %v458_v47, %v456_v59  ;;  %v477_v59 = vld [vmem:[#allocation10 + $0x70] sm:$0xff] }
 0x254   :  { %887 = vmatmul.mubr.f32.gmra.mrb[14].mxu0 %v3138_v4  ;;  %3194 = vmatprep.mubr.f32.mxu1 %v795_v30  ;;  %v4730_v4 = vpack.c.bf16 %v453_v24, %v451_v42  ;;  %v459_v42 = vld [vmem:[#allocation8 + $0xe0] sm:$0xff]  ;;  %v461_v24 = vld [vmem:[#allocation8 + $0xf0] sm:$0xff] }
 0x255   :  { %3495 = vmatpush1.bf16.msra.mxu0 %v4716_v28  ;;  %892 = vmatprep.mubr.f32.mxu0 %v5221_v9  ;;  %v4744_v47 = vpack.c.bf16 %v461_v24, %v459_v42 }
 0x256   :  { %3497 = vmatprep.subr.bf16.mxu0 %v4719_v14  ;;  %3195 = vmatmul.mubr.f32.gmra.mrb[14].mxu1 %v3152_v18  ;;  %v457_v14 = vld [vmem:[#allocation8 + $0xd0] sm:$0xff] }
 0x257   :  { %5246 = vst [vmem:[#allocation33_spill] sm:$0xff] %v4744_v47 }
 0x258   :  { %893 = vmatmul.mubr.f32.gmra.mrb[16].mxu0 %v714_v32  ;;  %v4737_v32 = vpack.c.bf16 %v457_v14, %v455_v0  ;;  %v476_v14 = vld [vmem:[#allocation10 + $0x68] sm:$0xff]  ;;  %v478_v0 = vld [vmem:[#allocation10 + $0x78] sm:$0xff] }
 0x259   :  { %3499 = vmatpush1.bf16.msra.mxu0 %v4723_v22  ;;  %898 = vmatprep.mubr.f32.mxu0 %v5221_v9  ;;  %v4740_v22 = vpack.c.bf16 %v462_v13, %v460_v1  ;;  %v4810_v1 = vpack.c.bf16 %v478_v0, %v477_v59  ;;  %v209_v13 = vlaneseq }
 0x25a   :  { %3501 = vmatprep.subr.bf16.mxu0 %v4726_v56  ;;  %5244 = vst [vmem:[#allocation31_spill] sm:$0xff] %v4737_v32 }
 0x25b   :  { %5245 = vst [vmem:[#allocation32_spill] sm:$0xff] %v4740_v22  ;;  %5249 = vst [vmem:[#allocation36_spill] sm:$0xff] %v4810_v1  ;;  %v4814_v42 = vshrl.u32 %v209_v13, 7 }
 0x25c   :  { %899 = vmatmul.mubr.f32.gmra.mrb[18].mxu0 %v3145_v44  ;;  %v475_v44 = vld [vmem:[#allocation10 + $0x60] sm:$0xff] }
 0x25d   :  { %3503 = vmatpush1.bf16.msra.mxu0 %v4730_v4  ;;  %904 = vmatprep.mubr.f32.mxu0 %v5221_v9  ;;  %v5220_v24 = vsub.s32 1, %v4814_v42 }
 0x25e   :  { %3505 = vmatprep.subr.bf16.mxu0 %v4733_v53 }
 0x260   :  { %905 = vmatmul.mubr.f32.gmra.mrb[20].mxu0 %v795_v30  ;;  %v474_v30 = vld [vmem:[#allocation10 + $0x58] sm:$0xff] }
 0x261   :  { %3507 = vmatpush1.bf16.msra.mxu0 %v4737_v32  ;;  %910 = vmatprep.mubr.f32.mxu0 %v5221_v9 }
 0x262   :  { %3509 = vmatprep.subr.bf16.mxu0 %v4740_v22 }
 0x264   :  { %911 = vmatmul.mubr.f32.gmra.mrb[22].mxu0 %v3152_v18  ;;  %v4806_v18 = vpack.c.bf16 %v476_v14, %v475_v44 }
 0x265   :  { %3511 = vmatpush1.bf16.msra.mxu0 %v4744_v47  ;;  %1086 = vmatprep.mubr.f32.mxu0 %v5221_v9 }
 0x266   :  { %3561 = vmatprep.subr.bf16.mxu0 %v4533_v19  ;;  %v463_v19 = vld [vmem:[#allocation10] sm:$0xff]  ;;  %5248 = vst [vmem:[#allocation35_spill] sm:$0xff] %v4806_v18 }
 0x268   :  { %1087 = vmatmul.mubr.f32.vlgmr.msra.gmra.mrb[8].mxu0 %v4596_v29 }
 0x269   :  { %1092 = vmatprep.mubr.f32.mxu0 %v5221_v9  ;;  %3563 = vmatpush1.bf16.msra.mxu0 %v4535_v21  ;;  %v464_v21 = vld [vmem:[#allocation10 + $0x8] sm:$0xff] }
 0x26a   :  { %3565 = vmatprep.subr.bf16.mxu0 %v4538_v25  ;;  %v4782_v25 = vpack.c.bf16 %v464_v21, %v463_v19  ;;  %v4820_v19 = vld [vmem:[%s5196_s8] sm:$0x3] }
 0x26b   :  { %v4825_v21 = vrot.slane %v4820_v19, %v5220_v24 }
 0x26c   :  { %1093 = vmatmul.mubr.f32.gmra.mrb[10].mxu0 %v4593_v26  ;;  %3513 = vmatprep.subr.bf16.mxu1 %v4782_v25 }
 0x26d   :  { %1098 = vmatprep.mubr.f32.mxu0 %v5221_v9  ;;  %3567 = vmatpush1.bf16.msra.mxu0 %v4541_v27  ;;  %v465_v27 = vld [vmem:[#allocation10 + $0x10] sm:$0xff] }
 0x26e   :  { %3569 = vmatprep.subr.bf16.mxu0 %v4544_v31  ;;  %3515 = vmatpush3.bf16.msra.mxu1 %v4782_v25  ;;  %v466_v31 = vld [vmem:[#allocation10 + $0x18] sm:$0xff] }
 0x270   :  { %1099 = vmatmul.mubr.f32.gmra.mrb[12].mxu0 %v4606_v38 }
 0x271   :  { %1104 = vmatprep.mubr.f32.mxu0 %v5221_v9  ;;  %3571 = vmatpush1.bf16.msra.mxu0 %v4547_v33  ;;  %v4786_v33 = vpack.c.bf16 %v466_v31, %v465_v27 }
 0x272   :  { %3573 = vmatprep.subr.bf16.mxu0 %v4550_v37  ;;  %v467_v37 = vld [vmem:[#allocation10 + $0x20] sm:$0xff] }
 0x273   :  { %3517 = vmatprep.subr.bf16.mxu1 %v4786_v33 }
 0x274   :  { %1105 = vmatmul.mubr.f32.gmra.mrb[14].mxu0 %v4601_v35  ;;  %3519 = vmatpush3.bf16.msra.mxu1 %v4786_v33 }
 0x275   :  { %1110 = vmatprep.mubr.f32.mxu0 %v5221_v9  ;;  %3575 = vmatpush1.bf16.msra.mxu0 %v4553_v39  ;;  %v468_v39 = vld [vmem:[#allocation10 + $0x28] sm:$0xff] }
 0x276   :  { %3577 = vmatprep.subr.bf16.mxu0 %v4556_v43  ;;  %v4790_v43 = vpack.c.bf16 %v468_v39, %v467_v37 }
 0x278   :  { %1111 = vmatmul.mubr.f32.gmra.mrb[16].mxu0 %v4620_v50  ;;  %3521 = vmatprep.subr.bf16.mxu1 %v4790_v43 }
 0x279   :  { %1116 = vmatprep.mubr.f32.mxu0 %v5221_v9  ;;  %3579 = vmatpush1.bf16.msra.mxu0 %v4559_v45  ;;  %v469_v45 = vld [vmem:[#allocation10 + $0x30] sm:$0xff] }
 0x27a   :  { %3581 = vmatprep.subr.bf16.mxu0 %v4562_v49  ;;  %3523 = vmatpush3.bf16.msra.mxu1 %v4790_v43  ;;  %v470_v49 = vld [vmem:[#allocation10 + $0x38] sm:$0xff] }
 0x27c   :  { %1117 = vmatmul.mubr.f32.gmra.mrb[18].mxu0 %v4617_v48 }
 0x27d   :  { %1122 = vmatprep.mubr.f32.mxu0 %v5221_v9  ;;  %3583 = vmatpush1.bf16.msra.mxu0 %v4565_v51  ;;  %v4794_v51 = vpack.c.bf16 %v470_v49, %v469_v45 }
 0x27e   :  { %3585 = vmatprep.subr.bf16.mxu0 %v4568_v55  ;;  %v471_v55 = vld [vmem:[#allocation10 + $0x40] sm:$0xff] }
 0x27f   :  { %3525 = vmatprep.subr.bf16.mxu1 %v4794_v51 }
 0x280   :  { %1123 = vmatmul.mubr.f32.gmra.mrb[20].mxu0 %v4640_v2  ;;  %3527 = vmatpush3.bf16.msra.mxu1 %v4794_v51 }
 0x281   :  { %1128 = vmatprep.mubr.f32.mxu0 %v5221_v9  ;;  %3587 = vmatpush1.bf16.msra.mxu0 %v4571_v57  ;;  %v472_v57 = vld [vmem:[#allocation10 + $0x48] sm:$0xff] }
 0x282   :  { %3589 = vmatprep.subr.bf16.mxu0 %v4574_v61  ;;  %v4798_v61 = vpack.c.bf16 %v472_v57, %v471_v55 }
 0x284   :  { %1129 = vmatmul.mubr.f32.gmra.mrb[22].mxu0 %v4637_v62  ;;  %3529 = vmatprep.subr.bf16.mxu1 %v4798_v61 }
 0x285   :  { %3591 = vmatpush1.bf16.msra.mxu0 %v4577_v63  ;;  %1780 = vmatprep.mubr.f32.mxu0 %v5221_v9  ;;  %v473_v63 = vld [vmem:[#allocation10 + $0x50] sm:$0xff] }
 0x286   :  { %3625 = vmatprep.subr.bf16.mxu0 %v4692_v7  ;;  %3531 = vmatpush3.bf16.msra.mxu1 %v4798_v61  ;;  %v4802_v7 = vpack.c.bf16 %v474_v30, %v473_v63 }
 0x288   :  { %5247 = vst [vmem:[#allocation34_spill] sm:$0xff] %v4802_v7  ;;  %3533 = vmatprep.subr.bf16.mxu1 %v4802_v7 }
 0x28a   :  { %3535 = vmatpush3.bf16.msra.mxu1 %v4802_v7 }
 0x28b   :  { %3537 = vmatprep.subr.bf16.mxu1 %v4806_v18 }
 0x28e   :  { %3539 = vmatpush3.bf16.msra.mxu1 %v4806_v18 }
 0x28f   :  { %3541 = vmatprep.subr.bf16.mxu1 %v4810_v1 }
 0x292   :  { %3543 = vmatpush3.bf16.msra.mxu1 %v4810_v1 }
 0x33b   :  { %v4827_v27 = vpop.f32.mrb[8].mxu0 }
 0x33c   :  { %v1090_v31 = vpop.f32.mrb[9].mxu0 }
 0x33d   :  { %v1091_v37 = vadd.f32 %v1090_v31, %v4825_v21 }
 0x33f   :  { %v2892_v39 = vmul.f32 -1.442695, %v1091_v37  ;;  %v4830_v45 = vpop.f32.mrb[10].mxu0 }
 0x340   :  { %v1096_v49 = vpop.f32.mrb[11].mxu0 }
 0x341   :  { %3860 = vpow2.f32 %v2892_v39  ;;  %v1097_v55 = vadd.f32 %v1096_v49, %v4825_v21 }
 0x343   :  { %v2894_v57 = vmul.f32 -1.442695, %v1097_v55  ;;  %v4833_v63 = vpop.f32.mrb[12].mxu0 }
 0x344   :  { %v1102_v30 = vpop.f32.mrb[13].mxu0 }
 0x345   :  { %3862 = vpow2.f32 %v2894_v57  ;;  %v1103_v44 = vadd.f32 %v1102_v30, %v4825_v21 }
 0x347   :  { %v2896_v14 = vmul.f32 -1.442695, %v1103_v44  ;;  %v4836_v59 = vpop.f32.mrb[14].mxu0 }
 0x348   :  { %v1108_v0 = vpop.f32.mrb[15].mxu0 }
 0x349   :  { %3864 = vpow2.f32 %v2896_v14  ;;  %v1109_v13 = vadd.f32 %v1108_v0, %v4825_v21 }
 0x34b   :  { %v3861_v31 = vpop.eup %3860  ;;  %v2898_v37 = vmul.f32 -1.442695, %v1109_v13  ;;  %v4839_v24 = vpop.f32.mrb[16].mxu0 }
 0x34c   :  { %v1200_v39 = vadd.f32 1.0, %v3861_v31  ;;  %v1114_v49 = vpop.f32.mrb[17].mxu0 }
 0x34d   :  { %v1115_v55 = vadd.f32 %v1114_v49, %v4825_v21 }
 0x34e   :  { %3866 = vrcp.f32 %v1200_v39 }
 0x34f   :  { %v3863_v9 = vpop.eup %3862  ;;  %3868 = vpow2.f32 %v2898_v37  ;;  %v2900_v57 = vmul.f32 -1.442695, %v1115_v55  ;;  %v4842_v30 = vpop.f32.mrb[18].mxu0 }
 0x350   :  { %v1202_v44 = vadd.f32 1.0, %v3863_v9  ;;  %v1120_v1 = vpop.f32.mrb[19].mxu0 }
 0x351   :  { %v1121_v14 = vadd.f32 %v1120_v1, %v4825_v21 }
 0x352   :  { %3870 = vrcp.f32 %v1202_v44 }
 0x353   :  { %v3865_v0 = vpop.eup %3864  ;;  %3872 = vpow2.f32 %v2900_v57  ;;  %v2902_v13 = vmul.f32 -1.442695, %v1121_v14  ;;  %v4845_v47 = vpop.f32.mrb[20].mxu0 }
 0x354   :  { %v1204_v31 = vadd.f32 1.0, %v3865_v0  ;;  %v1126_v18 = vpop.f32.mrb[21].mxu0 }
 0x355   :  { %v1127_v49 = vadd.f32 %v1126_v18, %v4825_v21 }
 0x356   :  { %3874 = vrcp.f32 %v1204_v31 }
 0x357   :  { %3876 = vpow2.f32 %v2902_v13  ;;  %v2904_v37 = vmul.f32 -1.442695, %v1127_v49  ;;  %v4848_v39 = vpop.f32.mrb[22].mxu0 }
 0x358   :  { %v3867_v55 = vpop.eup %3866  ;;  %v1132_v9 = vpop.f32.mrb[23].mxu0 }
 0x359   :  { %v3869_v22 = vpop.eup %3868  ;;  %v1133_v1 = vadd.f32 %v1132_v9, %v4825_v21  ;;  %v1247_v44 = vmul.f32 %v3867_v55, %v4596_v29  ;;  %3878 = vpow2.f32 %v2904_v37 }
 0x35a   :  { %v1206_v57 = vadd.f32 1.0, %v3869_v22 }
 0x35b   :  { %v2906_v14 = vmul.f32 -1.442695, %v1133_v1  ;;  %3229 = vmatprep.mubr.f32.mxu1 %v1247_v44 }
 0x35c   :  { %v3871_v0 = vpop.eup %3870  ;;  %3880 = vrcp.f32 %v1206_v57 }
 0x35d   :  { %v3873_v32 = vpop.eup %3872  ;;  %v1248_v18 = vmul.f32 %v3871_v0, %v4593_v26  ;;  %3882 = vpow2.f32 %v2906_v14 }
 0x35e   :  { %v1208_v13 = vadd.f32 1.0, %v3873_v32 }
 0x35f   :  { %3230 = vmatmul.mubr.f32.vlgmr.msra.gmra.mrb[8].mxu1 %v1248_v18 }
 0x360   :  { %v3875_v31 = vpop.eup %3874  ;;  %3884 = vrcp.f32 %v1208_v13 }
 0x361   :  { %v3877_v49 = vpop.eup %3876  ;;  %v1249_v7 = vmul.f32 %v3875_v31, %v4606_v38 }
 0x362   :  { %v1210_v9 = vadd.f32 1.0, %v3877_v49 }
 0x363   :  { %3232 = vmatprep.mubr.f32.mxu1 %v1249_v7  ;;  %v3879_v55 = vpop.eup %3878 }
 0x364   :  { %3886 = vrcp.f32 %v1210_v9  ;;  %v1212_v22 = vadd.f32 1.0, %v3879_v55  ;;  %v211_v9 = vsub.s32 0, %v4814_v42 }
 0x366   :  { %v3881_v37 = vpop.eup %3880  ;;  %3888 = vrcp.f32 %v1212_v22  ;;  %v4865_v55 = vrot.slane %v4820_v19, %v211_v9 }
 0x367   :  { %v1250_v1 = vmul.f32 %v3881_v37, %v4601_v35  ;;  %v3883_v44 = vpop.eup %3882 }
 0x368   :  { %v1214_v32 = vadd.f32 1.0, %v3883_v44  ;;  %v1089_v22 = vadd.f32 %v4827_v27, %v4865_v55  ;;  %v1095_v37 = vadd.f32 %v4830_v45, %v4865_v55  ;;  %v4878_v27 = vld [vmem:[%s5197_s9] ss:$0 sm:$0xff] }
 0x369   :  { %3233 = vmatmul.mubr.f32.gmra.mrb[10].mxu1 %v1250_v1 }
 0x36a   :  { %v3885_v57 = vpop.eup %3884  ;;  %3890 = vrcp.f32 %v1214_v32  ;;  %v2891_v1 = vmul.f32 -1.442695, %v1089_v22  ;;  %v2893_v44 = vmul.f32 -1.442695, %v1095_v37 }
 0x36b   :  { %v1251_v14 = vmul.f32 %v3885_v57, %v4620_v50  ;;  %v1101_v57 = vadd.f32 %v4833_v63, %v4865_v55 }
 0x36c   :  { %3892 = vpow2.f32 %v2891_v1 }
 0x36d   :  { %3235 = vmatprep.mubr.f32.mxu1 %v1251_v14  ;;  %3894 = vpow2.f32 %v2893_v44  ;;  %v2895_v19 = vmul.f32 -1.442695, %v1101_v57 }
 0x36e   :  { %v3887_v0 = vpop.eup %3886 }
 0x36f   :  { %v1252_v18 = vmul.f32 %v3887_v0, %v4617_v48 }
 0x370   :  { %v3889_v13 = vpop.eup %3888 }
 0x371   :  { %3236 = vmatmul.mubr.f32.gmra.mrb[12].mxu1 %v1252_v18  ;;  %v1253_v7 = vmul.f32 %v3889_v13, %v4640_v2  ;;  %v1119_v18 = vadd.f32 %v4842_v30, %v4865_v55  ;;  %v1125_v30 = vadd.f32 %v4845_v47, %v4865_v55 }
 0x373   :  { %3238 = vmatprep.mubr.f32.mxu1 %v1253_v7  ;;  %v2901_v37 = vmul.f32 -1.442695, %v1119_v18 }
 0x374   :  { %v3891_v31 = vpop.eup %3890 }
 0x375   :  { %v1254_v49 = vmul.f32 %v3891_v31, %v4637_v62 }
 0x376   :  { %v3893_v14 = vpop.eup %3892 }
 0x377   :  { %3239 = vmatmul.mubr.f32.gmra.mrb[14].mxu1 %v1254_v49  ;;  %v3895_v0 = vpop.eup %3894  ;;  %v1199_v45 = vadd.f32 1.0, %v3893_v14 }
 0x378   :  { %3245 = vmatprep.mubr.msk.f32.mxu1 %vm479_vm2, %v4529_v15  ;;  %v1107_v15 = vadd.f32 %v4836_v59, %v4865_v55  ;;  %v1113_v59 = vadd.f32 %v4839_v24, %v4865_v55  ;;  %v1201_v49 = vadd.f32 1.0, %v3895_v0  ;;  %v1131_v24 = vadd.f32 %v4848_v39, %v4865_v55 }
 0x37a   :  { %v2897_v32 = vmul.f32 -1.442695, %v1107_v15  ;;  %v2899_v44 = vmul.f32 -1.442695, %v1113_v59  ;;  %v2903_v15 = vmul.f32 -1.442695, %v1125_v30 }
 0x37c   :  { %3896 = vpow2.f32 %v2897_v32  ;;  %v2905_v32 = vmul.f32 -1.442695, %v1131_v24 }
 0x37d   :  { %3898 = vpow2.f32 %v2895_v19 }
 0x37e   :  { %3900 = vrcp.f32 %v1199_v45 }
 0x386   :  { %v3897_v57 = vpop.eup %3896 }
 0x387   :  { %v3899_v19 = vpop.eup %3898 }
 0x388   :  { %v3901_v59 = vpop.eup %3900  ;;  %v1203_v39 = vadd.f32 1.0, %v3899_v19 }
 0x432   :  { %v3231_v13 = vpop.f32.mrb[8].mxu1 }
 0x433   :  { %v1369_v63 = vadd.f32 %v3231_v13, %v4878_v27  ;;  %v1321_v7 = vpop.f32.mrb[9].mxu1  ;;  %v1205_v13 = vadd.f32 1.0, %v3897_v57 }
 0x434   :  { %v1368_v31 = vadd.f32 %v4878_v27, %v1321_v7 }
 0x435   :  { %v1377_v22 = vmul.f32 %v1369_v63, %v4588_v16 }
 0x436   :  { %v1376_v1 = vmul.f32 %v1368_v31, %v4584_v8 }
 0x437   :  { %3902 = vtanh.f32 %v1377_v22 }
 0x438   :  { %3904 = vtanh.f32 %v1376_v1 }
 0x439   :  { %3906 = vrcp.f32 %v1201_v49 }
 0x43a   :  { %3908 = vpow2.f32 %v2901_v37 }
 0x43b   :  { %3910 = vpow2.f32 %v2899_v44 }
 0x43c   :  { %v3234_v14 = vpop.f32.mrb[10].mxu1  ;;  %3912 = vpow2.f32 %v2903_v15 }
 0x43d   :  { %v1371_v0 = vadd.f32 %v3234_v14, %v4878_v27  ;;  %v1331_v45 = vpop.f32.mrb[11].mxu1  ;;  %3914 = vpow2.f32 %v2905_v32 }
 0x43e   :  { %v1370_v18 = vadd.f32 %v4878_v27, %v1331_v45 }
 0x43f   :  { %v1379_v47 = vmul.f32 %v1371_v0, %v4590_v20 }
 0x440   :  { %v1378_v63 = vmul.f32 %v1370_v18, %v4586_v10 }
 0x441   :  { %v3903_v7 = vpop.eup %3902  ;;  %3916 = vtanh.f32 %v1379_v47 }
 0x442   :  { %v3905_v31 = vpop.eup %3904  ;;  %v1393_v49 = vsub.f32 %v3903_v7, %v4593_v26  ;;  %3918 = vtanh.f32 %v1378_v63 }
 0x443   :  { %v3907_v22 = vpop.eup %3906  ;;  %3920 = vrcp.f32 %v1205_v13  ;;  %v1392_v37 = vsub.f32 %v3905_v31, %v4596_v29 }
 0x444   :  { %v3909_v1 = vpop.eup %3908  ;;  %3922 = vrcp.f32 %v1203_v39  ;;  %v1401_v44 = vmul.f32 %v3907_v22, %v1393_v49  ;;  %v3237_v30 = vpop.f32.mrb[12].mxu1 }
 0x445   :  { %v3911_v24 = vpop.eup %3910  ;;  %v1400_v15 = vmul.f32 %v3901_v59, %v1392_v37  ;;  %v1373_v57 = vadd.f32 %v3237_v30, %v4878_v27  ;;  %v1341_v32 = vpop.f32.mrb[13].mxu1  ;;  %v1209_v0 = vadd.f32 1.0, %v3909_v1 }
 0x446   :  { %v1372_v14 = vadd.f32 %v4878_v27, %v1341_v32  ;;  %v4901_v19 = vadd.f32 %v1401_v44, %v4593_v26  ;;  %v1207_v13 = vadd.f32 1.0, %v3911_v24  ;;  %v3913_v39 = vpop.eup %3912 }
 0x447   :  { %v1381_v45 = vmul.f32 %v1373_v57, %v4603_v36  ;;  %v4905_v18 = vadd.f32 %v1400_v15, %v4596_v29  ;;  %v3915_v63 = vpop.eup %3914 }
 0x448   :  { %v1380_v47 = vmul.f32 %v1372_v14, %v4608_v40  ;;  %v1213_v15 = vadd.f32 1.0, %v3915_v63  ;;  %v1211_v14 = vadd.f32 1.0, %v3913_v39 }
 0x449   :  { %3924 = vtanh.f32 %v1381_v45  ;;  %v3544_v59 = vpack.c.bf16 %v4901_v19, %v4905_v18 }
 0x44a   :  { %3926 = vtanh.f32 %v1380_v47  ;;  %v3240_v49 = vpop.f32.mrb[14].mxu1 }
 0x44b   :  { %v3917_v7 = vpop.eup %3916  ;;  %3928 = vrcp.f32 %v1209_v0  ;;  %3545 = vmatprep.subr.bf16.mxu1 %v3544_v59  ;;  %v1375_v37 = vadd.f32 %v3240_v49, %v4878_v27  ;;  %v1351_v1 = vpop.f32.mrb[15].mxu1 }
 0x44c   :  { %v3919_v26 = vpop.eup %3918  ;;  %3930 = vrcp.f32 %v1207_v13  ;;  %v1395_v31 = vsub.f32 %v3917_v7, %v4601_v35  ;;  %3547 = vmatpush3.bf16.msra.mxu1 %v3544_v59  ;;  %v1374_v24 = vadd.f32 %v4878_v27, %v1351_v1 }
 0x44d   :  { %v3921_v29 = vpop.eup %3920  ;;  %v1394_v22 = vsub.f32 %v3919_v26, %v4606_v38  ;;  %v1383_v32 = vmul.f32 %v1375_v37, %v4628_v54 }
 0x44e   :  { %v3923_v44 = vpop.eup %3922  ;;  %v1403_v30 = vmul.f32 %v3921_v29, %v1395_v31  ;;  %v1382_v0 = vmul.f32 %v1374_v24, %v4634_v60 }
 0x44f   :  { %v1402_v57 = vmul.f32 %v3923_v44, %v1394_v22  ;;  %3246 = vmatmul.mubr.msk.f32.vlgmr.msra.gmra.mrb[16].mxu1 %vm479_vm2, %v4610_v41  ;;  %3932 = vtanh.f32 %v1383_v32 }
 0x450   :  { %v4919_v45 = vadd.f32 %v1403_v30, %v4601_v35  ;;  %3252 = vmatprep.mubr.msk.f32.mxu1 %vm479_vm2, %v4614_v46  ;;  %3934 = vtanh.f32 %v1382_v0  ;;  %v5259_v0 = vld [vmem:[#allocation28_spill] sm:$0xff] }
 0x451   :  { %v4924_v13 = vadd.f32 %v1402_v57, %v4606_v38  ;;  %3936 = vrcp.f32 %v1213_v15  ;;  %v5257_v15 = vld [vmem:[#allocation26_spill] sm:$0xff]  ;;  %v5258_v57 = vld [vmem:[#allocation27_spill] sm:$0xff] }
 0x452   :  { %3938 = vrcp.f32 %v1211_v14 }
 0x453   :  { %v3925_v47 = vpop.eup %3924  ;;  %v3548_v59 = vpack.c.bf16 %v4919_v45, %v4924_v13 }
 0x454   :  { %v3927_v41 = vpop.eup %3926  ;;  %v1397_v39 = vsub.f32 %v3925_v47, %v4617_v48  ;;  %v5261_v47 = vld [vmem:[#allocation30_spill] sm:$0xff] }
 0x455   :  { %v3929_v63 = vpop.eup %3928  ;;  %v1396_v35 = vsub.f32 %v3927_v41, %v4620_v50  ;;  %3549 = vmatprep.subr.bf16.mxu1 %v3548_v59  ;;  %v2329_v41 = vld [vmem:[#allocation11 + $0x8] sm:$0xff] }
 0x456   :  { %v3931_v7 = vpop.eup %3930  ;;  %v1405_v46 = vmul.f32 %v3929_v63, %v1397_v39  ;;  %3551 = vmatpush3.bf16.msra.mxu1 %v3548_v59  ;;  %v5264_v59 = vld [vmem:[#allocation32_spill] sm:$0xff]  ;;  %v2331_v39 = vld [vmem:[#allocation11 + $0x18] sm:$0xff] }
 0x457   :  { %v1404_v26 = vmul.f32 %v3931_v7, %v1396_v35  ;;  %v2328_v63 = vld [vmem:[#allocation11] sm:$0xff]  ;;  %v3688_v35 = vpack.c.bf16 %v2331_v39, %v2329_v41  ;;  %v2330_v7 = vld [vmem:[#allocation11 + $0x10] sm:$0xff] }
 0x458   :  { %v4931_v38 = vadd.f32 %v1405_v46, %v4617_v48  ;;  %v2333_v46 = vld [vmem:[#allocation11 + $0x28] sm:$0xff] }
 0x459   :  { %3253 = vmatmul.mubr.msk.f32.vlgmr.msra.gmra.mrb[18].mxu1 %vm479_vm2, %v4626_v52  ;;  %v4936_v31 = vadd.f32 %v1404_v26, %v4620_v50  ;;  %v3933_v49 = vpop.eup %3932  ;;  %v2335_v26 = vld [vmem:[#allocation11 + $0x38] sm:$0xff] }
 0x45a   :  { %3259 = vmatprep.mubr.msk.f32.mxu1 %vm479_vm2, %v4632_v58  ;;  %v3935_v22 = vpop.eup %3934  ;;  %v1399_v37 = vsub.f32 %v3933_v49, %v4637_v62  ;;  %v3690_v49 = vpack.c.bf16 %v2330_v7, %v2328_v63 }
 0x45b   :  { %v3552_v29 = vpack.c.bf16 %v4931_v38, %v4936_v31  ;;  %v3937_v1 = vpop.eup %3936  ;;  %v1398_v48 = vsub.f32 %v3935_v22, %v4640_v2  ;;  %v2332_v22 = vld [vmem:[#allocation11 + $0x20] sm:$0xff] }
 0x45c   :  { %v3939_v44 = vpop.eup %3938  ;;  %v1407_v30 = vmul.f32 %v3937_v1, %v1399_v37  ;;  %v2334_v37 = vld [vmem:[#allocation11 + $0x30] sm:$0xff]  ;;  %v2337_v1 = vld [vmem:[#allocation11 + $0x48] sm:$0xff] }
 0x45d   :  { %3553 = vmatprep.subr.bf16.mxu1 %v3552_v29  ;;  %v1406_v52 = vmul.f32 %v3939_v44, %v1398_v48  ;;  %v2339_v48 = vld [vmem:[#allocation11 + $0x58] sm:$0xff]  ;;  %v3694_v44 = vpack.c.bf16 %v2334_v37, %v2332_v22 }
 0x45e   :  { %3555 = vmatpush3.bf16.msra.mxu1 %v3552_v29  ;;  %v4945_v50 = vadd.f32 %v1407_v30, %v4637_v62  ;;  %v5250_v62 = vld [vmem:[#allocation20_spill] sm:$0xff]  ;;  %v3692_v29 = vpack.c.bf16 %v2335_v26, %v2333_v46  ;;  %v3696_v30 = vpack.c.bf16 %v2339_v48, %v2337_v1 }
 0x45f   :  { %v4950_v58 = vadd.f32 %v1406_v52, %v4640_v2  ;;  %v5251_v2 = vld [vmem:[#allocation21_spill] sm:$0xff] }
 0x461   :  { %3260 = vmatmul.mubr.msk.f32.vlgmr.msra.gmra.mrb[20].mxu1 %vm479_vm2, %v4646_v3  ;;  %v3556_v24 = vpack.c.bf16 %v4945_v50, %v4950_v58  ;;  %v5252_v3 = vld [vmem:[#allocation22_spill] sm:$0xff] }
 0x462   :  { %3266 = vmatprep.mubr.msk.f32.mxu1 %vm479_vm2, %v4650_v5  ;;  %v5253_v5 = vld [vmem:[#allocation23_spill] sm:$0xff] }
 0x463   :  { %3557 = vmatprep.subr.bf16.mxu1 %v3556_v24 }
 0x464   :  { %3559 = vmatpush3.bf16.msra.mxu1 %v3556_v24 }
 0x465   :  { %3593 = vmatprep.subr.bf16.mxu1 %v4652_v6 }
 0x467   :  { %3267 = vmatmul.mubr.msk.f32.vlgmr.msra.gmra.mrb[22].mxu1 %vm479_vm2, %v4658_v11 }
 0x468   :  { %3595 = vmatpush3.bf16.msra.mxu1 %v4652_v6 }
 0x469   :  { %3597 = vmatprep.subr.bf16.mxu1 %v4661_v12 }
 0x46c   :  { %3599 = vmatpush3.bf16.msra.mxu1 %v4661_v12  ;;  %v5254_v12 = vld [vmem:[#allocation24_spill] sm:$0xff] }
 0x46d   :  { %3601 = vmatprep.subr.bf16.mxu1 %v4667_v17 }
 0x470   :  { %3603 = vmatpush3.bf16.msra.mxu1 %v4667_v17  ;;  %v5255_v17 = vmov 0.0  }
 0x471   :  { %3605 = vmatprep.subr.bf16.mxu1 %v4671_v23 }
 0x474   :  { %3607 = vmatpush3.bf16.msra.mxu1 %v4671_v23  ;;  %v5256_v23 = vld [vmem:[#allocation25_spill] sm:$0xff] }
 0x475   :  { %3609 = vmatprep.subr.bf16.mxu1 %v5250_v62 }
 0x478   :  { %3611 = vmatpush3.bf16.msra.mxu1 %v5250_v62 }
 0x479   :  { %3613 = vmatprep.subr.bf16.mxu1 %v5251_v2 }
 0x47c   :  { %3615 = vmatpush3.bf16.msra.mxu1 %v5251_v2 }
 0x47d   :  { %3617 = vmatprep.subr.bf16.mxu1 %v5252_v3 }
 0x480   :  { %3619 = vmatpush3.bf16.msra.mxu1 %v5252_v3 }
 0x481   :  { %3621 = vmatprep.subr.bf16.mxu1 %v5253_v5 }
 0x484   :  { %3623 = vmatpush3.bf16.msra.mxu1 %v5253_v5 }
 0x485   :  { %3657 = vmatprep.subr.bf16.mxu1 %v4782_v25 }
 0x522   :  { %v3247_v6 = vpop.f32.mrb[16].mxu1 }
 0x523   :  { %v1482_v11 = vpop.f32.mrb[17].mxu1 }
 0x524   :  { %1781 = vmatmul.mubr.f32.vlgmr.msra.gmra.mrb[24].mxu0 %v1482_v11  ;;  %3301 = vmatprep.mubr.f32.mxu1 %v1482_v11 }
 0x525   :  { %3627 = vmatpush1.bf16.msra.mxu0 %v5254_v12  ;;  %1786 = vmatprep.mubr.f32.mxu0 %v5255_v17 }
 0x526   :  { %3629 = vmatprep.subr.bf16.mxu0 %v5256_v23  ;;  %3302 = vmatmul.mubr.f32.vlgmr.msra.gmra.mrb[24].mxu1 %v3247_v6 }
 0x527   :  { %3659 = vmatpush3.bf16.msra.mxu1 %v4782_v25  ;;  %v5260_v25 = vld [vmem:[#allocation29_spill] sm:$0xff] }
 0x528   :  { %1787 = vmatmul.mubr.f32.gmra.mrb[26].mxu0 %v3247_v6  ;;  %3661 = vmatprep.subr.bf16.mxu1 %v4786_v33 }
 0x529   :  { %3631 = vmatpush1.bf16.msra.mxu0 %v5257_v15  ;;  %1792 = vmatprep.mubr.f32.mxu0 %v5255_v17 }
 0x52a   :  { %3633 = vmatprep.subr.bf16.mxu0 %v5258_v57 }
 0x52b   :  { %3663 = vmatpush3.bf16.msra.mxu1 %v4786_v33 }
 0x52c   :  { %v3254_v32 = vpop.f32.mrb[18].mxu1  ;;  %3665 = vmatprep.subr.bf16.mxu1 %v4790_v43 }
 0x52d   :  { %v1557_v14 = vpop.f32.mrb[19].mxu1  ;;  %3635 = vmatpush1.bf16.msra.mxu0 %v4709_v34 }
 0x52e   :  { %1793 = vmatmul.mubr.f32.gmra.mrb[28].mxu0 %v1557_v14  ;;  %3637 = vmatprep.subr.bf16.mxu0 %v5259_v0 }
 0x52f   :  { %1798 = vmatprep.mubr.f32.mxu0 %v5255_v17  ;;  %3304 = vmatprep.mubr.f32.mxu1 %v1557_v14 }
 0x530   :  { %3305 = vmatmul.mubr.f32.gmra.mrb[26].mxu1 %v3254_v32 }
 0x531   :  { %3639 = vmatpush1.bf16.msra.mxu0 %v4716_v28  ;;  %3667 = vmatpush3.bf16.msra.mxu1 %v4790_v43  ;;  %v5262_v28 = vld [vmem:[#allocation34_spill] sm:$0xff] }
 0x532   :  { %1799 = vmatmul.mubr.f32.gmra.mrb[30].mxu0 %v3254_v32  ;;  %3641 = vmatprep.subr.bf16.mxu0 %v5260_v25 }
 0x533   :  { %1804 = vmatprep.mubr.f32.mxu0 %v5255_v17  ;;  %3669 = vmatprep.subr.bf16.mxu1 %v4794_v51 }
 0x534   :  { %v3261_v33 = vpop.f32.mrb[20].mxu1 }
 0x535   :  { %v1632_v34 = vpop.f32.mrb[21].mxu1  ;;  %3643 = vmatpush1.bf16.msra.mxu0 %v5261_v47  ;;  %3671 = vmatpush3.bf16.msra.mxu1 %v4794_v51 }
 0x536   :  { %1805 = vmatmul.mubr.f32.gmra.mrb[32].mxu0 %v1632_v34  ;;  %3645 = vmatprep.subr.bf16.mxu0 %v4726_v56  ;;  %v5263_v56 = vld [vmem:[#allocation31_spill] sm:$0xff] }
 0x537   :  { %1810 = vmatprep.mubr.f32.mxu0 %v5255_v17  ;;  %3307 = vmatprep.mubr.f32.mxu1 %v1632_v34 }
 0x538   :  { %3308 = vmatmul.mubr.f32.gmra.mrb[28].mxu1 %v3261_v33  ;;  %3673 = vmatprep.subr.bf16.mxu1 %v4798_v61 }
 0x539   :  { %3647 = vmatpush1.bf16.msra.mxu0 %v4730_v4  ;;  %3675 = vmatpush3.bf16.msra.mxu1 %v4798_v61  ;;  %v5265_v4 = vld [vmem:[#allocation35_spill] sm:$0xff]  ;;  %v5267_v61 = vld [vmem:[#allocation36_spill] sm:$0xff] }
 0x53a   :  { %1811 = vmatmul.mubr.f32.gmra.mrb[34].mxu0 %v3261_v33  ;;  %3649 = vmatprep.subr.bf16.mxu0 %v4733_v53  ;;  %v3268_v43 = vpop.f32.mrb[22].mxu1  ;;  %v5266_v53 = vld [vmem:[#allocation33_spill] sm:$0xff] }
 0x53b   :  { %1816 = vmatprep.mubr.f32.mxu0 %v5255_v17  ;;  %3677 = vmatprep.subr.bf16.mxu1 %v5262_v28  ;;  %v1707_v51 = vpop.f32.mrb[23].mxu1 }
 0x53c   :  { %3310 = vmatprep.mubr.f32.mxu1 %v1707_v51 }
 0x53d   :  { %3651 = vmatpush1.bf16.msra.mxu0 %v5263_v56  ;;  %3679 = vmatpush3.bf16.msra.mxu1 %v5262_v28 }
 0x53e   :  { %1817 = vmatmul.mubr.f32.gmra.mrb[36].mxu0 %v1707_v51  ;;  %3653 = vmatprep.subr.bf16.mxu0 %v5264_v59 }
 0x53f   :  { %1822 = vmatprep.mubr.f32.mxu0 %v5255_v17  ;;  %3311 = vmatmul.mubr.f32.gmra.mrb[30].mxu1 %v3268_v43 }
 0x540   :  { %3681 = vmatprep.subr.bf16.mxu1 %v5265_v4 }
 0x541   :  { %3655 = vmatpush1.bf16.msra.mxu0 %v5266_v53  ;;  %3683 = vmatpush3.bf16.msra.mxu1 %v5265_v4 }
 0x542   :  { %1823 = vmatmul.mubr.f32.gmra.mrb[38].mxu0 %v3268_v43  ;;  %3685 = vmatprep.subr.bf16.mxu1 %v5267_v61 }
 0x543   :  { %1998 = vmatprep.mubr.f32.mxu0 %v5255_v17  ;;  %3689 = vmatprep.subr.bf16.mxu0 %v3688_v35 }
 0x545   :  { %3687 = vmatpush3.bf16.msra.mxu1 %v5267_v61 }
 0x546   :  { %1999 = vmatmul.mubr.f32.vlgmr.msra.gmra.mrb[24].mxu0 %v4905_v18 }
 0x547   :  { %2004 = vmatprep.mubr.f32.mxu0 %v5255_v17  ;;  %3691 = vmatpush1.bf16.msra.mxu0 %v3690_v49 }
 0x548   :  { %3693 = vmatprep.subr.bf16.mxu0 %v3692_v29 }
 0x54a   :  { %2005 = vmatmul.mubr.f32.gmra.mrb[26].mxu0 %v4901_v19 }
 0x54b   :  { %2010 = vmatprep.mubr.f32.mxu0 %v5255_v17  ;;  %3695 = vmatpush1.bf16.msra.mxu0 %v3694_v44 }
 0x54c   :  { %3697 = vmatprep.subr.bf16.mxu0 %v3696_v30 }
 0x54e   :  { %2011 = vmatmul.mubr.f32.gmra.mrb[28].mxu0 %v4924_v13 }
 0x54f   :  { %2016 = vmatprep.mubr.f32.mxu0 %v5255_v17 }
 0x552   :  { %2017 = vmatmul.mubr.f32.gmra.mrb[30].mxu0 %v4919_v45 }
 0x553   :  { %2022 = vmatprep.mubr.f32.mxu0 %v5255_v17 }
 0x556   :  { %2023 = vmatmul.mubr.f32.gmra.mrb[32].mxu0 %v4936_v31 }
 0x557   :  { %2028 = vmatprep.mubr.f32.mxu0 %v5255_v17 }
 0x55a   :  { %2029 = vmatmul.mubr.f32.gmra.mrb[34].mxu0 %v4931_v38 }
 0x55b   :  { %2034 = vmatprep.mubr.f32.mxu0 %v5255_v17 }
 0x55e   :  { %2035 = vmatmul.mubr.f32.gmra.mrb[36].mxu0 %v4950_v58 }
 0x55f   :  { %2040 = vmatprep.mubr.f32.mxu0 %v5255_v17 }
 0x562   :  { %2041 = vmatmul.mubr.f32.gmra.mrb[38].mxu0 %v4945_v50 }
 0x563   :  { %2436 = vmatprep.mubr.f32.mxu0 %v5255_v17 }
 0x619   :  { %v5029_v52 = vpop.f32.mrb[24].mxu0 }
 0x61a   :  { %v2002_v24 = vpop.f32.mrb[25].mxu0 }
 0x61b   :  { %v2003_v62 = vadd.f32 %v2002_v24, %v4825_v21 }
 0x61d   :  { %v2916_v2 = vmul.f32 -1.442695, %v2003_v62  ;;  %v5032_v3 = vpop.f32.mrb[26].mxu0 }
 0x61e   :  { %v2008_v5 = vpop.f32.mrb[27].mxu0 }
 0x61f   :  { %3940 = vpow2.f32 %v2916_v2  ;;  %v2009_v6 = vadd.f32 %v2008_v5, %v4825_v21 }
 0x621   :  { %v2918_v11 = vmul.f32 -1.442695, %v2009_v6  ;;  %v5035_v12 = vpop.f32.mrb[28].mxu0 }
 0x622   :  { %v2014_v23 = vpop.f32.mrb[29].mxu0 }
 0x623   :  { %3942 = vpow2.f32 %v2918_v11  ;;  %v2015_v15 = vadd.f32 %v2014_v23, %v4825_v21 }
 0x625   :  { %v2920_v57 = vmul.f32 -1.442695, %v2015_v15  ;;  %v5038_v32 = vpop.f32.mrb[30].mxu0 }
 0x626   :  { %v2020_v14 = vpop.f32.mrb[31].mxu0 }
 0x627   :  { %3944 = vpow2.f32 %v2920_v57  ;;  %v2021_v0 = vadd.f32 %v2020_v14, %v4825_v21 }
 0x629   :  { %v3941_v25 = vpop.eup %3940  ;;  %v2922_v33 = vmul.f32 -1.442695, %v2021_v0  ;;  %v5041_v34 = vpop.f32.mrb[32].mxu0 }
 0x62a   :  { %v2112_v47 = vadd.f32 1.0, %v3941_v25  ;;  %v2026_v28 = vpop.f32.mrb[33].mxu0 }
 0x62b   :  { %v2027_v43 = vadd.f32 %v2026_v28, %v4825_v21 }
 0x62c   :  { %3946 = vrcp.f32 %v2112_v47 }
 0x62d   :  { %v3943_v51 = vpop.eup %3942  ;;  %3948 = vpow2.f32 %v2922_v33  ;;  %v2924_v56 = vmul.f32 -1.442695, %v2027_v43  ;;  %v5044_v59 = vpop.f32.mrb[34].mxu0 }
 0x62e   :  { %v2114_v4 = vadd.f32 1.0, %v3943_v51  ;;  %v2032_v53 = vpop.f32.mrb[35].mxu0 }
 0x62f   :  { %v2033_v61 = vadd.f32 %v2032_v53, %v4825_v21 }
 0x630   :  { %3950 = vrcp.f32 %v2114_v4 }
 0x631   :  { %v3945_v41 = vpop.eup %3944  ;;  %3952 = vpow2.f32 %v2924_v56  ;;  %v2926_v39 = vmul.f32 -1.442695, %v2033_v61  ;;  %v5047_v63 = vpop.f32.mrb[36].mxu0 }
 0x632   :  { %v2116_v35 = vadd.f32 1.0, %v3945_v41  ;;  %v2038_v7 = vpop.f32.mrb[37].mxu0  ;;  %v2336_v41 = vld [vmem:[#allocation11 + $0x40] sm:$0xff] }
 0x633   :  { %v2039_v46 = vadd.f32 %v2038_v7, %v4825_v21  ;;  %v2341_v7 = vld [vmem:[#allocation11 + $0x68] sm:$0xff] }
 0x634   :  { %3954 = vrcp.f32 %v2116_v35 }
 0x635   :  { %3956 = vpow2.f32 %v2926_v39  ;;  %v2928_v26 = vmul.f32 -1.442695, %v2039_v46  ;;  %v5050_v49 = vpop.f32.mrb[38].mxu0  ;;  %v2338_v39 = vld [vmem:[#allocation11 + $0x50] sm:$0xff]  ;;  %v2343_v46 = vld [vmem:[#allocation11 + $0x78] sm:$0xff] }
 0x636   :  { %v3947_v29 = vpop.eup %3946  ;;  %v2044_v22 = vpop.f32.mrb[39].mxu0  ;;  %v3698_v35 = vpack.c.bf16 %v2338_v39, %v2336_v41 }
 0x637   :  { %v3949_v37 = vpop.eup %3948  ;;  %v2045_v1 = vadd.f32 %v2044_v22, %v4825_v21  ;;  %v2159_v48 = vmul.f32 %v3947_v29, %v4905_v18  ;;  %3958 = vpow2.f32 %v2928_v26  ;;  %v3700_v26 = vpack.c.bf16 %v2343_v46, %v2341_v7  ;;  %v2340_v29 = vld [vmem:[#allocation11 + $0x60] sm:$0xff]  ;;  %v2342_v22 = vld [vmem:[#allocation11 + $0x70] sm:$0xff] }
 0x638   :  { %v2118_v44 = vadd.f32 1.0, %v3949_v37  ;;  %3699 = vmatpush1.bf16.msra.mxu0 %v3698_v35  ;;  %v3702_v37 = vpack.c.bf16 %v2342_v22, %v2340_v29  ;;  %v2019_v35 = vadd.f32 %v5038_v32, %v4865_v55  ;;  %v2013_v7 = vadd.f32 %v5035_v12, %v4865_v55 }
 0x639   :  { %v2930_v30 = vmul.f32 -1.442695, %v2045_v1  ;;  %3345 = vmatprep.mubr.f32.mxu1 %v2159_v48  ;;  %3701 = vmatprep.subr.bf16.mxu0 %v3700_v26  ;;  %v2345_v1 = vld [vmem:[#allocation11 + $0x88] sm:$0xff]  ;;  %v2347_v48 = vld [vmem:[#allocation11 + $0x98] sm:$0xff] }
 0x63a   :  { %v3951_v24 = vpop.eup %3950  ;;  %3960 = vrcp.f32 %v2118_v44  ;;  %v3704_v44 = vpack.c.bf16 %v2347_v48, %v2345_v1  ;;  %v2921_v46 = vmul.f32 -1.442695, %v2019_v35  ;;  %v2919_v29 = vmul.f32 -1.442695, %v2013_v7 }
 0x63b   :  { %v3953_v62 = vpop.eup %3952  ;;  %v2160_v2 = vmul.f32 %v3951_v24, %v4901_v19  ;;  %3962 = vpow2.f32 %v2930_v30  ;;  %v2344_v30 = vld [vmem:[#allocation11 + $0x80] sm:$0xff]  ;;  %v2346_v24 = vld [vmem:[#allocation11 + $0x90] sm:$0xff]  ;;  %v2025_v1 = vadd.f32 %v5041_v34, %v4865_v55  ;;  %v2043_v34 = vadd.f32 %v5050_v49, %v4865_v55 }
 0x63c   :  { %v2120_v5 = vadd.f32 1.0, %v3953_v62  ;;  %3703 = vmatpush1.bf16.msra.mxu0 %v3702_v37  ;;  %v3706_v62 = vpack.c.bf16 %v2346_v24, %v2344_v30 }
 0x63d   :  { %3346 = vmatmul.mubr.f32.vlgmr.msra.gmra.mrb[24].mxu1 %v2160_v2  ;;  %3705 = vmatprep.subr.bf16.mxu0 %v3704_v44  ;;  %v2349_v2 = vld [vmem:[#allocation11 + $0xa8] sm:$0xff] }
 0x63e   :  { %v3955_v6 = vpop.eup %3954  ;;  %3964 = vrcp.f32 %v2120_v5  ;;  %v2351_v5 = vld [vmem:[#allocation11 + $0xb8] sm:$0xff] }
 0x63f   :  { %v3957_v11 = vpop.eup %3956  ;;  %v2161_v23 = vmul.f32 %v3955_v6, %v4924_v13  ;;  %v3708_v6 = vpack.c.bf16 %v2351_v5, %v2349_v2  ;;  %v2923_v2 = vmul.f32 -1.442695, %v2025_v1 }
 0x640   :  { %v2122_v21 = vadd.f32 1.0, %v3957_v11  ;;  %3707 = vmatpush1.bf16.msra.mxu0 %v3706_v62  ;;  %v2348_v11 = vld [vmem:[#allocation11 + $0xa0] sm:$0xff] }
 0x641   :  { %3348 = vmatprep.mubr.f32.mxu1 %v2161_v23  ;;  %v3959_v15 = vpop.eup %3958  ;;  %v2350_v23 = vld [vmem:[#allocation11 + $0xb0] sm:$0xff]  ;;  %3709 = vmatprep.subr.bf16.mxu0 %v3708_v6 }
 0x642   :  { %3966 = vrcp.f32 %v2122_v21  ;;  %v2124_v57 = vadd.f32 1.0, %v3959_v15  ;;  %v3710_v21 = vpack.c.bf16 %v2350_v23, %v2348_v11  ;;  %v2353_v15 = vld [vmem:[#allocation11 + $0xc8] sm:$0xff]  ;;  %v2929_v11 = vmul.f32 -1.442695, %v2043_v34 }
 0x644   :  { %v3961_v14 = vpop.eup %3960  ;;  %3968 = vrcp.f32 %v2124_v57  ;;  %3711 = vmatpush1.bf16.msra.mxu0 %v3710_v21  ;;  %v2355_v57 = vld [vmem:[#allocation11 + $0xd8] sm:$0xff] }
 0x645   :  { %v2162_v0 = vmul.f32 %v3961_v14, %v4919_v45  ;;  %v3963_v25 = vpop.eup %3962  ;;  %v3712_v14 = vpack.c.bf16 %v2355_v57, %v2353_v15 }
 0x646   :  { %v2126_v47 = vadd.f32 1.0, %v3963_v25  ;;  %v2354_v25 = vld [vmem:[#allocation11 + $0xd0] sm:$0xff] }
 0x647   :  { %3349 = vmatmul.mubr.f32.gmra.mrb[26].mxu1 %v2162_v0  ;;  %v2352_v0 = vld [vmem:[#allocation11 + $0xc0] sm:$0xff]  ;;  %3713 = vmatprep.subr.bf16.mxu0 %v3712_v14 }
 0x648   :  { %v3965_v33 = vpop.eup %3964  ;;  %3970 = vrcp.f32 %v2126_v47  ;;  %v2357_v47 = vld [vmem:[#allocation11 + $0xe8] sm:$0xff] }
 0x649   :  { %v2163_v28 = vmul.f32 %v3965_v33, %v4936_v31  ;;  %v3714_v33 = vpack.c.bf16 %v2354_v25, %v2352_v0 }
 0x64b   :  { %3351 = vmatprep.mubr.f32.mxu1 %v2163_v28  ;;  %3715 = vmatpush1.bf16.msra.mxu0 %v3714_v33  ;;  %v2359_v28 = vld [vmem:[#allocation11 + $0xf8] sm:$0xff] }
 0x64c   :  { %v3967_v43 = vpop.eup %3966 }
 0x64d   :  { %v2164_v51 = vmul.f32 %v3967_v43, %v4931_v38  ;;  %v3716_v43 = vpack.c.bf16 %v2359_v28, %v2357_v47 }
 0x64e   :  { %v3969_v56 = vpop.eup %3968 }
 0x64f   :  { %3352 = vmatmul.mubr.f32.gmra.mrb[28].mxu1 %v2164_v51  ;;  %v2165_v4 = vmul.f32 %v3969_v56, %v4950_v58  ;;  %v2356_v51 = vld [vmem:[#allocation11 + $0xe0] sm:$0xff]  ;;  %v2358_v56 = vld [vmem:[#allocation11 + $0xf0] sm:$0xff]  ;;  %3717 = vmatprep.subr.bf16.mxu0 %v3716_v43 }
 0x651   :  { %3354 = vmatprep.mubr.f32.mxu1 %v2165_v4  ;;  %v3718_v4 = vpack.c.bf16 %v2358_v56, %v2356_v51 }
 0x652   :  { %v3971_v53 = vpop.eup %3970 }
 0x653   :  { %v2166_v61 = vmul.f32 %v3971_v53, %v4945_v50  ;;  %3719 = vmatpush1.bf16.msra.mxu0 %v3718_v4  ;;  %v2001_v53 = vadd.f32 %v5029_v52, %v4865_v55  ;;  %v2031_v52 = vadd.f32 %v5044_v59, %v4865_v55  ;;  %v2037_v59 = vadd.f32 %v5047_v63, %v4865_v55 }
 0x655   :  { %3355 = vmatmul.mubr.f32.gmra.mrb[30].mxu1 %v2166_v61  ;;  %v2007_v61 = vadd.f32 %v5032_v3, %v4865_v55  ;;  %v2915_v41 = vmul.f32 -1.442695, %v2001_v53  ;;  %v2925_v24 = vmul.f32 -1.442695, %v2031_v52  ;;  %v2927_v5 = vmul.f32 -1.442695, %v2037_v59 }
 0x657   :  { %v2917_v39 = vmul.f32 -1.442695, %v2007_v61  ;;  %3972 = vpow2.f32 %v2915_v41 }
 0x659   :  { %3974 = vpow2.f32 %v2917_v39 }
 0x65a   :  { %3976 = vpow2.f32 %v2921_v46 }
 0x65b   :  { %3978 = vpow2.f32 %v2919_v29 }
 0x661   :  { %v3973_v26 = vpop.eup %3972 }
 0x662   :  { %v2111_v37 = vadd.f32 1.0, %v3973_v26 }
 0x663   :  { %v3975_v22 = vpop.eup %3974 }
 0x664   :  { %v2113_v12 = vadd.f32 1.0, %v3975_v22  ;;  %3980 = vrcp.f32 %v2111_v37  ;;  %v3977_v6 = vpop.eup %3976 }
 0x665   :  { %v3979_v21 = vpop.eup %3978  ;;  %v2117_v0 = vadd.f32 1.0, %v3977_v6 }
 0x666   :  { %v2115_v55 = vadd.f32 1.0, %v3979_v21 }
 0x66e   :  { %v3981_v25 = vpop.eup %3980 }
 0x710   :  { %v3347_v3 = vpop.f32.mrb[24].mxu1 }
 0x711   :  { %v2281_v48 = vadd.f32 %v3347_v3, %v4878_v27  ;;  %v2233_v32 = vpop.f32.mrb[25].mxu1 }
 0x712   :  { %v2280_v44 = vadd.f32 %v4878_v27, %v2233_v32 }
 0x713   :  { %v2289_v30 = vmul.f32 %v2281_v48, %v4588_v16 }
 0x714   :  { %v2288_v62 = vmul.f32 %v2280_v44, %v4584_v8 }
 0x715   :  { %3982 = vtanh.f32 %v2289_v30 }
 0x716   :  { %3984 = vtanh.f32 %v2288_v62 }
 0x717   :  { %3986 = vrcp.f32 %v2113_v12 }
 0x718   :  { %3988 = vpow2.f32 %v2925_v24 }
 0x719   :  { %3990 = vpow2.f32 %v2923_v2 }
 0x71a   :  { %v3350_v23 = vpop.f32.mrb[26].mxu1  ;;  %3992 = vpow2.f32 %v2927_v5 }
 0x71b   :  { %v2283_v15 = vadd.f32 %v3350_v23, %v4878_v27  ;;  %v2243_v57 = vpop.f32.mrb[27].mxu1  ;;  %3994 = vpow2.f32 %v2929_v11 }
 0x71c   :  { %v2282_v14 = vadd.f32 %v4878_v27, %v2243_v57 }
 0x71d   :  { %v2291_v63 = vmul.f32 %v2283_v15, %v4590_v20 }
 0x71e   :  { %v2290_v49 = vmul.f32 %v2282_v14, %v4586_v10 }
 0x71f   :  { %v3983_v33 = vpop.eup %3982  ;;  %3996 = vtanh.f32 %v2291_v63 }
 0x720   :  { %v3985_v47 = vpop.eup %3984  ;;  %3998 = vtanh.f32 %v2290_v49  ;;  %v2305_v28 = vsub.f32 %v3983_v33, %v4901_v19 }
 0x721   :  { %v3987_v43 = vpop.eup %3986  ;;  %4000 = vrcp.f32 %v2117_v0  ;;  %v2304_v51 = vsub.f32 %v3985_v47, %v4905_v18 }
 0x722   :  { %v3989_v56 = vpop.eup %3988  ;;  %4002 = vrcp.f32 %v2115_v55  ;;  %v3353_v4 = vpop.f32.mrb[28].mxu1  ;;  %v2313_v53 = vmul.f32 %v3987_v43, %v2305_v28 }
 0x723   :  { %v3991_v61 = vpop.eup %3990  ;;  %v2285_v41 = vadd.f32 %v3353_v4, %v4878_v27  ;;  %v2253_v39 = vpop.f32.mrb[29].mxu1  ;;  %v2312_v35 = vmul.f32 %v3981_v25, %v2304_v51  ;;  %v2121_v46 = vadd.f32 1.0, %v3989_v56 }
 0x724   :  { %v2284_v7 = vadd.f32 %v4878_v27, %v2253_v39  ;;  %v2119_v22 = vadd.f32 1.0, %v3991_v61  ;;  %v3993_v52 = vpop.eup %3992  ;;  %v2321_v48 = vadd.f32 %v2313_v53, %v4901_v19  ;;  %v2751_v39 = vld [vmem:[#allocation13 + $0x8] sm:$0xff] }
 0x725   :  { %v2293_v26 = vmul.f32 %v2285_v41, %v4603_v36  ;;  %v2320_v29 = vadd.f32 %v2312_v35, %v4905_v18  ;;  %v3995_v3 = vpop.eup %3994  ;;  %v2123_v11 = vadd.f32 1.0, %v3993_v52  ;;  %v2750_v41 = vld [vmem:[#allocation13] sm:$0xff] }
 0x726   :  { %v2292_v37 = vmul.f32 %v2284_v7, %v4608_v40  ;;  %v2125_v5 = vadd.f32 1.0, %v3995_v3  ;;  %v3721_v35 = vpack.c.bf16 %v2751_v39, %v2750_v41  ;;  %v2752_v7 = vld [vmem:[#allocation13 + $0x10] sm:$0xff]  ;;  %v2758_v3 = vld [vmem:[#allocation13 + $0x40] sm:$0xff] }
 0x727   :  { %4004 = vtanh.f32 %v2293_v26  ;;  %2437 = vmatmul.mubr.f32.vlgmr.msra.gmra.mrb[40].mxu0 %v2320_v29  ;;  %v2754_v29 = vld [vmem:[#allocation13 + $0x20] sm:$0xff] }
 0x728   :  { %4006 = vtanh.f32 %v2292_v37  ;;  %2442 = vmatprep.mubr.f32.mxu0 %v5255_v17  ;;  %v3356_v44 = vpop.f32.mrb[30].mxu1  ;;  %v2756_v37 = vld [vmem:[#allocation13 + $0x30] sm:$0xff] }
 0x729   :  { %v3997_v1 = vpop.eup %3996  ;;  %4008 = vrcp.f32 %v2121_v46  ;;  %v2287_v30 = vadd.f32 %v3356_v44, %v4878_v27  ;;  %v2263_v24 = vpop.f32.mrb[31].mxu1  ;;  %v2753_v46 = vld [vmem:[#allocation13 + $0x18] sm:$0xff] }
 0x72a   :  { %v3999_v32 = vpop.eup %3998  ;;  %4010 = vrcp.f32 %v2119_v22  ;;  %v2307_v12 = vsub.f32 %v3997_v1, %v4919_v45  ;;  %v2286_v59 = vadd.f32 %v4878_v27, %v2263_v24  ;;  %v3724_v26 = vpack.c.bf16 %v2753_v46, %v2752_v7  ;;  %v2759_v1 = vld [vmem:[#allocation13 + $0x48] sm:$0xff]  ;;  %v2761_v44 = vld [vmem:[#allocation13 + $0x58] sm:$0xff] }
 0x72b   :  { %v4001_v18 = vpop.eup %4000  ;;  %2443 = vmatmul.mubr.f32.gmra.mrb[42].mxu0 %v2321_v48  ;;  %v2306_v62 = vsub.f32 %v3999_v32, %v4924_v13  ;;  %v2295_v19 = vmul.f32 %v2287_v30, %v4628_v54  ;;  %v3733_v48 = vpack.c.bf16 %v2759_v1, %v2758_v3  ;;  %v2760_v32 = vld [vmem:[#allocation13 + $0x50] sm:$0xff]  ;;  %v2763_v30 = vld [vmem:[#allocation13 + $0x68] sm:$0xff] }
 0x72c   :  { %v4003_v2 = vpop.eup %4002  ;;  %2448 = vmatprep.mubr.f32.mxu0 %v5255_v17  ;;  %v2315_v34 = vmul.f32 %v4001_v18, %v2307_v12  ;;  %v2294_v23 = vmul.f32 %v2286_v59, %v4634_v60  ;;  %v3736_v12 = vpack.c.bf16 %v2761_v44, %v2760_v32  ;;  %v2762_v18 = vld [vmem:[#allocation13 + $0x60] sm:$0xff] }
 0x72d   :  { %v2314_v6 = vmul.f32 %v4003_v2, %v2306_v62  ;;  %4012 = vtanh.f32 %v2295_v19  ;;  %v3739_v24 = vpack.c.bf16 %v2763_v30, %v2762_v18  ;;  %v2764_v62 = vld [vmem:[#allocation13 + $0x70] sm:$0xff]  ;;  %v2765_v2 = vld [vmem:[#allocation13 + $0x78] sm:$0xff] }
 0x72e   :  { %4014 = vtanh.f32 %v2294_v23  ;;  %v2323_v0 = vadd.f32 %v2315_v34, %v4919_v45  ;;  %v3742_v59 = vpack.c.bf16 %v2765_v2, %v2764_v62  ;;  %v5268_v34 = vsub.s32 1, %v4814_v42  ;;  %v2678_v42 = vpop.permute.xlu1 %2677 }
 0x72f   :  { %v2322_v21 = vadd.f32 %v2314_v6, %v4924_v13  ;;  %4016 = vrcp.f32 %v2125_v5 }
 0x730   :  { %4018 = vrcp.f32 %v2123_v11 }
 0x731   :  { %v4005_v15 = vpop.eup %4004  ;;  %2449 = vmatmul.mubr.f32.gmra.mrb[44].mxu0 %v2322_v21 }
 0x732   :  { %v4007_v57 = vpop.eup %4006  ;;  %2454 = vmatprep.mubr.f32.mxu0 %v5255_v17  ;;  %v2309_v27 = vsub.f32 %v4005_v15, %v4931_v38 }
 0x733   :  { %v4009_v14 = vpop.eup %4008  ;;  %v2308_v63 = vsub.f32 %v4007_v57, %v4936_v31 }
 0x734   :  { %v4011_v25 = vpop.eup %4010  ;;  %v2317_v55 = vmul.f32 %v4009_v14, %v2309_v27 }
 0x735   :  { %2455 = vmatmul.mubr.f32.gmra.mrb[46].mxu0 %v2323_v0  ;;  %v2316_v49 = vmul.f32 %v4011_v25, %v2308_v63 }
 0x736   :  { %2460 = vmatprep.mubr.f32.mxu0 %v5255_v17  ;;  %v2325_v45 = vadd.f32 %v2317_v55, %v4931_v38  ;;  %v4277_v38 = vmov 0.0|0.0  }
 0x737   :  { %v2324_v13 = vadd.f32 %v2316_v49, %v4936_v31  ;;  %v4013_v33 = vpop.eup %4012  ;;  %3720 = vmatprep.subr.bf16.mxu0 %v4277_v38 }
 0x738   :  { %v4015_v47 = vpop.eup %4014  ;;  %v2311_v28 = vsub.f32 %v4013_v33, %v4945_v50  ;;  %3722 = vmatpush3.bf16.msra.mxu0 %v3721_v35 }
 0x739   :  { %2461 = vmatmul.mubr.f32.gmra.mrb[48].mxu0 %v2324_v13  ;;  %v4017_v43 = vpop.eup %4016  ;;  %v2310_v51 = vsub.f32 %v4015_v47, %v4950_v58  ;;  %3723 = vmatprep.subr.bf16.mxu0 %v4277_v38  ;;  %v5131_v13 = vpop.permute.xlu0 %2672 }
 0x73a   :  { %2466 = vmatprep.mubr.f32.mxu0 %v5255_v17  ;;  %v4019_v56 = vpop.eup %4018  ;;  %v2319_v4 = vmul.f32 %v4017_v43, %v2311_v28 }
 0x73b   :  { %v2318_v53 = vmul.f32 %v4019_v56, %v2310_v51 }
 0x73c   :  { %v2327_v61 = vadd.f32 %v2319_v4, %v4945_v50  ;;  %3725 = vmatpush3.bf16.msra.mxu0 %v3724_v26  ;;  %v2757_v50 = vld [vmem:[#allocation13 + $0x38] sm:$0xff]  ;;  %v5140_v26 = vpop.permute.xlu1 %2687 }
 0x73d   :  { %2467 = vmatmul.mubr.f32.gmra.mrb[50].mxu0 %v2325_v45  ;;  %v2326_v31 = vadd.f32 %v2318_v53, %v4950_v58  ;;  %3726 = vmatprep.subr.bf16.mxu0 %v4277_v38  ;;  %v2755_v58 = vld [vmem:[#allocation13 + $0x28] sm:$0xff]  ;;  %v3730_v52 = vpack.c.bf16 %v2757_v50, %v2756_v37 }
 0x73e   :  { %2472 = vmatprep.mubr.f32.mxu0 %v5255_v17  ;;  %v3727_v22 = vpack.c.bf16 %v2755_v58, %v2754_v29 }
 0x740   :  { %3728 = vmatpush3.bf16.msra.mxu0 %v3727_v22 }
 0x741   :  { %2473 = vmatmul.mubr.f32.gmra.mrb[52].mxu0 %v2326_v31  ;;  %3729 = vmatprep.subr.bf16.mxu0 %v4277_v38  ;;  %v5136_v31 = vpop.permute.xlu0 %2682 }
 0x742   :  { %2478 = vmatprep.mubr.f32.mxu0 %v5255_v17 }
 0x744   :  { %3731 = vmatpush3.bf16.msra.mxu0 %v3730_v52 }
 0x745   :  { %2479 = vmatmul.mubr.f32.gmra.mrb[54].mxu0 %v2327_v61  ;;  %3732 = vmatprep.subr.bf16.mxu0 %v4277_v38  ;;  %v5142_v22 = vpop.permute.xlu0 %2692 }
 0x746   :  { %3389 = vmatprep.mubr.msk.f32.mxu0 %vm4278_vm3, %v5255_v17  ;;  %v2360_v17 = vld [vmem:[%s5199_s11] sm:$0x3] }
 0x747   :  { %v5122_v5 = vrot.slane %v2360_v17, %v5268_v34  ;;  %v5129_v25 = vrot.slane %v2360_v17, %v211_v9 }
 0x748   :  { %3734 = vmatpush3.bf16.msra.mxu0 %v3733_v48 }
 0x749   :  { %3735 = vmatprep.subr.bf16.mxu0 %v4277_v38  ;;  %v5149_v34 = vpop.permute.xlu0 %2702 }
 0x74c   :  { %3737 = vmatpush3.bf16.msra.mxu0 %v3736_v12 }
 0x74d   :  { %3738 = vmatprep.subr.bf16.mxu0 %v4277_v38 }
 0x750   :  { %3740 = vmatpush3.bf16.msra.mxu0 %v3739_v24 }
 0x751   :  { %3741 = vmatprep.subr.bf16.mxu0 %v4277_v38 }
 0x754   :  { %3743 = vmatpush3.bf16.msra.mxu0 %v3742_v59 }
 0x7fa   :  { %v2438_v19 = vpop.f32.mrb[40].mxu0 }
 0x7fb   :  { %v2440_v6 = vpop.f32.mrb[41].mxu0  ;;  %v2439_v43 = vadd.f32 %v2438_v19, %v5129_v25  ;;  %v5151_v19 = vpop.permute.xlu1 %2697 }
 0x7fc   :  { %v2441_v11 = vadd.f32 %v2440_v6, %v5122_v5 }
 0x7fe   :  { %v2931_v23 = vmul.f32 -1.442695, %v2441_v11  ;;  %v2444_v21 = vpop.f32.mrb[42].mxu0 }
 0x7ff   :  { %v2446_v15 = vpop.f32.mrb[43].mxu0  ;;  %v2445_v61 = vadd.f32 %v2444_v21, %v5129_v25 }
 0x800   :  { %4020 = vpow2.f32 %v2931_v23  ;;  %v2447_v57 = vadd.f32 %v2446_v15, %v5122_v5 }
 0x802   :  { %v2932_v27 = vmul.f32 -1.442695, %v2447_v57 }
 0x804   :  { %4022 = vpow2.f32 %v2932_v27  ;;  %v2450_v14 = vpop.f32.mrb[44].mxu0 }
 0x805   :  { %v2452_v0 = vpop.f32.mrb[45].mxu0  ;;  %v2451_v37 = vadd.f32 %v2450_v14, %v5129_v25 }
 0x806   :  { %v2453_v63 = vadd.f32 %v2452_v0, %v5122_v5 }
 0x808   :  { %v2933_v55 = vmul.f32 -1.442695, %v2453_v63  ;;  %v2456_v49 = vpop.f32.mrb[46].mxu0 }
 0x809   :  { %v2458_v33 = vpop.f32.mrb[47].mxu0  ;;  %v2457_v30 = vadd.f32 %v2456_v49, %v5129_v25  ;;  %v5156_v49 = vpop.permute.xlu1 %2707 }
 0x80a   :  { %v4021_v47 = vpop.eup %4020  ;;  %4024 = vpow2.f32 %v2933_v55  ;;  %v2459_v28 = vadd.f32 %v2458_v33, %v5122_v5  ;;  %v2645_v55 = vpop.permute.xlu0 %2644 }
 0x80b   :  { %v2517_v45 = vadd.f32 1.0, %v4021_v47 }
 0x80c   :  { %v2934_v51 = vmul.f32 -1.442695, %v2459_v28  ;;  %v2462_v56 = vpop.f32.mrb[48].mxu0 }
 0x80d   :  { %4026 = vrcp.f32 %v2517_v45  ;;  %v2464_v4 = vpop.f32.mrb[49].mxu0  ;;  %v2463_v21 = vadd.f32 %v2462_v56, %v5129_v25 }
 0x80e   :  { %v4023_v53 = vpop.eup %4022  ;;  %4028 = vpow2.f32 %v2934_v51  ;;  %v2465_v9 = vadd.f32 %v2464_v4, %v5122_v5 }
 0x80f   :  { %4030 = vtanh.f32 %v2439_v43  ;;  %v2518_v41 = vadd.f32 1.0, %v4023_v53 }
 0x810   :  { %v2935_v39 = vmul.f32 -1.442695, %v2465_v9  ;;  %v2468_v35 = vpop.f32.mrb[50].mxu0 }
 0x811   :  { %4032 = vrcp.f32 %v2518_v41  ;;  %v2470_v38 = vpop.f32.mrb[51].mxu0 }
 0x812   :  { %4034 = vpow2.f32 %v2935_v39  ;;  %v2471_v7 = vadd.f32 %v2470_v38, %v5122_v5  ;;  %v2650_v38 = vpop.permute.xlu1 %2649 }
 0x813   :  { %4036 = vtanh.f32 %v2445_v61 }
 0x814   :  { %v4025_v46 = vpop.eup %4024  ;;  %v2936_v29 = vmul.f32 -1.442695, %v2471_v7  ;;  %v2474_v58 = vpop.f32.mrb[52].mxu0 }
 0x815   :  { %v2519_v50 = vadd.f32 1.0, %v4025_v46  ;;  %v2476_v52 = vpop.f32.mrb[53].mxu0 }
 0x816   :  { %4038 = vpow2.f32 %v2936_v29  ;;  %v2477_v3 = vadd.f32 %v2476_v52, %v5122_v5 }
 0x817   :  { %v4027_v1 = vpop.eup %4026  ;;  %4040 = vrcp.f32 %v2519_v50 }
 0x818   :  { %v4029_v48 = vpop.eup %4028  ;;  %v2541_v32 = vmul.f32 %v4027_v1, %v4584_v8  ;;  %v2937_v44 = vmul.f32 -1.442695, %v2477_v3  ;;  %v2480_v12 = vpop.f32.mrb[54].mxu0  ;;  %4042 = vtanh.f32 %v2451_v37 }
 0x819   :  { %v4031_v18 = vpop.eup %4030  ;;  %v2520_v24 = vadd.f32 1.0, %v4029_v48  ;;  %v2482_v62 = vpop.f32.mrb[55].mxu0  ;;  %v2481_v52 = vadd.f32 %v2480_v12, %v5129_v25 }
 0x81a   :  { %v2549_v2 = vmul.f32 %v4031_v18, %v2541_v32  ;;  %4044 = vpow2.f32 %v2937_v44  ;;  %v2483_v59 = vadd.f32 %v2482_v62, %v5122_v5 }
 0x81b   :  { %v4033_v17 = vpop.eup %4032  ;;  %4046 = vrcp.f32 %v2520_v24 }
 0x81c   :  { %v4035_v6 = vpop.eup %4034  ;;  %v2542_v8 = vmul.f32 %v4033_v17, %v4588_v16  ;;  %v2938_v11 = vmul.f32 -1.442695, %v2483_v59  ;;  %4048 = vtanh.f32 %v2457_v30  ;;  %v2710_v5 = vadd.f32 %v5131_v13, %v2549_v2 }
 0x81d   :  { %v4037_v23 = vpop.eup %4036  ;;  %v2521_v15 = vadd.f32 1.0, %v4035_v6  ;;  %v2469_v16 = vadd.f32 %v2468_v35, %v5129_v25 }
 0x81e   :  { %v2550_v57 = vmul.f32 %v4037_v23, %v2542_v8  ;;  %4050 = vpow2.f32 %v2938_v11 }
 0x81f   :  { %4052 = vrcp.f32 %v2521_v15 }
 0x820   :  { %v4039_v27 = vpop.eup %4038  ;;  %v2614_v14 = vadd.f32 %v2550_v57, %v2549_v2  ;;  %v2711_v0 = vadd.f32 %v2678_v42, %v2550_v57  ;;  %4054 = vtanh.f32 %v2463_v21  ;;  %v2475_v42 = vadd.f32 %v2474_v58, %v5129_v25 }
 0x821   :  { %v4041_v63 = vpop.eup %4040  ;;  %v2522_v33 = vadd.f32 1.0, %v4039_v27  ;;  %4056 = vrcp.f32 %v2645_v55 }
 0x822   :  { %v2615_v47 = vrot.slane %v2614_v14, 4  ;;  %v2718_v28 = vmax.f32 %v2710_v5, %v2711_v0  ;;  %v2543_v43 = vmul.f32 %v4041_v63, %v4586_v10  ;;  %v4043_v45 = vpop.eup %4042  ;;  %v2655_v5 = vpop.permute.xlu0 %2654 }
 0x823   :  { %4058 = vrcp.f32 %v2522_v33 }
 0x824   :  { %v4045_v51 = vpop.eup %4044  ;;  %v2616_v56 = vadd.f32 %v2615_v47, %v2614_v14  ;;  %v2551_v13 = vmul.f32 %v4043_v45, %v2543_v43  ;;  %v2719_v4 = vrot.slane %v2718_v28, 4  ;;  %4060 = vtanh.f32 %v2469_v16 }
 0x825   :  { %v4047_v53 = vpop.eup %4046  ;;  %v2523_v9 = vadd.f32 1.0, %v4045_v51 }
 0x826   :  { %v2544_v61 = vmul.f32 %v4047_v53, %v4590_v20  ;;  %v2617_v41 = vrot.slane %v2616_v56, 2  ;;  %v2720_v39 = vmax.f32 %v2718_v28, %v2719_v4  ;;  %v4049_v35 = vpop.eup %4048  ;;  %v2712_v50 = vadd.f32 %v5136_v31, %v2551_v13 }
 0x827   :  { %4062 = vrcp.f32 %v2523_v9 }
 0x828   :  { %v4051_v7 = vpop.eup %4050  ;;  %4064 = vrcp.f32 %v2650_v38  ;;  %v2552_v10 = vmul.f32 %v4049_v35, %v2544_v61  ;;  %v2618_v46 = vadd.f32 %v2617_v41, %v2616_v56  ;;  %v2721_v29 = vrot.slane %v2720_v39, 2 }
 0x829   :  { %v4053_v37 = vpop.eup %4052  ;;  %4066 = vtanh.f32 %v2475_v42  ;;  %v2524_v58 = vadd.f32 1.0, %v4051_v7 }
 0x82a   :  { %v2621_v3 = vadd.f32 %v2552_v10, %v2551_v13  ;;  %v2713_v20 = vadd.f32 %v5140_v26, %v2552_v10  ;;  %v2545_v1 = vmul.f32 %v4053_v37, %v4608_v40  ;;  %v2619_v48 = vrot.slane %v2618_v46, 1  ;;  %v4055_v32 = vpop.eup %4054 }
 0x82b   :  { %4068 = vrcp.f32 %v2524_v58  ;;  %v2722_v44 = vmax.f32 %v2720_v39, %v2721_v29  ;;  %v4057_v18 = vpop.eup %4056  ;;  %v2660_v39 = vpop.permute.xlu1 %2659 }
 0x82c   :  { %v2622_v30 = vrot.slane %v2621_v3, 4  ;;  %v2725_v24 = vmax.f32 %v2712_v50, %v2713_v20  ;;  %v2553_v62 = vmul.f32 %v4055_v32, %v2545_v1  ;;  %v2620_v2 = vadd.f32 %v2619_v48, %v2618_v46 }
 0x82d   :  { %v4059_v59 = vpop.eup %4058  ;;  %4070 = vtanh.f32 %v2481_v52  ;;  %v2723_v31 = vrot.slane %v2722_v44, 1 }
 0x82e   :  { %v2623_v17 = vadd.f32 %v2622_v30, %v2621_v3  ;;  %v2546_v25 = vmul.f32 %v4059_v59, %v4603_v36  ;;  %v2663_v12 = vmul.f32 %v4057_v18, %v2620_v2  ;;  %v4061_v6 = vpop.eup %4060  ;;  %v2726_v8 = vrot.slane %v2725_v24, 4 }
 0x82f   :  { %v2724_v26 = vmax.f32 %v2722_v44, %v2723_v31  ;;  %v2714_v21 = vadd.f32 %v5142_v22, %v2553_v62  ;;  %4072 = vrcp.f32 %v2655_v5 }
 0x830   :  { %v2554_v40 = vmul.f32 %v4061_v6, %v2546_v25  ;;  %v2624_v11 = vrot.slane %v2623_v17, 2  ;;  %v2727_v15 = vmax.f32 %v2725_v24, %v2726_v8  ;;  %4074 = vrcp.f32 %v2660_v39 }
 0x831   :  { %v4063_v23 = vpop.eup %4062  ;;  %v2746_v57 = vadd.f32 %v2724_v26, %v2663_v12 }
 0x832   :  { %v4065_v27 = vpop.eup %4064  ;;  %v2628_v14 = vadd.f32 %v2554_v40, %v2553_v62  ;;  %v2715_v0 = vadd.f32 %v5151_v19, %v2554_v40  ;;  %v2547_v63 = vmul.f32 %v4063_v23, %v4634_v60  ;;  %v2625_v55 = vadd.f32 %v2624_v11, %v2623_v17  ;;  %v2947_v11 = vld [vmem:[%s5201_s13] ss:$0 sm:$0xff] }
 0x833   :  { %v4067_v36 = vpop.eup %4066  ;;  %v2728_v16 = vrot.slane %v2727_v15, 2 }
 0x834   :  { %v2629_v33 = vrot.slane %v2628_v14, 4  ;;  %v2555_v47 = vmul.f32 %v4067_v36, %v2547_v63  ;;  %v2626_v28 = vrot.slane %v2625_v55, 1  ;;  %v2732_v43 = vmax.f32 %v2714_v21, %v2715_v0 }
 0x835   :  { %v4069_v45 = vpop.eup %4068  ;;  %v2729_v51 = vmax.f32 %v2727_v15, %v2728_v16 }
 0x836   :  { %v2548_v22 = vmul.f32 %v4069_v45, %v4628_v54  ;;  %v2627_v56 = vadd.f32 %v2626_v28, %v2625_v55  ;;  %v2630_v13 = vadd.f32 %v2629_v33, %v2628_v14  ;;  %v2733_v42 = vrot.slane %v2732_v43, 4 }
 0x837   :  { %v4071_v4 = vpop.eup %4070  ;;  %v2730_v53 = vrot.slane %v2729_v51, 1  ;;  %v2716_v35 = vadd.f32 %v5149_v34, %v2555_v47 }
 0x838   :  { %v2556_v19 = vmul.f32 %v4071_v4, %v2548_v22  ;;  %v2631_v9 = vrot.slane %v2630_v13, 2  ;;  %v2665_v60 = vmul.f32 %v4065_v27, %v2627_v56  ;;  %v2734_v41 = vmax.f32 %v2732_v43, %v2733_v42 }
 0x839   :  { %v2731_v61 = vmax.f32 %v2729_v51, %v2730_v53  ;;  %v4073_v48 = vpop.eup %4072 }
 0x83a   :  { %v2635_v38 = vadd.f32 %v2556_v19, %v2555_v47  ;;  %v2717_v7 = vadd.f32 %v5156_v49, %v2556_v19  ;;  %v2632_v10 = vadd.f32 %v2631_v9, %v2630_v13  ;;  %v2735_v46 = vrot.slane %v2734_v41, 2  ;;  %v4075_v12 = vpop.eup %4074 }
 0x83b   :  { %v2747_v54 = vadd.f32 %v2731_v61, %v2665_v60 }
 0x83c   :  { %v2633_v29 = vrot.slane %v2632_v10, 1  ;;  %v2636_v37 = vrot.slane %v2635_v38, 4  ;;  %v2739_v50 = vmax.f32 %v2716_v35, %v2717_v7  ;;  %v2736_v52 = vmax.f32 %v2734_v41, %v2735_v46 }
 0x83d   :  { %v2778_v58 = vsel %vm2777_vm4, %v2747_v54, %v2746_v57 }
 0x83e   :  { %v2634_v3 = vadd.f32 %v2633_v29, %v2632_v10  ;;  %v2637_v20 = vadd.f32 %v2636_v37, %v2635_v38  ;;  %v2740_v1 = vrot.slane %v2739_v50, 4  ;;  %v2737_v32 = vrot.slane %v2736_v52, 1 }
 0x840   :  { %v2638_v44 = vrot.slane %v2637_v20, 2  ;;  %v2667_v18 = vmul.f32 %v4073_v48, %v2634_v3  ;;  %v2741_v34 = vmax.f32 %v2739_v50, %v2740_v1  ;;  %v2738_v30 = vmax.f32 %v2736_v52, %v2737_v32 }
 0x842   :  { %v2639_v24 = vadd.f32 %v2638_v44, %v2637_v20  ;;  %v2742_v49 = vrot.slane %v2741_v34, 2  ;;  %v2748_v62 = vadd.f32 %v2738_v30, %v2667_v18 }
 0x844   :  { %v2640_v2 = vrot.slane %v2639_v24, 1  ;;  %v2743_v59 = vmax.f32 %v2741_v34, %v2742_v49  ;;  %v2780_v31 = vsel %vm2779_vm5, %v2748_v62, %v2778_v58 }
 0x846   :  { %v2641_v17 = vadd.f32 %v2640_v2, %v2639_v24  ;;  %v2744_v25 = vrot.slane %v2743_v59, 1 }
 0x848   :  { %v2669_v6 = vmul.f32 %v4075_v12, %v2641_v17  ;;  %v2745_v26 = vmax.f32 %v2743_v59, %v2744_v25 }
 0x84a   :  { %v2749_v8 = vadd.f32 %v2745_v26, %v2669_v6 }
 0x84c   :  { %v2782_v40 = vsel %vm2781_vm6, %v2749_v8, %v2780_v31 }
 0x84d   :  { %3390 = vmatmul.mubr.f32.vlgmr.msra.gmra.mrb[56].mxu0 %v2782_v40 }
 0x920   :  { %v2850_v23 = vpop.f32.mrb[56].mxu0 }
 0x921   :  { %v2851_v21 = vadd.f32 %v2947_v11, %v2850_v23  ;;  %v3391_v15 = vpop.f32.mrb[57].mxu0 }
 0x923   :  { %2854 = vst [vmem:[#allocation14] sm:$0xf] %v2851_v21 }
 0x924   :  { %4241 = shalt.err (!%p4238_p4)
}
 0x925   :  { %s4242_s19 = scalar_lea.hbm %s5202_s14, 64 }
 0x926   :  { %p4243_p5 = scmp.ne.s32.totalorder %s5202_s14, %s4242_s19  ;;  %p4246_p6 = scmp.lt.u32.totalorder %s4242_s19, %s5202_s14 }
 0x928   :  { %p4248_p7 = pnand %p4246_p6, %p4243_p5 }
 0x92a   :  { %4251 = shalt.err (!%p4248_p7)
}
 0x92b   :  { %2864 = dma.vmem_to_hbm [thread:$0]  %s2862_s2, 64, %s5202_s14, [#allocation4]  }
 0x92c   :  { %4260 = dma.done.wait [#allocation4], 64  }
 0x92d   :  { %4261 = vsyncadd [#allocation4], 4294967232 }
 0x92e   :  { %2868 = vsyncpa [#allocation3], 1 }
 0x92f   :  { %2869 = vsyncpa [#allocation6], 1 }
 0x930   :  { %2870 = vsyncpa [#allocation9], 1 }
 0x931   :  { %2871 = vsyncpa [#allocation12], 1 }
 0x932   :  { %2872 = vsyncpa [#allocation4], 1 }

</bundles_post_ra>
